<compile_context>
chip_gen: v6e
topology: v6e:2x2x1
jax: 0.10.0
libtpu: 0.0.40
codegen_flags: <defaults>
</compile_context>

<pallas_src>
import math

import jax
import jax.numpy as jnp
import numpy as np
from jax import lax
from jax.experimental import pallas as pl
from jax.experimental.pallas import tpu as pltpu

LEAKY_SLOPE = 0.01


def _round_up(v, m):
    return -(-v // m) * m


def _choose_mp_tm(m):
    """Pad M to a tile-friendly size and pick the row-tile."""
    if m >= 512:
        mp = _round_up(m, 256)
        return mp, 256
    if m >= 128:
        mp = _round_up(m, 128)
        return mp, 128
    mp = _round_up(m, 8)
    return mp, mp


# ---------------------------------------------------------------------------
# Pallas kernels
# ---------------------------------------------------------------------------
def _gemm_bias_kernel(a_ref, w_ref, b_ref, o_ref):
    """conv0 GEMM: out = A @ W + b (activation comes after GroupNorm)."""
    o_ref[...] = jnp.dot(a_ref[...], w_ref[...],
                         preferred_element_type=jnp.float32) + b_ref[...]


def _att_fused_kernel(a_ref, w1_ref, b1_ref, w2_ref, b2_ref, o_ref):
    """Fused attention branch for all 5 heads:
       y  = leaky(A @ W1 + b1)        (3x3 conv, 25 output channels)
       xh = leaky(y @ W2 + b2)        (block-diagonal 1x1 conv, 5 channels)"""
    y = jnp.dot(a_ref[...], w1_ref[...], preferred_element_type=jnp.float32)
    y = y + b1_ref[...]
    y = jnp.maximum(y, LEAKY_SLOPE * y)
    z = jnp.dot(y.astype(jnp.bfloat16), w2_ref[...],
                preferred_element_type=jnp.float32) + b2_ref[...]
    o_ref[...] = jnp.maximum(z, LEAKY_SLOPE * z)


def _head_fused_kernel(xh_ref, a_ref, wa_ref, ba_ref, wb_ref, bb_ref, o_ref):
    """Fused head branch, one head per inner grid step g (output block resident):
       y   = leaky(A_g @ Wa_g + ba_g)          (3x3 conv, 16 channels)
       o_g = leaky(y @ Wb_g + bb_g)            (1x1 conv routed to column g)
       out = xh + sum_g o_g                     (accumulated in VMEM)"""
    g = pl.program_id(1)
    y = jnp.dot(a_ref[...], wa_ref[g], preferred_element_type=jnp.float32)
    y = y + ba_ref[g]
    y = jnp.maximum(y, LEAKY_SLOPE * y)
    oh = jnp.dot(y.astype(jnp.bfloat16), wb_ref[g],
                 preferred_element_type=jnp.float32) + bb_ref[g]
    oh = jnp.maximum(oh, LEAKY_SLOPE * oh)   # columns != g are exactly 0

    @pl.when(g == 0)
    def _():
        o_ref[...] = xh_ref[...] + oh

    @pl.when(g != 0)
    def _():
        o_ref[...] = o_ref[...] + oh


# ---------------------------------------------------------------------------
# pallas_call wrappers
# ---------------------------------------------------------------------------
def conv0_gemm(a, w, b, n_out, mp, tm):
    m, k = a.shape
    kp, np_ = w.shape
    assert kp % 128 == 0 and np_ % 128 == 0 and kp <= 4096
    # TODO(synk): add a K grid axis + accumulator scratch for K > 4096.
    tn = 128
    a_p = jnp.pad(a, ((0, mp - m), (0, kp - k)))
    out = pl.pallas_call(
        _gemm_bias_kernel,
        out_shape=jax.ShapeDtypeStruct((mp, np_), jnp.float32),
        grid_spec=pltpu.PrefetchScalarGridSpec(
            num_scalar_prefetch=0,
            grid=(mp // tm, np_ // tn),
            in_specs=[
                pl.BlockSpec((tm, kp), lambda i, j: (i, 0)),
                pl.BlockSpec((kp, tn), lambda i, j: (0, j)),
                pl.BlockSpec((1, tn), lambda i, j: (0, j)),
            ],
            out_specs=pl.BlockSpec((tm, tn), lambda i, j: (i, j)),
        ),
        compiler_params=pltpu.CompilerParams(
            dimension_semantics=("parallel", "parallel")),
    )(a_p, w, b)
    return out[:m, :n_out]


def att_gemm(a, w1, b1, w2, b2, mp, tm):
    m, k = a.shape
    kp = w1.shape[0]
    assert kp % 128 == 0 and kp <= 4096
    a_p = jnp.pad(a, ((0, mp - m), (0, kp - k)))
    return pl.pallas_call(
        _att_fused_kernel,
        out_shape=jax.ShapeDtypeStruct((mp, 128), jnp.float32),
        grid_spec=pltpu.PrefetchScalarGridSpec(
            num_scalar_prefetch=0,
            grid=(mp // tm,),
            in_specs=[
                pl.BlockSpec((tm, kp), lambda i: (i, 0)),
                pl.BlockSpec((kp, 128), lambda i: (0, 0)),
                pl.BlockSpec((1, 128), lambda i: (0, 0)),
                pl.BlockSpec((128, 128), lambda i: (0, 0)),
                pl.BlockSpec((1, 128), lambda i: (0, 0)),
            ],
            out_specs=pl.BlockSpec((tm, 128), lambda i: (i, 0)),
        ),
        compiler_params=pltpu.CompilerParams(
            dimension_semantics=("parallel",)),
    )(a_p, w1, b1, w2, b2)


def head_gemm(a, xh_pad, wa, ba, wb, bb, mp, tm):
    g5, m, k = a.shape
    kp = wa.shape[1]
    assert g5 == 5 and kp % 128 == 0 and kp <= 4096
    a_p = jnp.pad(a, ((0, 0), (0, mp - m), (0, kp - k)))
    return pl.pallas_call(
        _head_fused_kernel,
        out_shape=jax.ShapeDtypeStruct((mp, 128), jnp.float32),
        grid_spec=pltpu.PrefetchScalarGridSpec(
            num_scalar_prefetch=0,
            grid=(mp // tm, 5),
            in_specs=[
                pl.BlockSpec((tm, 128), lambda i, g: (i, 0)),            # xh (init)
                pl.BlockSpec((None, tm, kp), lambda i, g: (g, i, 0)),    # per-head A
                pl.BlockSpec((5, kp, 128), lambda i, g: (0, 0, 0)),      # Wa stack (resident)
                pl.BlockSpec((5, 1, 128), lambda i, g: (0, 0, 0)),       # ba stack
                pl.BlockSpec((5, 128, 128), lambda i, g: (0, 0, 0)),     # Wb stack
                pl.BlockSpec((5, 1, 128), lambda i, g: (0, 0, 0)),       # bb stack
            ],
            out_specs=pl.BlockSpec((tm, 128), lambda i, g: (i, 0)),
        ),
        compiler_params=pltpu.CompilerParams(
            dimension_semantics=("parallel", "arbitrary")),
    )(xh_pad, a_p, wa, ba, wb, bb)


# ---------------------------------------------------------------------------
# Cheap glue kept in plain JAX (fused by XLA inside the single top-level jit)
# ---------------------------------------------------------------------------
def _im2col3x3(x):
    """NHWC 'same' 3x3 patches: (B,H,W,C) -> (B*H*W, 9*C); K order (kh, kw, c)."""
    b, h, w, c = x.shape
    xp = jnp.pad(x, ((0, 0), (1, 1), (1, 1), (0, 0)))
    cols = [xp[:, i:i + h, j:j + w, :] for i in range(3) for j in range(3)]
    return jnp.concatenate(cols, axis=-1).reshape(b * h * w, 9 * c)


def _group_norm_nhwc(x, gamma, beta, groups, eps=1e-5):
    # TODO(synk): GroupNorm's full-spatial mean/var reduction stays in JAX
    # (a per-(sample,group) global reduction does not tile over the M grid).
    n, h, w, c = x.shape
    xg = x.reshape(n, h, w, groups, c // groups)
    mean = xg.mean(axis=(1, 2, 4), keepdims=True)
    var = jnp.mean((xg - mean) ** 2, axis=(1, 2, 4), keepdims=True)
    xn = ((xg - mean) * lax.rsqrt(var + eps)).reshape(n, h, w, c)
    return xn * gamma + beta


# ---------------------------------------------------------------------------
# Parameters: raw (PyTorch-layout, for the reference) + packed (for Pallas)
# ---------------------------------------------------------------------------
def _conv_init(key, out_ch, in_ch, kh, kw):
    k1, k2 = jax.random.split(key)
    fan_in = in_ch * kh * kw
    w = jax.random.normal(k1, (out_ch, in_ch, kh, kw), jnp.float32) / math.sqrt(fan_in)
    b = 0.01 * jax.random.normal(k2, (out_ch,), jnp.float32)
    return w, b


def init_raw_params(key, channel0, channels):
    assert channel0 % 16 == 0, "GroupNorm(num_groups=16) needs channel0 % 16 == 0"
    keys = jax.random.split(key, 21)
    p = {}
    p["conv0_w"], p["conv0_b"] = _conv_init(keys[0], channel0, channel0, 3, 3)
    p["gn_w"] = jnp.ones((channel0,), jnp.float32)
    p["gn_b"] = jnp.zeros((channel0,), jnp.float32)
    ki = 1
    for h in range(5):
        p[f"conv{h}a_w"], p[f"conv{h}a_b"] = _conv_init(keys[ki], 5, channels, 3, 3); ki += 1
        p[f"conv{h}b_w"], p[f"conv{h}b_b"] = _conv_init(keys[ki], 1, 5, 1, 1); ki += 1
        p[f"head{h}a_w"], p[f"head{h}a_b"] = _conv_init(keys[ki], 16, channel0, 3, 3); ki += 1
        p[f"head{h}b_w"], p[f"head{h}b_b"] = _conv_init(keys[ki], 1, 16, 1, 1); ki += 1
    return p


def _pack_w(w):
    """OIHW conv weight -> (kh*kw*C, O) GEMM weight (matches _im2col3x3 ordering)."""
    o, c, kh, kw = w.shape
    return jnp.transpose(w, (2, 3, 1, 0)).reshape(kh * kw * c, o)


def _pad2(w):
    k, n = w.shape
    return jnp.pad(w, ((0, _round_up(k, 128) - k), (0, _round_up(n, 128) - n)))


def _pad_bias(b):
    n = b.shape[0]
    return jnp.pad(b, (0, _round_up(n, 128) - n)).astype(jnp.float32).reshape(1, -1)


def pack_params(raw):
    """Pack / pre-pad all weights once, at init time."""
    p = {"gn_w": raw["gn_w"], "gn_b": raw["gn_b"]}

    # conv0 (3x3, C0 -> C0); GroupNorm + LeakyReLU applied afterwards in JAX.
    p["conv0_w"] = _pad2(_pack_w(raw["conv0_w"])).astype(jnp.bfloat16)
    p["conv0_b"] = _pad_bias(raw["conv0_b"])

    # Attention branches conv1..conv5: 3x3 concat (channels -> 25) then
    # block-diagonal 1x1 (25 -> 5); both fused into one kernel.
    w1 = jnp.concatenate([_pack_w(raw[f"conv{h}a_w"]) for h in range(5)], axis=1)
    b1 = jnp.concatenate([raw[f"conv{h}a_b"] for h in range(5)])
    p["att_w1"] = _pad2(w1).astype(jnp.bfloat16)          # (Kxp, 128)
    p["att_b1"] = _pad_bias(b1)
    w2 = jnp.zeros((25, 5), jnp.float32)
    b2 = []
    for h in range(5):
        w2 = w2.at[h * 5:(h + 1) * 5, h].set(raw[f"conv{h}b_w"].reshape(5))
        b2.append(raw[f"conv{h}b_b"])
    p["att_w2"] = _pad2(w2).astype(jnp.bfloat16)          # (128, 128)
    p["att_b2"] = _pad_bias(jnp.concatenate(b2))

    # Head branches head1..head5: per-head 3x3 (C0 -> 16) stacked, plus per-head
    # 1x1 whose single output is routed to output column h (so heads accumulate
    # into disjoint columns of one resident output block).
    wa = jnp.stack([_pack_w(raw[f"head{h}a_w"]) for h in range(5)])      # (5, 9*C0, 16)
    k0 = wa.shape[1]
    k0p = _round_up(k0, 128)
    p["head_wa"] = jnp.pad(wa, ((0, 0), (0, k0p - k0), (0, 128 - 16))).astype(jnp.bfloat16)
    ba = jnp.stack([raw[f"head{h}a_b"] for h in range(5)])               # (5, 16)
    p["head_ba"] = jnp.pad(ba, ((0, 0), (0, 128 - 16))).astype(jnp.float32)[:, None, :]
    wb = jnp.zeros((5, 128, 128), jnp.float32)
    bb = jnp.zeros((5, 1, 128), jnp.float32)
    for h in range(5):
        wb = wb.at[h, :16, h].set(raw[f"head{h}b_w"].reshape(16))
        bb = bb.at[h, 0, h].set(raw[f"head{h}b_b"][0])
    p["head_wb"] = wb.astype(jnp.bfloat16)
    p["head_bb"] = bb
    return p


# ---------------------------------------------------------------------------
# attHead forward (Pallas path) — jit this whole function once.
# ---------------------------------------------------------------------------
def atthead_forward(p, x0, x):
    n, c0, hh, ww = x0.shape
    m = n * hh * ww
    mp, tm = _choose_mp_tm(m)

    x0n = jnp.transpose(x0, (0, 2, 3, 1)).astype(jnp.bfloat16)   # NHWC, MXU dtype
    xn = jnp.transpose(x, (0, 2, 3, 1)).astype(jnp.bfloat16)

    # conv0: Conv3x3 -> GroupNorm(16) -> LeakyReLU
    y0 = conv0_gemm(_im2col3x3(x0n), p["conv0_w"], p["conv0_b"], c0, mp, tm)
    y0 = _group_norm_nhwc(y0.reshape(n, hh, ww, c0), p["gn_w"], p["gn_b"], 16)
    x0c = jnp.maximum(y0, LEAKY_SLOPE * y0)

    # conv1..conv5 (fused 3x3 + block-diag 1x1): xh_pad has the 5 head outputs
    # in columns 0..4 and exact zeros elsewhere.
    xh_pad = att_gemm(_im2col3x3(xn), p["att_w1"], p["att_b1"],
                      p["att_w2"], p["att_b2"], mp, tm)           # (mp, 128)
    xh = xh_pad[:m, :5]

    # attention weights, applied per head to conv0's output
    att = (1.0 - jax.nn.sigmoid(xh)).reshape(n, hh, ww, 5)
    hin = (x0c.astype(jnp.bfloat16)[None, ...] *
           jnp.transpose(att, (3, 0, 1, 2)).astype(jnp.bfloat16)[..., None])  # (5,N,H,W,C0)
    ah = _im2col3x3(hin.reshape(5 * n, hh, ww, c0)).reshape(5, m, 9 * c0)

    # head1..head5 fused (3x3 + 1x1), accumulated over heads on top of xh.
    out_pad = head_gemm(ah, xh_pad, p["head_wa"], p["head_ba"],
                        p["head_wb"], p["head_bb"], mp, tm)       # (mp, 128)

    out = out_pad[:m, :5].reshape(n, hh, ww, 5)
    return jnp.transpose(out, (0, 3, 1, 2))     # (N, 5, H, W) == torch.cat(dim=1)


# ---------------------------------------------------------------------------
# Pure-JAX reference (lax.conv_general_dilated, f32 highest precision)
# ---------------------------------------------------------------------------
def _conv_ref(x, w, b, padding):
    y = lax.conv_general_dilated(
        x, w, window_strides=(1, 1),
        padding=[(padding, padding), (padding, padding)],
        dimension_numbers=("NCHW", "OIHW", "NCHW"),
        precision=lax.Precision.HIGHEST)
    return y + b[None, :, None, None]


def _leaky_ref(x):
    return jnp.where(x >= 0.0, x, LEAKY_SLOPE * x)


def _group_norm_ref(x, gamma, beta, groups, eps=1e-5):
    n, c, h, w = x.shape
    xg = x.reshape(n, groups, c // groups, h, w)
    mean = xg.mean(axis=(2, 3, 4), keepdims=True)
    var = jnp.mean((xg - mean) ** 2, axis=(2, 3, 4), keepdims=True)
    xn = ((xg - mean) / jnp.sqrt(var + eps)).reshape(n, c, h, w)
    return xn * gamma[None, :, None, None] + beta[None, :, None, None]


def atthead_ref(raw, x0, x):
    x0c = _conv_ref(x0, raw["conv0_w"], raw["conv0_b"], 1)
    x0c = _leaky_ref(_group_norm_ref(x0c, raw["gn_w"], raw["gn_b"], 16))
    outs = []
    for h in range(5):
        xi = _leaky_ref(_conv_ref(x, raw[f"conv{h}a_w"], raw[f"conv{h}a_b"], 1))
        xi = _leaky_ref(_conv_ref(xi, raw[f"conv{h}b_w"], raw[f"conv{h}b_b"], 0))
        att = 1.0 - jax.nn.sigmoid(xi)
        oi = _leaky_ref(_conv_ref(x0c * att, raw[f"head{h}a_w"], raw[f"head{h}a_b"], 1))
        oi = _leaky_ref(_conv_ref(oi, raw[f"head{h}b_w"], raw[f"head{h}b_b"], 0))
        outs.append(xi + oi)
    return jnp.concatenate(outs, axis=1)


# ---------------------------------------------------------------------------
if __name__ == "__main__":
    N, C0, CX, H, W = 2, 32, 64, 16, 16

    key = jax.random.PRNGKey(0)
    kx0, kx, kp = jax.random.split(key, 3)
    x0 = jax.random.normal(kx0, (N, C0, H, W), jnp.float32)
    x = jax.random.normal(kx, (N, CX, H, W), jnp.float32)

    raw = init_raw_params(kp, C0, CX)
    packed = pack_params(raw)

    fwd = jax.jit(atthead_forward)
    out = jax.block_until_ready(fwd(packed, x0, x))
    assert out.shape == (N, 5, H, W), out.shape

    ref = jax.block_until_ready(jax.jit(atthead_ref)(raw, x0, x))
    # Pallas path uses bf16 MXU operands with f32 accumulation -> loose tolerance.
    np.testing.assert_allclose(np.asarray(out), np.asarray(ref), rtol=1e-1, atol=1e-1)

    print("KERNEL_OK")
</pallas_src>

<mosaic_0001>
module attributes {stable_mosaic.version = 11 : i64} {
  func.func @_att_fused_kernel(%arg0: i32, %arg1: memref<256x640xbf16, #tpu.memory_space<vmem>>, %arg2: memref<640x128xbf16, #tpu.memory_space<vmem>>, %arg3: memref<1x128xf32, #tpu.memory_space<vmem>>, %arg4: memref<128x128xbf16, #tpu.memory_space<vmem>>, %arg5: memref<1x128xf32, #tpu.memory_space<vmem>>, %arg6: memref<256x128xf32, #tpu.memory_space<vmem>>) attributes {dimension_semantics = [#tpu.dimension_semantics<parallel>], iteration_bounds = array<i64: 2>, scalar_prefetch = 0 : i64, scratch_operands = 0 : i64, tpu.core_type = #tpu.core_type<tc>, window_params = [{transform_indices = @transform_0, window_bounds = array<i64: 256, 640>}, {pipeline_mode = #tpu.pipeline_mode<synchronous>, transform_indices = @transform_1, window_bounds = array<i64: 640, 128>}, {pipeline_mode = #tpu.pipeline_mode<synchronous>, transform_indices = @transform_2, window_bounds = array<i64: 1, 128>}, {pipeline_mode = #tpu.pipeline_mode<synchronous>, transform_indices = @transform_3, window_bounds = array<i64: 128, 128>}, {pipeline_mode = #tpu.pipeline_mode<synchronous>, transform_indices = @transform_4, window_bounds = array<i64: 1, 128>}, {transform_indices = @transform_5, window_bounds = array<i64: 256, 128>}]} {
    %c0 = arith.constant 0 : index
    %c0_0 = arith.constant 0 : index
    %0 = vector.load %arg1[%c0, %c0_0] : memref<256x640xbf16, #tpu.memory_space<vmem>>, vector<256x640xbf16>
    %c0_1 = arith.constant 0 : index
    %c0_2 = arith.constant 0 : index
    %1 = vector.load %arg2[%c0_1, %c0_2] : memref<640x128xbf16, #tpu.memory_space<vmem>>, vector<640x128xbf16>
    %cst = arith.constant dense<0.000000e+00> : vector<256x128xf32>
    %2 = tpu.matmul %0, %1, %cst {dimension_numbers = #tpu.dot_dimension_numbers<[1], [0], [0], [1], [0, 0, 1, 1], [], []>} : vector<256x640xbf16>, vector<640x128xbf16>, vector<256x128xf32> -> vector<256x128xf32>
    %c0_3 = arith.constant 0 : index
    %c0_4 = arith.constant 0 : index
    %3 = vector.load %arg3[%c0_3, %c0_4] : memref<1x128xf32, #tpu.memory_space<vmem>>, vector<1x128xf32>
    %4 = vector.broadcast %3 : vector<1x128xf32> to vector<256x128xf32>
    %5 = arith.addf %2, %4 : vector<256x128xf32>
    %cst_5 = arith.constant 0.00999999977 : f32
    %6 = vector.broadcast %cst_5 : f32 to vector<256x128xf32>
    %7 = arith.mulf %6, %5 : vector<256x128xf32>
    %8 = arith.maximumf %5, %7 : vector<256x128xf32>
    %9 = arith.truncf %8 : vector<256x128xf32> to vector<256x128xbf16>
    %c0_6 = arith.constant 0 : index
    %c0_7 = arith.constant 0 : index
    %10 = vector.load %arg4[%c0_6, %c0_7] : memref<128x128xbf16, #tpu.memory_space<vmem>>, vector<128x128xbf16>
    %cst_8 = arith.constant dense<0.000000e+00> : vector<256x128xf32>
    %11 = tpu.matmul %9, %10, %cst_8 {dimension_numbers = #tpu.dot_dimension_numbers<[1], [0], [0], [1], [0, 0, 1, 1], [], []>} : vector<256x128xbf16>, vector<128x128xbf16>, vector<256x128xf32> -> vector<256x128xf32>
    %c0_9 = arith.constant 0 : index
    %c0_10 = arith.constant 0 : index
    %12 = vector.load %arg5[%c0_9, %c0_10] : memref<1x128xf32, #tpu.memory_space<vmem>>, vector<1x128xf32>
    %13 = vector.broadcast %12 : vector<1x128xf32> to vector<256x128xf32>
    %14 = arith.addf %11, %13 : vector<256x128xf32>
    %cst_11 = arith.constant 0.00999999977 : f32
    %15 = vector.broadcast %cst_11 : f32 to vector<256x128xf32>
    %16 = arith.mulf %15, %14 : vector<256x128xf32>
    %17 = arith.maximumf %14, %16 : vector<256x128xf32>
    %c0_12 = arith.constant 0 : index
    %c0_13 = arith.constant 0 : index
    %18 = vector.load %arg6[%c0_12, %c0_13] : memref<256x128xf32, #tpu.memory_space<vmem>>, vector<256x128xf32>
    tpu.vector_store %arg6[%c0_12, %c0_13], %17 {strides = array<i32>} : memref<256x128xf32, #tpu.memory_space<vmem>>, vector<256x128xf32>,
    return
  }
  func.func @transform_0(%arg0: i32) -> (i32, i32) {
    %c0_i32 = arith.constant 0 : i32
    %c0_i32_0 = arith.constant 0 : i32
    return %arg0, %c0_i32 : i32, i32
  }
  func.func @transform_1(%arg0: i32) -> (i32, i32) {
    %c0_i32 = arith.constant 0 : i32
    %c0_i32_0 = arith.constant 0 : i32
    %c0_i32_1 = arith.constant 0 : i32
    return %c0_i32, %c0_i32_0 : i32, i32
  }
  func.func @transform_2(%arg0: i32) -> (i32, i32) {
    %c0_i32 = arith.constant 0 : i32
    %c0_i32_0 = arith.constant 0 : i32
    %c0_i32_1 = arith.constant 0 : i32
    return %c0_i32, %c0_i32_0 : i32, i32
  }
  func.func @transform_3(%arg0: i32) -> (i32, i32) {
    %c0_i32 = arith.constant 0 : i32
    %c0_i32_0 = arith.constant 0 : i32
    %c0_i32_1 = arith.constant 0 : i32
    return %c0_i32, %c0_i32_0 : i32, i32
  }
  func.func @transform_4(%arg0: i32) -> (i32, i32) {
    %c0_i32 = arith.constant 0 : i32
    %c0_i32_0 = arith.constant 0 : i32
    %c0_i32_1 = arith.constant 0 : i32
    return %c0_i32, %c0_i32_0 : i32, i32
  }
  func.func @transform_5(%arg0: i32) -> (i32, i32) {
    %c0_i32 = arith.constant 0 : i32
    %c0_i32_0 = arith.constant 0 : i32
    return %arg0, %c0_i32 : i32, i32
  }
}

module attributes {stable_mosaic.version = 11 : i64} {
  func.func @_gemm_bias_kernel(%arg0: i32, %arg1: i32, %arg2: memref<256x384xbf16, #tpu.memory_space<vmem>>, %arg3: memref<384x128xbf16, #tpu.memory_space<vmem>>, %arg4: memref<1x128xf32, #tpu.memory_space<vmem>>, %arg5: memref<256x128xf32, #tpu.memory_space<vmem>>) attributes {dimension_semantics = [#tpu.dimension_semantics<parallel>, #tpu.dimension_semantics<parallel>], iteration_bounds = array<i64: 2, 1>, scalar_prefetch = 0 : i64, scratch_operands = 0 : i64, tpu.core_type = #tpu.core_type<tc>, window_params = [{transform_indices = @transform_0, window_bounds = array<i64: 256, 384>}, {transform_indices = @transform_1, window_bounds = array<i64: 384, 128>}, {transform_indices = @transform_2, window_bounds = array<i64: 1, 128>}, {transform_indices = @transform_3, window_bounds = array<i64: 256, 128>}]} {
    %c0 = arith.constant 0 : index
    %c0_0 = arith.constant 0 : index
    %0 = vector.load %arg2[%c0, %c0_0] : memref<256x384xbf16, #tpu.memory_space<vmem>>, vector<256x384xbf16>
    %c0_1 = arith.constant 0 : index
    %c0_2 = arith.constant 0 : index
    %1 = vector.load %arg3[%c0_1, %c0_2] : memref<384x128xbf16, #tpu.memory_space<vmem>>, vector<384x128xbf16>
    %cst = arith.constant dense<0.000000e+00> : vector<256x128xf32>
    %2 = tpu.matmul %0, %1, %cst {dimension_numbers = #tpu.dot_dimension_numbers<[1], [0], [0], [1], [0, 0, 1, 1], [], []>} : vector<256x384xbf16>, vector<384x128xbf16>, vector<256x128xf32> -> vector<256x128xf32>
    %c0_3 = arith.constant 0 : index
    %c0_4 = arith.constant 0 : index
    %3 = vector.load %arg4[%c0_3, %c0_4] : memref<1x128xf32, #tpu.memory_space<vmem>>, vector<1x128xf32>
    %4 = vector.broadcast %3 : vector<1x128xf32> to vector<256x128xf32>
    %5 = arith.addf %2, %4 : vector<256x128xf32>
    %c0_5 = arith.constant 0 : index
    %c0_6 = arith.constant 0 : index
    %6 = vector.load %arg5[%c0_5, %c0_6] : memref<256x128xf32, #tpu.memory_space<vmem>>, vector<256x128xf32>
    tpu.vector_store %arg5[%c0_5, %c0_6], %5 {strides = array<i32>} : memref<256x128xf32, #tpu.memory_space<vmem>>, vector<256x128xf32>,
    return
  }
  func.func @transform_0(%arg0: i32, %arg1: i32) -> (i32, i32) {
    %c0_i32 = arith.constant 0 : i32
    %c0_i32_0 = arith.constant 0 : i32
    return %arg0, %c0_i32 : i32, i32
  }
  func.func @transform_1(%arg0: i32, %arg1: i32) -> (i32, i32) {
    %c0_i32 = arith.constant 0 : i32
    %c0_i32_0 = arith.constant 0 : i32
    return %c0_i32, %arg1 : i32, i32
  }
  func.func @transform_2(%arg0: i32, %arg1: i32) -> (i32, i32) {
    %c0_i32 = arith.constant 0 : i32
    %c0_i32_0 = arith.constant 0 : i32
    return %c0_i32, %arg1 : i32, i32
  }
  func.func @transform_3(%arg0: i32, %arg1: i32) -> (i32, i32) {
    %c0_i32 = arith.constant 0 : i32
    return %arg0, %arg1 : i32, i32
  }
}

module attributes {stable_mosaic.version = 11 : i64} {
  func.func @_head_fused_kernel(%arg0: i32, %arg1: i32, %arg2: memref<256x128xf32, #tpu.memory_space<vmem>>, %arg3: memref<1x256x384xbf16, #tpu.memory_space<vmem>>, %arg4: memref<5x384x128xbf16, #tpu.memory_space<vmem>>, %arg5: memref<5x1x128xf32, #tpu.memory_space<vmem>>, %arg6: memref<5x128x128xbf16, #tpu.memory_space<vmem>>, %arg7: memref<5x1x128xf32, #tpu.memory_space<vmem>>, %arg8: memref<256x128xf32, #tpu.memory_space<vmem>>) attributes {dimension_semantics = [#tpu.dimension_semantics<parallel>, #tpu.dimension_semantics<arbitrary>], iteration_bounds = array<i64: 2, 5>, scalar_prefetch = 0 : i64, scratch_operands = 0 : i64, tpu.core_type = #tpu.core_type<tc>, window_params = [{transform_indices = @transform_0, window_bounds = array<i64: 256, 128>}, {transform_indices = @transform_1, window_bounds = array<i64: 1, 256, 384>}, {pipeline_mode = #tpu.pipeline_mode<synchronous>, transform_indices = @transform_2, window_bounds = array<i64: 5, 384, 128>}, {pipeline_mode = #tpu.pipeline_mode<synchronous>, transform_indices = @transform_3, window_bounds = array<i64: 5, 1, 128>}, {pipeline_mode = #tpu.pipeline_mode<synchronous>, transform_indices = @transform_4, window_bounds = array<i64: 5, 128, 128>}, {pipeline_mode = #tpu.pipeline_mode<synchronous>, transform_indices = @transform_5, window_bounds = array<i64: 5, 1, 128>}, {transform_indices = @transform_6, window_bounds = array<i64: 256, 128>}]} {
    %c0 = arith.constant 0 : index
    %c0_0 = arith.constant 0 : index
    %c0_1 = arith.constant 0 : index
    %0 = vector.load %arg3[%c0, %c0_0, %c0_1] : memref<1x256x384xbf16, #tpu.memory_space<vmem>>, vector<1x256x384xbf16>
    %1 = vector.shape_cast %0 : vector<1x256x384xbf16> to vector<256x384xbf16>
    %2 = arith.index_cast %arg1 : i32 to index
    %c0_2 = arith.constant 0 : index
    %c0_3 = arith.constant 0 : index
    %3 = vector.load %arg4[%2, %c0_2, %c0_3] : memref<5x384x128xbf16, #tpu.memory_space<vmem>>, vector<1x384x128xbf16>
    %4 = vector.shape_cast %3 : vector<1x384x128xbf16> to vector<384x128xbf16>
    %cst = arith.constant dense<0.000000e+00> : vector<256x128xf32>
    %5 = tpu.matmul %1, %4, %cst {dimension_numbers = #tpu.dot_dimension_numbers<[1], [0], [0], [1], [0, 0, 1, 1], [], []>} : vector<256x384xbf16>, vector<384x128xbf16>, vector<256x128xf32> -> vector<256x128xf32>
    %6 = arith.index_cast %arg1 : i32 to index
    %c0_4 = arith.constant 0 : index
    %c0_5 = arith.constant 0 : index
    %7 = vector.load %arg5[%6, %c0_4, %c0_5] : memref<5x1x128xf32, #tpu.memory_space<vmem>>, vector<1x1x128xf32>
    %8 = vector.shape_cast %7 : vector<1x1x128xf32> to vector<1x128xf32>
    %9 = vector.broadcast %8 : vector<1x128xf32> to vector<256x128xf32>
    %10 = arith.addf %5, %9 : vector<256x128xf32>
    %cst_6 = arith.constant 0.00999999977 : f32
    %11 = vector.broadcast %cst_6 : f32 to vector<256x128xf32>
    %12 = arith.mulf %11, %10 : vector<256x128xf32>
    %13 = arith.maximumf %10, %12 : vector<256x128xf32>
    %14 = arith.truncf %13 : vector<256x128xf32> to vector<256x128xbf16>
    %15 = arith.index_cast %arg1 : i32 to index
    %c0_7 = arith.constant 0 : index
    %c0_8 = arith.constant 0 : index
    %16 = vector.load %arg6[%15, %c0_7, %c0_8] : memref<5x128x128xbf16, #tpu.memory_space<vmem>>, vector<1x128x128xbf16>
    %17 = vector.shape_cast %16 : vector<1x128x128xbf16> to vector<128x128xbf16>
    %cst_9 = arith.constant dense<0.000000e+00> : vector<256x128xf32>
    %18 = tpu.matmul %14, %17, %cst_9 {dimension_numbers = #tpu.dot_dimension_numbers<[1], [0], [0], [1], [0, 0, 1, 1], [], []>} : vector<256x128xbf16>, vector<128x128xbf16>, vector<256x128xf32> -> vector<256x128xf32>
    %19 = arith.index_cast %arg1 : i32 to index
    %c0_10 = arith.constant 0 : index
    %c0_11 = arith.constant 0 : index
    %20 = vector.load %arg7[%19, %c0_10, %c0_11] : memref<5x1x128xf32, #tpu.memory_space<vmem>>, vector<1x1x128xf32>
    %21 = vector.shape_cast %20 : vector<1x1x128xf32> to vector<1x128xf32>
    %22 = vector.broadcast %21 : vector<1x128xf32> to vector<256x128xf32>
    %23 = arith.addf %18, %22 : vector<256x128xf32>
    %cst_12 = arith.constant 0.00999999977 : f32
    %24 = vector.broadcast %cst_12 : f32 to vector<256x128xf32>
    %25 = arith.mulf %24, %23 : vector<256x128xf32>
    %26 = arith.maximumf %23, %25 : vector<256x128xf32>
    %c0_i32 = arith.constant 0 : i32
    %27 = arith.cmpi eq, %arg1, %c0_i32 : i32
    %28 = arith.extui %27 : i1 to i32
    %c0_i32_13 = arith.constant 0 : i32
    %29 = arith.cmpi ne, %28, %c0_i32_13 : i32
    scf.if %29 {
      %c0_16 = arith.constant 0 : index
      %c0_17 = arith.constant 0 : index
      %33 = vector.load %arg2[%c0_16, %c0_17] : memref<256x128xf32, #tpu.memory_space<vmem>>, vector<256x128xf32>
      %34 = arith.addf %33, %26 : vector<256x128xf32>
      %c0_18 = arith.constant 0 : index
      %c0_19 = arith.constant 0 : index
      %35 = vector.load %arg8[%c0_18, %c0_19] : memref<256x128xf32, #tpu.memory_space<vmem>>, vector<256x128xf32>
      tpu.vector_store %arg8[%c0_18, %c0_19], %34 {strides = array<i32>} : memref<256x128xf32, #tpu.memory_space<vmem>>, vector<256x128xf32>,
    } else {
    }
    %c0_i32_14 = arith.constant 0 : i32
    %30 = arith.cmpi ne, %arg1, %c0_i32_14 : i32
    %31 = arith.extui %30 : i1 to i32
    %c0_i32_15 = arith.constant 0 : i32
    %32 = arith.cmpi ne, %31, %c0_i32_15 : i32
    scf.if %32 {
      %c0_16 = arith.constant 0 : index
      %c0_17 = arith.constant 0 : index
      %33 = vector.load %arg8[%c0_16, %c0_17] : memref<256x128xf32, #tpu.memory_space<vmem>>, vector<256x128xf32>
      %34 = arith.addf %33, %26 : vector<256x128xf32>
      %c0_18 = arith.constant 0 : index
      %c0_19 = arith.constant 0 : index
      %35 = vector.load %arg8[%c0_18, %c0_19] : memref<256x128xf32, #tpu.memory_space<vmem>>, vector<256x128xf32>
      tpu.vector_store %arg8[%c0_18, %c0_19], %34 {strides = array<i32>} : memref<256x128xf32, #tpu.memory_space<vmem>>, vector<256x128xf32>,
    } else {
    }
    return
  }
  func.func @transform_0(%arg0: i32, %arg1: i32) -> (i32, i32) {
    %c0_i32 = arith.constant 0 : i32
    %c0_i32_0 = arith.constant 0 : i32
    return %arg0, %c0_i32 : i32, i32
  }
  func.func @transform_1(%arg0: i32, %arg1: i32) -> (i32, i32, i32) {
    %c0_i32 = arith.constant 0 : i32
    %c0_i32_0 = arith.constant 0 : i32
    return %arg1, %arg0, %c0_i32 : i32, i32, i32
  }
  func.func @transform_2(%arg0: i32, %arg1: i32) -> (i32, i32, i32) {
    %c0_i32 = arith.constant 0 : i32
    %c0_i32_0 = arith.constant 0 : i32
    %c0_i32_1 = arith.constant 0 : i32
    %c0_i32_2 = arith.constant 0 : i32
    return %c0_i32, %c0_i32_0, %c0_i32_1 : i32, i32, i32
  }
  func.func @transform_3(%arg0: i32, %arg1: i32) -> (i32, i32, i32) {
    %c0_i32 = arith.constant 0 : i32
    %c0_i32_0 = arith.constant 0 : i32
    %c0_i32_1 = arith.constant 0 : i32
    %c0_i32_2 = arith.constant 0 : i32
    return %c0_i32, %c0_i32_0, %c0_i32_1 : i32, i32, i32
  }
  func.func @transform_4(%arg0: i32, %arg1: i32) -> (i32, i32, i32) {
    %c0_i32 = arith.constant 0 : i32
    %c0_i32_0 = arith.constant 0 : i32
    %c0_i32_1 = arith.constant 0 : i32
    %c0_i32_2 = arith.constant 0 : i32
    return %c0_i32, %c0_i32_0, %c0_i32_1 : i32, i32, i32
  }
  func.func @transform_5(%arg0: i32, %arg1: i32) -> (i32, i32, i32) {
    %c0_i32 = arith.constant 0 : i32
    %c0_i32_0 = arith.constant 0 : i32
    %c0_i32_1 = arith.constant 0 : i32
    %c0_i32_2 = arith.constant 0 : i32
    return %c0_i32, %c0_i32_0, %c0_i32_1 : i32, i32, i32
  }
  func.func @transform_6(%arg0: i32, %arg1: i32) -> (i32, i32) {
    %c0_i32 = arith.constant 0 : i32
    %c0_i32_0 = arith.constant 0 : i32
    return %arg0, %c0_i32 : i32, i32
  }
}

</mosaic_0001>

<bundles_post_ra>
// kernel: atthead_forward.4
= control target key start
LH: loop header
LB: loop body
LE: loop exit
PB: predicated region body
PF: predicated region fallthrough
CT: control target
= control target key end

     0   :  { %s2734_s18 = smov 0   ;;  %s3364_s0 = inlined_call_operand.vmem [shape: bf16[512,640], index: 0, kind: input, shape index: {}]   ;;  %s3365_s1 = inlined_call_operand.vmem [shape: bf16[640,128], index: 1, kind: input, shape index: {}]   ;;  %s3366_s2 = inlined_call_operand.vmem [shape: f32[1,128], index: 2, kind: input, shape index: {}]   ;;  %s3367_s3 = inlined_call_operand.vmem [shape: bf16[128,128], index: 3, kind: input, shape index: {}]   ;;  %s3368_s4 = inlined_call_operand.vmem [shape: f32[1,128], index: 4, kind: input, shape index: {}]   ;;  %s3369_s5 = inlined_call_operand.vmem [shape: f32[512,128], index: 5, kind: output, shape index: {}]  }
   0x1 LB: > { %s2018_s19 = sadd.s32 4294967295, %s2702_s18   ;;  %p2022_p0 = scmp.ge.s32.totalorder %s2702_s18, 1  ;;  %s2702_s18 = sphi %s2734_s18, %s15_s18  }
   0x2   : > { %p189_p1 = scmp.lt.s32.totalorder %s2702_s18, 3 }
   0x4   : > { %p190_p2 = pnand %p2022_p0, %p189_p1 }
   0x6   : > { %193 = sbr.rel (%p190_p2) target bundleno = 642 (0x282), region = 40 }
   0xb   : > { %v2536_v0 = vld [vmem:[%s3365_s1 + $0x78] sm:$0xff]   ;;  %v2540_v4 = vld [vmem:[%s3365_s1 + $0x70] sm:$0xff]   ;;  %v2544_v8 = vld [vmem:[%s3365_s1 + $0x68] sm:$0xff]   ;;  %s2023_s25 = sshll.u32 %s2018_s19, 5 }
   0xc   : > { %v2537_v1 = vld [vmem:[%s3365_s1 + $0x38] sm:$0xff]   ;;  %2159 = vmatprep.subr.bf16.mxu0 %v2536_v0  ;;  %v2541_v5 = vld [vmem:[%s3365_s1 + $0x30] sm:$0xff]   ;;  %v2545_v9 = vld [vmem:[%s3365_s1 + $0x28] sm:$0xff]   ;;  %p219_p3 = scmp.lt.s32.totalorder %s2023_s25, 63 }
   0xd   : > { %v2538_v2 = vld [vmem:[%s3365_s1 + $0xf8] sm:$0xff]   ;;  %2160 = vmatpush3.bf16.msra.mxu0 %v2537_v1  ;;  %v2542_v6 = vld [vmem:[%s3365_s1 + $0xf0] sm:$0xff]   ;;  %v2546_v10 = vld [vmem:[%s3365_s1 + $0xe8] sm:$0xff]  }
   0xe   : > { %v2539_v3 = vld [vmem:[%s3365_s1 + $0xb8] sm:$0xff]   ;;  %2271 = vmatprep.subr.bf16.mxu1 %v2538_v2  ;;  %2161 = vmatprep.subr.bf16.mxu0 %v2540_v4  ;;  %v2543_v7 = vld [vmem:[%s3365_s1 + $0xb0] sm:$0xff]   ;;  %v2547_v11 = vld [vmem:[%s3365_s1 + $0xa8] sm:$0xff]   ;;  %s3431_s25 = smov (!%p219_p3, %s2023_s25), 63 }
   0xf   : > { %2272 = vmatpush3.bf16.msra.mxu1 %v2539_v3  ;;  %v2548_v12 = vld [vmem:[%s3365_s1 + $0x60] sm:$0xff]   ;;  %v2552_v16 = vld [vmem:[%s3365_s1 + $0x58] sm:$0xff]   ;;  %v2556_v20 = vld [vmem:[%s3365_s1 + $0x50] sm:$0xff]   ;;  %s2527_s24 = smul.u32 20, %s3431_s25  ;;  %s2026_s8 = sshll.u32 %s3431_s25, 3 }
  0x10   : > { %2273 = vmatprep.subr.bf16.mxu1 %v2542_v6  ;;  %v2549_v13 = vld [vmem:[%s3365_s1 + $0x20] sm:$0xff]   ;;  %v2553_v17 = vld [vmem:[%s3365_s1 + $0x18] sm:$0xff]   ;;  %v2557_v21 = vld [vmem:[%s3365_s1 + $0x10] sm:$0xff]   ;;  %s3297_s11 = scalar_lea.vmem %s3369_s5, %s2026_s8 }
  0x11   : > { %2162 = vmatpush3.bf16.msra.mxu0 %v2541_v5  ;;  %v2550_v14 = vld [vmem:[%s3365_s1 + $0xe0] sm:$0xff]   ;;  %v2554_v18 = vld [vmem:[%s3365_s1 + $0xd8] sm:$0xff]   ;;  %v2558_v22 = vld [vmem:[%s3365_s1 + $0xd0] sm:$0xff]   ;;  %s2837_s10 = scalar_lea.vmem %s3364_s0, %s2527_s24 }
  0x12   : > { %2163 = vmatprep.subr.bf16.mxu0 %v2544_v8  ;;  %v2551_v15 = vld [vmem:[%s3365_s1 + $0xa0] sm:$0xff]   ;;  %v2555_v19 = vld [vmem:[%s3365_s1 + $0x98] sm:$0xff]   ;;  %v2559_v23 = vld [vmem:[%s3365_s1 + $0x90] sm:$0xff]  }
  0x13   : > { %2274 = vmatpush3.bf16.msra.mxu1 %v2543_v7  ;;  %v2560_v24 = vld [vmem:[%s3365_s1 + $0x48] sm:$0xff]   ;;  %v2564_v28 = vld [vmem:[%s3365_s1 + $0x40] sm:$0xff]   ;;  %v2571_v34 = vld [vmem:[%s3365_s1 + $0x138] sm:$0xff]  }
  0x14   : > { %2275 = vmatprep.subr.bf16.mxu1 %v2546_v10  ;;  %v2561_v25 = vld [vmem:[%s3365_s1 + $0x8] sm:$0xff]   ;;  %v2565_v29 = vld [vmem:[%s3365_s1] sm:$0xff]   ;;  %v2584_v41 = vld [vmem:[%s3365_s1 + $0x130] sm:$0xff]  }
  0x15   : > { %2164 = vmatpush3.bf16.msra.mxu0 %v2545_v9  ;;  %v2562_v26 = vld [vmem:[%s3365_s1 + $0xc8] sm:$0xff]   ;;  %v2566_v30 = vld [vmem:[%s3365_s1 + $0xc0] sm:$0xff]   ;;  %v2585_v43 = vld [vmem:[%s2837_s10 + $0x5c] ss:$20 sps:$4 sm:$0xff]  }
  0x16   : > { %2165 = vmatprep.subr.bf16.mxu0 %v2548_v12  ;;  %v2563_v27 = vld [vmem:[%s3365_s1 + $0x88] sm:$0xff]   ;;  %v2567_v31 = vld [vmem:[%s2837_s10] ss:$20 sps:$4 sm:$0xff]   ;;  %v2569_v32 = vld [vmem:[%s2837_s10 + $0x4] ss:$20 sps:$4 sm:$0xff]  }
  0x17   : > { %2276 = vmatpush3.bf16.msra.mxu1 %v2547_v11  ;;  %v2570_v33 = vld [vmem:[%s3365_s1 + $0x80] sm:$0xff]   ;;  %1103 = vmatprep.mubr.bf16.mxu0 %v2569_v32  ;;  %v2572_v35 = vld [vmem:[%s2837_s10 + $0x8] ss:$20 sps:$4 sm:$0xff]   ;;  %v2587_v47 = vld [vmem:[%s2837_s10 + $0x58] ss:$20 sps:$4 sm:$0xff]  }
  0x18   : > { %2277 = vmatprep.subr.bf16.mxu1 %v2550_v14  ;;  %v2574_v36 = vld [vmem:[%s2837_s10 + $0xc] ss:$20 sps:$4 sm:$0xff]   ;;  %v2578_v38 = vld [vmem:[%s2837_s10 + $0x34] ss:$20 sps:$4 sm:$0xff]   ;;  %v2580_v42 = vld [vmem:[%s2837_s10 + $0x30] ss:$20 sps:$4 sm:$0xff]  }
  0x19   : > { %2166 = vmatpush3.bf16.msra.mxu0 %v2549_v13  ;;  %v2575_v37 = vld [vmem:[%s2837_s10 + $0x2c] ss:$20 sps:$4 sm:$0xff]   ;;  %1264 = vmatprep.mubr.bf16.mxu1 %v2574_v36  ;;  %v2577_v39 = vld [vmem:[%s2837_s10 + $0x28] ss:$20 sps:$4 sm:$0xff]   ;;  %v2583_v45 = vld [vmem:[%s2837_s10 + $0x50] ss:$20 sps:$4 sm:$0xff]  }
  0x1a   : > { %2167 = vmatprep.subr.bf16.mxu0 %v2552_v16  ;;  %v2581_v40 = vld [vmem:[%s2837_s10 + $0x54] ss:$20 sps:$4 sm:$0xff]   ;;  %v2588_v46 = vld [vmem:[%s2837_s10 + $0x7c] ss:$20 sps:$4 sm:$0xff]   ;;  %v2591_v48 = vld [vmem:[%s2837_s10 + $0x84] ss:$20 sps:$4 sm:$0xff]  }
  0x1b   : > { %2278 = vmatpush3.bf16.msra.mxu1 %v2551_v15  ;;  %v2597_v44 = vld [vmem:[%s3365_s1 + $0x128] sm:$0xff]   ;;  %v2610_v49 = vld [vmem:[%s3365_s1 + $0x120] sm:$0xff]   ;;  %v2623_v54 = vld [vmem:[%s3365_s1 + $0x118] sm:$0xff]  }
  0x1c   : > { %2279 = vmatprep.subr.bf16.mxu1 %v2554_v18  ;;  %v2590_v50 = vld [vmem:[%s2837_s10 + $0x78] ss:$20 sps:$4 sm:$0xff]   ;;  %v2593_v52 = vld [vmem:[%s2837_s10 + $0x80] ss:$20 sps:$4 sm:$0xff]   ;;  %v2600_v58 = vld [vmem:[%s2837_s10 + $0xa8] ss:$20 sps:$4 sm:$0xff]  }
  0x1d   : > { %2168 = vmatpush3.bf16.msra.mxu0 %v2553_v17  ;;  %v2594_v51 = vld [vmem:[%s2837_s10 + $0xa4] ss:$20 sps:$4 sm:$0xff]   ;;  %v2598_v53 = vld [vmem:[%s2837_s10 + $0xac] ss:$20 sps:$4 sm:$0xff]   ;;  %v2636_v57 = vld [vmem:[%s3365_s1 + $0x110] sm:$0xff]  }
  0x1e   : > { %2169 = vmatprep.subr.bf16.mxu0 %v2556_v20  ;;  %v2596_v55 = vld [vmem:[%s2837_s10 + $0xa0] ss:$20 sps:$4 sm:$0xff]   ;;  %v2603_v60 = vld [vmem:[%s2837_s10 + $0xc8] ss:$20 sps:$4 sm:$0xff]   ;;  %v2606_v63 = vld [vmem:[%s2837_s10 + $0xd0] ss:$20 sps:$4 sm:$0xff]  }
  0x1f   : > { %2280 = vmatpush3.bf16.msra.mxu1 %v2555_v19  ;;  %v2601_v56 = vld [vmem:[%s2837_s10 + $0xcc] ss:$20 sps:$4 sm:$0xff]   ;;  %v2604_v59 = vld [vmem:[%s2837_s10 + $0xd4] ss:$20 sps:$4 sm:$0xff]   ;;  %v2611_v0 = vld [vmem:[%s2837_s10 + $0xfc] ss:$20 sps:$4 sm:$0xff]  }
  0x20   : > { %2281 = vmatprep.subr.bf16.mxu1 %v2558_v22  ;;  %v2607_v61 = vld [vmem:[%s2837_s10 + $0xf4] ss:$20 sps:$4 sm:$0xff]   ;;  %v2662_v1 = vld [vmem:[%s3365_s1 + $0x100] sm:$0xff]   ;;  %v2614_v3 = vld [vmem:[%s2837_s10 + $0x11c] ss:$20 sps:$4 sm:$0xff]  }
  0x21   : > { %2170 = vmatpush3.bf16.msra.mxu0 %v2557_v21  ;;  %v2649_v62 = vld [vmem:[%s3365_s1 + $0x108] sm:$0xff]   ;;  %v2609_v2 = vld [vmem:[%s2837_s10 + $0xf0] ss:$20 sps:$4 sm:$0xff]   ;;  %v2619_v8 = vld [vmem:[%s2837_s10 + $0x120] ss:$20 sps:$4 sm:$0xff]  }
  0x22   : > { %2171 = vmatprep.subr.bf16.mxu0 %v2560_v24  ;;  %v2613_v4 = vld [vmem:[%s2837_s10 + $0xf8] ss:$20 sps:$4 sm:$0xff]   ;;  %v2622_v10 = vld [vmem:[%s2837_s10 + $0x140] ss:$20 sps:$4 sm:$0xff]   ;;  %v2626_v12 = vld [vmem:[%s2837_s10 + $0x148] ss:$20 sps:$4 sm:$0xff]  }
  0x23   : > { %2282 = vmatpush3.bf16.msra.mxu1 %v2559_v23  ;;  %v2617_v5 = vld [vmem:[%s2837_s10 + $0x124] ss:$20 sps:$4 sm:$0xff]   ;;  %v2624_v9 = vld [vmem:[%s2837_s10 + $0x14c] ss:$20 sps:$4 sm:$0xff]   ;;  %v2630_v13 = vld [vmem:[%s2837_s10 + $0x174] ss:$20 sps:$4 sm:$0xff]  }
  0x24   : > { %2283 = vmatprep.subr.bf16.mxu1 %v2562_v26  ;;  %v2616_v6 = vld [vmem:[%s2837_s10 + $0x118] ss:$20 sps:$4 sm:$0xff]   ;;  %v2629_v14 = vld [vmem:[%s2837_s10 + $0x168] ss:$20 sps:$4 sm:$0xff]   ;;  %v2632_v16 = vld [vmem:[%s2837_s10 + $0x170] ss:$20 sps:$4 sm:$0xff]  }
  0x25   : > { %2172 = vmatpush3.bf16.msra.mxu0 %v2561_v25  ;;  %v2620_v7 = vld [vmem:[%s2837_s10 + $0x144] ss:$20 sps:$4 sm:$0xff]   ;;  %v2627_v11 = vld [vmem:[%s2837_s10 + $0x16c] ss:$20 sps:$4 sm:$0xff]   ;;  %v2633_v15 = vld [vmem:[%s2837_s10 + $0x194] ss:$20 sps:$4 sm:$0xff]  }
  0x26   : > { %2173 = vmatprep.subr.bf16.mxu0 %v2564_v28  ;;  %v2637_v17 = vld [vmem:[%s2837_s10 + $0x19c] ss:$20 sps:$4 sm:$0xff]   ;;  %v2639_v20 = vld [vmem:[%s2837_s10 + $0x198] ss:$20 sps:$4 sm:$0xff]   ;;  %v2645_v25 = vld [vmem:[%s2837_s10 + $0x1c0] ss:$20 sps:$4 sm:$0xff]  }
  0x27   : > { %2284 = vmatpush3.bf16.msra.mxu1 %v2563_v27  ;;  %v2635_v18 = vld [vmem:[%s2837_s10 + $0x190] ss:$20 sps:$4 sm:$0xff]   ;;  %v2688_v22 = vld [vmem:[%s3367_s3 + $0x38] sm:$0xff]   ;;  %v2650_v26 = vld [vmem:[%s2837_s10 + $0x1ec] ss:$20 sps:$4 sm:$0xff]  }
  0x28   : > { %2285 = vmatprep.subr.bf16.mxu1 %v2566_v30  ;;  %v2640_v19 = vld [vmem:[%s2837_s10 + $0x1bc] ss:$20 sps:$4 sm:$0xff]   ;;  %v2643_v21 = vld [vmem:[%s2837_s10 + $0x1c4] ss:$20 sps:$4 sm:$0xff]   ;;  %v2648_v27 = vld [vmem:[%s2837_s10 + $0x1e0] ss:$20 sps:$4 sm:$0xff]  }
  0x29   : > { %2174 = vmatpush3.bf16.msra.mxu0 %v2565_v29  ;;  %v2642_v23 = vld [vmem:[%s2837_s10 + $0x1b8] ss:$20 sps:$4 sm:$0xff]   ;;  %v2652_v29 = vld [vmem:[%s2837_s10 + $0x1e8] ss:$20 sps:$4 sm:$0xff]   ;;  %v2661_v36 = vld [vmem:[%s2837_s10 + $0x230] ss:$20 sps:$4 sm:$0xff]  }
  0x2a   : > { %2431 = vmatprep.subr.bf16.mxu0 %v2571_v34  ;;  %v2646_v24 = vld [vmem:[%s2837_s10 + $0x1e4] ss:$20 sps:$4 sm:$0xff]   ;;  %v2653_v28 = vld [vmem:[%s2837_s10 + $0x20c] ss:$20 sps:$4 sm:$0xff]   ;;  %v2656_v30 = vld [vmem:[%s2837_s10 + $0x214] ss:$20 sps:$4 sm:$0xff]  }
  0x2b   : > { %2286 = vmatpush3.bf16.msra.mxu1 %v2570_v33  ;;  %v2655_v32 = vld [vmem:[%s2837_s10 + $0x208] ss:$20 sps:$4 sm:$0xff]  }
  0x2c   : > { %1104 = vmatmul.mubr.bf16.vlgmr.msra.gmra.mxu0 %v2567_v31  ;;  %2479 = vmatprep.subr.bf16.mxu1 %v2688_v22  ;;  %v2689_v31 = vld [vmem:[%s3367_s3 + $0x30] sm:$0xff]  }
  0x2d   : > { %2432 = vmatpush3.bf16.msra.mxu0 %v2571_v34  ;;  %1111 = vmatprep.mubr.bf16.mxu0 %v2575_v37  ;;  %v2659_v33 = vld [vmem:[%s2837_s10 + $0x234] ss:$20 sps:$4 sm:$0xff]   ;;  %v2658_v34 = vld [vmem:[%s2837_s10 + $0x210] ss:$20 sps:$4 sm:$0xff]  }
  0x2e   : > { %1265 = vmatmul.mubr.bf16.vlgmr.msra.gmra.mxu1 %v2572_v35  ;;  %2433 = vmatprep.subr.bf16.mxu0 %v2584_v41  ;;  %v2663_v35 = vld [vmem:[%s2837_s10 + $0x23c] ss:$20 sps:$4 sm:$0xff]  }
  0x2f   : > { %1272 = vmatprep.mubr.bf16.mxu1 %v2578_v38  ;;  %2480 = vmatpush3.bf16.msra.mxu1 %v2688_v22  ;;  %v2666_v37 = vld [vmem:[%s2837_s10 + $0x25c] ss:$20 sps:$4 sm:$0xff]   ;;  %v2665_v38 = vld [vmem:[%s2837_s10 + $0x238] ss:$20 sps:$4 sm:$0xff]  }
  0x30   : > { %2481 = vmatprep.subr.bf16.mxu1 %v2689_v31 }
  0x31   : > { %2434 = vmatpush3.bf16.msra.mxu0 %v2584_v41  ;;  %v2668_v41 = vld [vmem:[%s2837_s10 + $0x258] ss:$20 sps:$4 sm:$0xff]  }
  0x32   : > { %2435 = vmatprep.subr.bf16.mxu0 %v2597_v44 }
  0x33   : > { %2482 = vmatpush3.bf16.msra.mxu1 %v2689_v31 }
  0x34   : > { %1112 = vmatmul.mubr.bf16.gmra.mxu0 %v2577_v39  ;;  %v2669_v39 = vld [vmem:[%s2837_s10 + $0x264] ss:$20 sps:$4 sm:$0xff]  }
  0x35   : > { %1119 = vmatprep.mubr.bf16.mxu0 %v2581_v40  ;;  %2436 = vmatpush3.bf16.msra.mxu0 %v2597_v44  ;;  %v2690_v40 = vld [vmem:[%s3367_s3 + $0x28] sm:$0xff]  }
  0x36   : > { %1273 = vmatmul.mubr.bf16.gmra.mxu1 %v2580_v42  ;;  %2437 = vmatprep.subr.bf16.mxu0 %v2610_v49  ;;  %v2672_v42 = vld [vmem:[%s2837_s10 + $0x10] ss:$20 sps:$4 sm:$0xff]   ;;  %v2673_v44 = vld [vmem:[%s2837_s10 + $0x38] ss:$20 sps:$4 sm:$0xff]  }
  0x37   : > { %1280 = vmatprep.mubr.bf16.mxu1 %v2585_v43  ;;  %2483 = vmatprep.subr.bf16.mxu1 %v2690_v40  ;;  %v2671_v43 = vld [vmem:[%s2837_s10 + $0x260] ss:$20 sps:$4 sm:$0xff]  }
  0x38   : > { %2484 = vmatpush3.bf16.msra.mxu1 %v2690_v40 }
  0x39   : > { %2438 = vmatpush3.bf16.msra.mxu0 %v2610_v49  ;;  %v2677_v49 = vld [vmem:[%s2837_s10 + $0xd8] ss:$20 sps:$4 sm:$0xff]  }
  0x3a   : > { %2439 = vmatprep.subr.bf16.mxu0 %v2623_v54 }
  0x3c   : > { %1120 = vmatmul.mubr.bf16.gmra.mxu0 %v2583_v45  ;;  %v2674_v45 = vld [vmem:[%s2837_s10 + $0x60] ss:$20 sps:$4 sm:$0xff]  }
  0x3d   : > { %1127 = vmatprep.mubr.bf16.mxu0 %v2588_v46  ;;  %2440 = vmatpush3.bf16.msra.mxu0 %v2623_v54  ;;  %v2691_v46 = vld [vmem:[%s3367_s3 + $0x20] sm:$0xff]   ;;  %v2681_v54 = vld [vmem:[%s2837_s10 + $0x178] ss:$20 sps:$4 sm:$0xff]  }
  0x3e   : > { %1281 = vmatmul.mubr.bf16.gmra.mxu1 %v2587_v47  ;;  %2441 = vmatprep.subr.bf16.mxu0 %v2636_v57  ;;  %v2675_v47 = vld [vmem:[%s2837_s10 + $0x88] ss:$20 sps:$4 sm:$0xff]  }
  0x3f   : > { %1288 = vmatprep.mubr.bf16.mxu1 %v2591_v48  ;;  %2485 = vmatprep.subr.bf16.mxu1 %v2691_v46  ;;  %v2676_v48 = vld [vmem:[%s2837_s10 + $0xb0] ss:$20 sps:$4 sm:$0xff]  }
  0x40   : > { %2486 = vmatpush3.bf16.msra.mxu1 %v2691_v46 }
  0x41   : > { %2442 = vmatpush3.bf16.msra.mxu0 %v2636_v57  ;;  %v2683_v57 = vld [vmem:[%s2837_s10 + $0x1c8] ss:$20 sps:$4 sm:$0xff]  }
  0x42   : > { %2443 = vmatprep.subr.bf16.mxu0 %v2649_v62 }
  0x44   : > { %1128 = vmatmul.mubr.bf16.gmra.mxu0 %v2590_v50  ;;  %v2678_v50 = vld [vmem:[%s2837_s10 + $0x100] ss:$20 sps:$4 sm:$0xff]  }
  0x45   : > { %1135 = vmatprep.mubr.bf16.mxu0 %v2594_v51  ;;  %2444 = vmatpush3.bf16.msra.mxu0 %v2649_v62  ;;  %v2692_v51 = vld [vmem:[%s3367_s3 + $0x18] sm:$0xff]  }
  0x46   : > { %1289 = vmatmul.mubr.bf16.gmra.mxu1 %v2593_v52  ;;  %2445 = vmatprep.subr.bf16.mxu0 %v2662_v1  ;;  %v2679_v52 = vld [vmem:[%s2837_s10 + $0x128] ss:$20 sps:$4 sm:$0xff]  }
  0x47   : > { %1296 = vmatprep.mubr.bf16.mxu1 %v2598_v53  ;;  %2487 = vmatprep.subr.bf16.mxu1 %v2692_v51  ;;  %v2680_v53 = vld [vmem:[%s2837_s10 + $0x150] ss:$20 sps:$4 sm:$0xff]   ;;  %v2687_v62 = vld [vmem:[%s2837_s10 + $0x268] ss:$20 sps:$4 sm:$0xff]  }
  0x48   : > { %2488 = vmatpush3.bf16.msra.mxu1 %v2692_v51 }
  0x49   : > { %2446 = vmatpush3.bf16.msra.mxu0 %v2662_v1 }
  0x4c   : > { %1136 = vmatmul.mubr.bf16.gmra.mxu0 %v2596_v55  ;;  %v2682_v55 = vld [vmem:[%s2837_s10 + $0x1a0] ss:$20 sps:$4 sm:$0xff]  }
  0x4d   : > { %1143 = vmatprep.mubr.bf16.mxu0 %v2601_v56  ;;  %v2693_v56 = vld [vmem:[%s3367_s3 + $0x10] sm:$0xff]  }
  0x4e   : > { %1297 = vmatmul.mubr.bf16.gmra.mxu1 %v2600_v58  ;;  %2489 = vmatprep.subr.bf16.mxu1 %v2693_v56  ;;  %v2684_v58 = vld [vmem:[%s2837_s10 + $0x1f0] ss:$20 sps:$4 sm:$0xff]  }
  0x4f   : > { %1304 = vmatprep.mubr.bf16.mxu1 %v2604_v59  ;;  %2490 = vmatpush3.bf16.msra.mxu1 %v2693_v56  ;;  %v2685_v59 = vld [vmem:[%s2837_s10 + $0x218] ss:$20 sps:$4 sm:$0xff]  }
  0x54   : > { %1144 = vmatmul.mubr.bf16.gmra.mxu0 %v2603_v60  ;;  %v2686_v60 = vld [vmem:[%s2837_s10 + $0x240] ss:$20 sps:$4 sm:$0xff]  }
  0x55   : > { %1151 = vmatprep.mubr.bf16.mxu0 %v2607_v61  ;;  %v2694_v61 = vld [vmem:[%s3367_s3 + $0x8] sm:$0xff]  }
  0x56   : > { %1305 = vmatmul.mubr.bf16.gmra.mxu1 %v2606_v63  ;;  %2491 = vmatprep.subr.bf16.mxu1 %v2694_v61 }
  0x57   : > { %1312 = vmatprep.mubr.bf16.mxu1 %v2611_v0  ;;  %2492 = vmatpush3.bf16.msra.mxu1 %v2694_v61  ;;  %v2976_v0 = vld [vmem:[%s3366_s2] ss:$0 sm:$0xff] }
  0x5c   : > { %1152 = vmatmul.mubr.bf16.gmra.mxu0 %v2609_v2 }
  0x5d   : > { %1159 = vmatprep.mubr.bf16.mxu0 %v2614_v3 }
  0x5e   : > { %1313 = vmatmul.mubr.bf16.gmra.mxu1 %v2613_v4 }
  0x5f   : > { %1320 = vmatprep.mubr.bf16.mxu1 %v2617_v5 }
  0x64   : > { %1160 = vmatmul.mubr.bf16.gmra.mxu0 %v2616_v6 }
  0x65   : > { %1167 = vmatprep.mubr.bf16.mxu0 %v2620_v7  ;;  %v2695_v7 = vld [vmem:[%s3367_s3] sm:$0xff]  }
  0x66   : > { %1321 = vmatmul.mubr.bf16.gmra.mxu1 %v2619_v8  ;;  %2493 = vmatprep.subr.bf16.mxu1 %v2695_v7 }
  0x67   : > { %1328 = vmatprep.mubr.bf16.mxu1 %v2624_v9  ;;  %2494 = vmatpush3.bf16.msra.mxu1 %v2695_v7 }
  0x6c   : > { %1168 = vmatmul.mubr.bf16.gmra.mxu0 %v2622_v10 }
  0x6d   : > { %1175 = vmatprep.mubr.bf16.mxu0 %v2627_v11 }
  0x6e   : > { %1329 = vmatmul.mubr.bf16.gmra.mxu1 %v2626_v12 }
  0x6f   : > { %1336 = vmatprep.mubr.bf16.mxu1 %v2630_v13 }
  0x74   : > { %1176 = vmatmul.mubr.bf16.gmra.mxu0 %v2629_v14 }
  0x75   : > { %1183 = vmatprep.mubr.bf16.mxu0 %v2633_v15 }
  0x76   : > { %1337 = vmatmul.mubr.bf16.gmra.mxu1 %v2632_v16 }
  0x77   : > { %1344 = vmatprep.mubr.bf16.mxu1 %v2637_v17 }
  0x7c   : > { %1184 = vmatmul.mubr.bf16.gmra.mxu0 %v2635_v18 }
  0x7d   : > { %1191 = vmatprep.mubr.bf16.mxu0 %v2640_v19 }
  0x7e   : > { %1345 = vmatmul.mubr.bf16.gmra.mxu1 %v2639_v20 }
  0x7f   : > { %1352 = vmatprep.mubr.bf16.mxu1 %v2643_v21 }
  0x84   : > { %1192 = vmatmul.mubr.bf16.gmra.mxu0 %v2642_v23 }
  0x85   : > { %1199 = vmatprep.mubr.bf16.mxu0 %v2646_v24 }
  0x86   : > { %1353 = vmatmul.mubr.bf16.gmra.mxu1 %v2645_v25 }
  0x87   : > { %1360 = vmatprep.mubr.bf16.mxu1 %v2650_v26 }
  0x8c   : > { %1200 = vmatmul.mubr.bf16.gmra.mxu0 %v2648_v27 }
  0x8d   : > { %1207 = vmatprep.mubr.bf16.mxu0 %v2653_v28 }
  0x8e   : > { %1361 = vmatmul.mubr.bf16.gmra.mxu1 %v2652_v29 }
  0x8f   : > { %1368 = vmatprep.mubr.bf16.mxu1 %v2656_v30 }
  0x94   : > { %1208 = vmatmul.mubr.bf16.gmra.mxu0 %v2655_v32 }
  0x95   : > { %1215 = vmatprep.mubr.bf16.mxu0 %v2659_v33 }
  0x96   : > { %1369 = vmatmul.mubr.bf16.gmra.mxu1 %v2658_v34 }
  0x97   : > { %1376 = vmatprep.mubr.bf16.mxu1 %v2663_v35 }
  0x9c   : > { %1216 = vmatmul.mubr.bf16.gmra.mxu0 %v2661_v36 }
  0x9d   : > { %1223 = vmatprep.mubr.bf16.mxu0 %v2666_v37 }
  0x9e   : > { %1377 = vmatmul.mubr.bf16.gmra.mxu1 %v2665_v38 }
  0x9f   : > { %1384 = vmatprep.mubr.bf16.mxu1 %v2669_v39 }
  0xa4   : > { %1224 = vmatmul.mubr.bf16.gmra.mxu0 %v2668_v41 }
  0xa5   : > { %2447 = vmatprep.mubr.bf16.mxu0 %v2672_v42 }
  0xa6   : > { %1385 = vmatmul.mubr.bf16.gmra.mxu1 %v2671_v43 }
  0xac   : > { %2448 = vmatmul.mubr.bf16.vlgmr.msra.gmra.mxu0 %v2673_v44 }
  0xad   : > { %2451 = vmatprep.mubr.bf16.mxu0 %v2674_v45 }
  0xb4   : > { %2452 = vmatmul.mubr.bf16.gmra.mxu0 %v2675_v47 }
  0xb5   : > { %2455 = vmatprep.mubr.bf16.mxu0 %v2676_v48 }
  0xbc   : > { %2456 = vmatmul.mubr.bf16.gmra.mxu0 %v2677_v49 }
  0xbd   : > { %2459 = vmatprep.mubr.bf16.mxu0 %v2678_v50 }
  0xc4   : > { %2460 = vmatmul.mubr.bf16.gmra.mxu0 %v2679_v52 }
  0xc5   : > { %2463 = vmatprep.mubr.bf16.mxu0 %v2680_v53 }
  0xcc   : > { %2464 = vmatmul.mubr.bf16.gmra.mxu0 %v2681_v54 }
  0xcd   : > { %2467 = vmatprep.mubr.bf16.mxu0 %v2682_v55 }
  0xd4   : > { %2468 = vmatmul.mubr.bf16.gmra.mxu0 %v2683_v57 }
  0xd5   : > { %2471 = vmatprep.mubr.bf16.mxu0 %v2684_v58 }
  0xdc   : > { %2472 = vmatmul.mubr.bf16.gmra.mxu0 %v2685_v59 }
  0xdd   : > { %2475 = vmatprep.mubr.bf16.mxu0 %v2686_v60 }
  0xe4   : > { %2476 = vmatmul.mubr.bf16.gmra.mxu0 %v2687_v62 }
  0xec   : > { %v2175_v63 = vpop.f32.mrf.mxu0 }
  0xee   : > { %v2176_v1 = vpop.f32.mrf.mxu0  ;;  %v2287_v3 = vpop.f32.mrf.mxu1 }
  0xef   : > { %v2177_v2 = vadd.f32 %v2176_v1, %v2175_v63 }
  0xf0   : > { %v2178_v4 = vpop.f32.mrf.mxu0  ;;  %v2288_v6 = vpop.f32.mrf.mxu1 }
  0xf1   : > { %v1106_v5 = vadd.f32 %v2177_v2, %v2976_v0  ;;  %v2289_v8 = vadd.f32 %v2288_v6, %v2287_v3 }
  0xf2   : > { %v2179_v9 = vpop.f32.mrf.mxu0  ;;  %v2290_v11 = vpop.f32.mrf.mxu1 }
  0xf3   : > { %v2180_v10 = vadd.f32 %v2179_v9, %v2178_v4  ;;  %v2982_v13 = vadd.f32 %v2289_v8, %v1106_v5 }
  0xf4   : > { %v2181_v12 = vpop.f32.mrf.mxu0  ;;  %v2291_v15 = vpop.f32.mrf.mxu1 }
  0xf5   : > { %v1109_v14 = vadd.f32 %v2180_v10, %v2976_v0  ;;  %v2292_v16 = vadd.f32 %v2291_v15, %v2290_v11 }
  0xf6   : > { %v2182_v17 = vpop.f32.mrf.mxu0  ;;  %v2987_v19 = vpop.f32.mrf.mxu1 }
  0xf7   : > { %v2985_v18 = vadd.f32 %v2182_v17, %v2181_v12  ;;  %v2989_v21 = vadd.f32 %v2292_v16, %v1109_v14 }
  0xf8   : > { %v2184_v20 = vpop.f32.mrf.mxu0  ;;  %v2991_v22 = vpop.f32.mrf.mxu1 }
  0xfa   : > { %v2185_v23 = vpop.f32.mrf.mxu0  ;;  %v2995_v25 = vpop.f32.mrf.mxu1 }
  0xfb   : > { %v2993_v24 = vadd.f32 %v2185_v23, %v2184_v20 }
  0xfc   : > { %v2187_v26 = vpop.f32.mrf.mxu0  ;;  %v2997_v27 = vpop.f32.mrf.mxu1 }
  0xfe   : > { %v2188_v28 = vpop.f32.mrf.mxu0  ;;  %v3001_v30 = vpop.f32.mrf.mxu1 }
  0xff   : > { %v2999_v29 = vadd.f32 %v2188_v28, %v2187_v26 }
 0x100   : > { %v2190_v31 = vpop.f32.mrf.mxu0  ;;  %v3003_v32 = vpop.f32.mrf.mxu1 }
 0x102   : > { %v2191_v33 = vpop.f32.mrf.mxu0  ;;  %v3007_v35 = vpop.f32.mrf.mxu1 }
 0x103   : > { %v3005_v34 = vadd.f32 %v2191_v33, %v2190_v31 }
 0x104   : > { %v2193_v36 = vpop.f32.mrf.mxu0  ;;  %v3009_v37 = vpop.f32.mrf.mxu1 }
 0x106   : > { %v2194_v38 = vpop.f32.mrf.mxu0  ;;  %v3013_v40 = vpop.f32.mrf.mxu1 }
 0x107   : > { %v3011_v39 = vadd.f32 %v2194_v38, %v2193_v36 }
 0x108   : > { %v2196_v41 = vpop.f32.mrf.mxu0  ;;  %v3015_v42 = vpop.f32.mrf.mxu1 }
 0x10a   : > { %v2197_v43 = vpop.f32.mrf.mxu0  ;;  %v3019_v45 = vpop.f32.mrf.mxu1 }
 0x10b   : > { %v3017_v44 = vadd.f32 %v2197_v43, %v2196_v41 }
 0x10c   : > { %v2199_v46 = vpop.f32.mrf.mxu0  ;;  %v3021_v47 = vpop.f32.mrf.mxu1 }
 0x10e   : > { %v2200_v48 = vpop.f32.mrf.mxu0  ;;  %v3025_v50 = vpop.f32.mrf.mxu1 }
 0x10f   : > { %v3023_v49 = vadd.f32 %v2200_v48, %v2199_v46 }
 0x110   : > { %v2202_v51 = vpop.f32.mrf.mxu0  ;;  %v3027_v52 = vpop.f32.mrf.mxu1 }
 0x112   : > { %v2203_v53 = vpop.f32.mrf.mxu0  ;;  %v3031_v55 = vpop.f32.mrf.mxu1 }
 0x113   : > { %v3029_v54 = vadd.f32 %v2203_v53, %v2202_v51 }
 0x114   : > { %v2205_v56 = vpop.f32.mrf.mxu0  ;;  %v3033_v57 = vpop.f32.mrf.mxu1 }
 0x116   : > { %v2206_v58 = vpop.f32.mrf.mxu0  ;;  %v3037_v60 = vpop.f32.mrf.mxu1 }
 0x117   : > { %v3035_v59 = vadd.f32 %v2206_v58, %v2205_v56 }
 0x118   : > { %v2208_v61 = vpop.f32.mrf.mxu0  ;;  %v3039_v62 = vpop.f32.mrf.mxu1 }
 0x11a   : > { %v2209_v63 = vpop.f32.mrf.mxu0  ;;  %v3043_v2 = vpop.f32.mrf.mxu1 }
 0x11b   : > { %v3041_v1 = vadd.f32 %v2209_v63, %v2208_v61 }
 0x11c   : > { %v2211_v3 = vpop.f32.mrf.mxu0  ;;  %v3045_v4 = vpop.f32.mrf.mxu1 }
 0x11e   : > { %v2212_v5 = vpop.f32.mrf.mxu0  ;;  %v3049_v7 = vpop.f32.mrf.mxu1 }
 0x11f   : > { %v3047_v6 = vadd.f32 %v2212_v5, %v2211_v3 }
 0x120   : > { %v2214_v8 = vpop.f32.mrf.mxu0  ;;  %v3051_v9 = vpop.f32.mrf.mxu1 }
 0x122   : > { %v2215_v10 = vpop.f32.mrf.mxu0  ;;  %v3055_v12 = vpop.f32.mrf.mxu1 }
 0x123   : > { %v3053_v11 = vadd.f32 %v2215_v10, %v2214_v8 }
 0x124   : > { %v2217_v14 = vpop.f32.mrf.mxu0  ;;  %v3057_v15 = vpop.f32.mrf.mxu1 }
 0x126   : > { %v2218_v16 = vpop.f32.mrf.mxu0  ;;  %v3061_v20 = vpop.f32.mrf.mxu1 }
 0x127   : > { %v3059_v17 = vadd.f32 %v2218_v16, %v2217_v14 }
 0x128   : > { %v2220_v23 = vpop.f32.mrf.mxu0  ;;  %v3063_v26 = vpop.f32.mrf.mxu1 }
 0x12a   : > { %v2221_v28 = vpop.f32.mrf.mxu0  ;;  %v3067_v33 = vpop.f32.mrf.mxu1 }
 0x12b   : > { %v3065_v31 = vadd.f32 %v2221_v28, %v2220_v23 }
 0x12c   : > { %v2223_v36 = vpop.f32.mrf.mxu0  ;;  %v3069_v38 = vpop.f32.mrf.mxu1 }
 0x12e   : > { %v2224_v41 = vpop.f32.mrf.mxu0  ;;  %v3073_v46 = vpop.f32.mrf.mxu1 }
 0x12f   : > { %v3071_v43 = vadd.f32 %v2224_v41, %v2223_v36  ;;  %3371 = vst [vmem:[#allocation3_spill] sm:$0xff] %v3073_v46 }
 0x130   : > { %v2226_v48 = vpop.f32.mrf.mxu0  ;;  %v3075_v51 = vpop.f32.mrf.mxu1 }
 0x131   : > { %3370 = vst [vmem:[#allocation2_spill] sm:$0xff] %v3071_v43  ;;  %3372 = vst [vmem:[#allocation4_spill] sm:$0xff] %v3075_v51 }
 0x132   : > { %v2227_v53 = vpop.f32.mrf.mxu0  ;;  %v3079_v58 = vpop.f32.mrf.mxu1 }
 0x133   : > { %v3077_v56 = vadd.f32 %v2227_v53, %v2226_v48  ;;  %3374 = vst [vmem:[#allocation6_spill] sm:$0xff] %v3079_v58 }
 0x134   : > { %v2229_v61 = vpop.f32.mrf.mxu0  ;;  %v3081_v63 = vpop.f32.mrf.mxu1 }
 0x135   : > { %3373 = vst [vmem:[#allocation5_spill] sm:$0xff] %v3077_v56  ;;  %3375 = vst [vmem:[#allocation7_spill] sm:$0xff] %v3081_v63 }
 0x136   : > { %v2230_v3 = vpop.f32.mrf.mxu0  ;;  %v3085_v8 = vpop.f32.mrf.mxu1 }
 0x137   : > { %v3083_v5 = vadd.f32 %v2230_v3, %v2229_v61 }
 0x138   : > { %v2232_v10 = vpop.f32.mrf.mxu0  ;;  %v3087_v14 = vpop.f32.mrf.mxu1 }
 0x13a   : > { %v2233_v16 = vpop.f32.mrf.mxu0  ;;  %v3091_v28 = vpop.f32.mrf.mxu1 }
 0x13b   : > { %v3089_v23 = vadd.f32 %v2233_v16, %v2232_v10  ;;  %3377 = vst [vmem:[#allocation9_spill] sm:$0xff] %v3091_v28 }
 0x13c   : > { %v2235_v36 = vpop.f32.mrf.mxu0  ;;  %v3093_v48 = vpop.f32.mrf.mxu1 }
 0x13d   : > { %3376 = vst [vmem:[#allocation8_spill] sm:$0xff] %v3089_v23  ;;  %3378 = vst [vmem:[#allocation10_spill] sm:$0xff] %v3093_v48 }
 0x13e   : > { %v2236_v41 = vpop.f32.mrf.mxu0  ;;  %v3097_v61 = vpop.f32.mrf.mxu1 }
 0x13f   : > { %v3095_v53 = vadd.f32 %v2236_v41, %v2235_v36  ;;  %3380 = vst [vmem:[#allocation12_spill] sm:$0xff] %v3097_v61 }
 0x140   : > { %v2238_v63 = vpop.f32.mrf.mxu0  ;;  %v3101_v46 = vpop.f32.mrf.mxu1 }
 0x141   : > { %3379 = vst [vmem:[#allocation11_spill] sm:$0xff] %v3095_v53  ;;  %3382 = vst [vmem:[#allocation14_spill] sm:$0xff] %v3101_v46 }
 0x142   : > { %v2239_v58 = vpop.f32.mrf.mxu0  ;;  %v3105_v23 = vpop.f32.mrf.mxu1 }
 0x143   : > { %v3099_v3 = vadd.f32 %v2239_v58, %v2238_v63  ;;  %3384 = vst [vmem:[#allocation16_spill] sm:$0xff] %v3105_v23 }
 0x144   : > { %v2241_v56 = vpop.f32.mrf.mxu0  ;;  %v3109_v53 = vpop.f32.mrf.mxu1 }
 0x145   : > { %3381 = vst [vmem:[#allocation13_spill] sm:$0xff] %v3099_v3  ;;  %3386 = vst [vmem:[#allocation18_spill] sm:$0xff] %v3109_v53 }
 0x146   : > { %v2242_v51 = vpop.f32.mrf.mxu0  ;;  %v3113_v3 = vpop.f32.mrf.mxu1 }
 0x147   : > { %v3103_v10 = vadd.f32 %v2242_v51, %v2241_v56  ;;  %3388 = vst [vmem:[#allocation20_spill] sm:$0xff] %v3113_v3 }
 0x148   : > { %v2244_v16 = vpop.f32.mrf.mxu0  ;;  %v3117_v46 = vpop.f32.mrf.mxu1 }
 0x149   : > { %3383 = vst [vmem:[#allocation15_spill] sm:$0xff] %v3103_v10 }
 0x14a   : > { %v2245_v28 = vpop.f32.mrf.mxu0  ;;  %v3121_v23 = vpop.f32.mrf.mxu1 }
 0x14b   : > { %v3107_v43 = vadd.f32 %v2245_v28, %v2244_v16 }
 0x14c   : > { %v2247_v36 = vpop.f32.mrf.mxu0 }
 0x14d   : > { %3385 = vst [vmem:[#allocation17_spill] sm:$0xff] %v3107_v43 }
 0x14e   : > { %v2248_v41 = vpop.f32.mrf.mxu0 }
 0x14f   : > { %v3111_v48 = vadd.f32 %v2248_v41, %v2247_v36 }
 0x150   : > { %v2250_v58 = vpop.f32.mrf.mxu0 }
 0x151   : > { %3387 = vst [vmem:[#allocation19_spill] sm:$0xff] %v3111_v48  ;;  %v3125_v48 = vpop.f32.mrf.mxu1 }
 0x152   : > { %v2251_v63 = vpop.f32.mrf.mxu0 }
 0x153   : > { %v3115_v61 = vadd.f32 %v2251_v63, %v2250_v58 }
 0x154   : > { %v2253_v51 = vpop.f32.mrf.mxu0 }
 0x155   : > { %3389 = vst [vmem:[#allocation21_spill] sm:$0xff] %v3115_v61  ;;  %v3129_v61 = vpop.f32.mrf.mxu1 }
 0x156   : > { %v2254_v56 = vpop.f32.mrf.mxu0 }
 0x157   : > { %v3119_v10 = vadd.f32 %v2254_v56, %v2253_v51 }
 0x158   : > { %v2256_v28 = vpop.f32.mrf.mxu0 }
 0x15a   : > { %v2257_v16 = vpop.f32.mrf.mxu0 }
 0x15b   : > { %v3123_v43 = vadd.f32 %v2257_v16, %v2256_v28  ;;  %v1114_v28 = vadd.f32 %v2985_v18, %v2976_v0  ;;  %v2295_v16 = vadd.f32 %v2991_v22, %v2987_v19  ;;  %v1130_v19 = vadd.f32 %v3011_v39, %v2976_v0 }
 0x15c   : > { %v2259_v36 = vpop.f32.mrf.mxu0  ;;  %v2307_v22 = vadd.f32 %v3015_v42, %v3013_v40  ;;  %v1133_v39 = vadd.f32 %v3017_v44, %v2976_v0  ;;  %v2310_v40 = vadd.f32 %v3021_v47, %v3019_v45  ;;  %v1146_v47 = vadd.f32 %v3035_v59, %v2976_v0 }
 0x15d   : > { %3390 = vst [vmem:[#allocation22_spill] sm:$0xff] %v3123_v43  ;;  %v3141_v43 = vpop.f32.mrf.mxu1 }
 0x15e   : > { %v2260_v41 = vpop.f32.mrf.mxu0  ;;  %3395 = vst [vmem:[#allocation27_spill] sm:$0xff] %v3141_v43 }
 0x15f   : > { %v3127_v53 = vadd.f32 %v2260_v41, %v2259_v36 }
 0x160   : > { %v2262_v58 = vpop.f32.mrf.mxu0 }
 0x161   : > { %3391 = vst [vmem:[#allocation23_spill] sm:$0xff] %v3127_v53  ;;  %v1275_v53 = vadd.f32 %v2295_v16, %v1114_v28 }
 0x162   : > { %v2263_v63 = vpop.f32.mrf.mxu0 }
 0x163   : > { %v3131_v3 = vadd.f32 %v2263_v63, %v2262_v58  ;;  %v1117_v58 = vadd.f32 %v2993_v24, %v2976_v0  ;;  %v2298_v63 = vadd.f32 %v2997_v27, %v2995_v25  ;;  %v1122_v25 = vadd.f32 %v2999_v29, %v2976_v0 }
 0x164   : > { %v3133_v51 = vpop.f32.mrf.mxu0  ;;  %v2301_v27 = vadd.f32 %v3003_v32, %v3001_v30  ;;  %v1291_v29 = vadd.f32 %v2307_v22, %v1130_v19  ;;  %v1125_v30 = vadd.f32 %v3005_v34, %v2976_v0  ;;  %v2304_v32 = vadd.f32 %v3009_v37, %v3007_v35 }
 0x165   : > { %3392 = vst [vmem:[#allocation24_spill] sm:$0xff] %v3131_v3  ;;  %3393 = vst [vmem:[#allocation25_spill] sm:$0xff] %v3133_v51  ;;  %v3151_v3 = vpop.f32.mrf.mxu1  ;;  %v1278_v24 = vadd.f32 %v2298_v63, %v1117_v58  ;;  %v1294_v19 = vadd.f32 %v2310_v40, %v1133_v39  ;;  %v1138_v37 = vadd.f32 %v3023_v49, %v2976_v0 }
 0x166   : > { %v3135_v56 = vpop.f32.mrf.mxu0  ;;  %3398 = vst [vmem:[#allocation30_spill] sm:$0xff] %v3151_v3  ;;  %v2319_v3 = vadd.f32 %v3039_v62, %v3037_v60  ;;  %v1149_v60 = vadd.f32 %v3041_v1, %v2976_v0  ;;  %v2322_v62 = vadd.f32 %v3045_v4, %v3043_v2 }
 0x167   : > { %3394 = vst [vmem:[#allocation26_spill] sm:$0xff] %v3135_v56 }
 0x168   : > { %v3143_v36 = vpop.f32.mrf.mxu0 }
 0x169   : > { %3396 = vst [vmem:[#allocation28_spill] sm:$0xff] %v3143_v36  ;;  %v3157_v36 = vpop.f32.mrf.mxu1 }
 0x16a   : > { %v3145_v41 = vpop.f32.mrf.mxu0  ;;  %3399 = vst [vmem:[#allocation31_spill] sm:$0xff] %v3157_v36 }
 0x16b   : > { %3397 = vst [vmem:[#allocation29_spill] sm:$0xff] %v3145_v41  ;;  %v3168_v16 = vpop.f32.mrf.mxu1 }
 0x16c   : > { %v2449_v56 = vpop.f32.mrf.mxu0 }
 0x16d   : > { %v1436_v18 = vadd.f32 %v2449_v56, %v1275_v53  ;;  %v3179_v22 = vpop.f32.mrf.mxu1 }
 0x16e   : > { %v1427_v51 = vpop.f32.mrf.mxu0 }
 0x16f   : > { %v1428_v41 = vadd.f32 %v1427_v51, %v2982_v13  ;;  %v1556_v53 = vmul.f32 0.01, %v1436_v18 }
 0x170   : > { %v2450_v28 = vpop.f32.mrf.mxu0 }
 0x171   : > { %v1439_v56 = vadd.f32 %v2450_v28, %v1278_v24  ;;  %v1554_v13 = vmul.f32 0.01, %v1428_v41  ;;  %v1283_v24 = vadd.f32 %v2301_v27, %v1122_v25  ;;  %v1588_v44 = vmax.f32 %v1436_v18, %v1556_v53 }
 0x172   : > { %v1430_v42 = vpop.f32.mrf.mxu0  ;;  %v2313_v18 = vadd.f32 %v3027_v52, %v3025_v50  ;;  %v1286_v53 = vadd.f32 %v2304_v32, %v1125_v30  ;;  %v1141_v50 = vadd.f32 %v3029_v54, %v2976_v0  ;;  %v2316_v52 = vadd.f32 %v3033_v57, %v3031_v55 }
 0x173   : > { %v1557_v51 = vmul.f32 0.01, %v1439_v56  ;;  %v1431_v58 = vadd.f32 %v1430_v42, %v2989_v21  ;;  %v1586_v34 = vmax.f32 %v1428_v41, %v1554_v13  ;;  %v1307_v13 = vadd.f32 %v2319_v3, %v1146_v47 }
 0x174   : > { %v2453_v63 = vpop.f32.mrf.mxu0  ;;  %v1299_v1 = vadd.f32 %v2313_v18, %v1138_v37  ;;  %v2331_v30 = vadd.f32 %v3063_v26, %v3061_v20  ;;  %v1310_v32 = vadd.f32 %v2322_v62, %v1149_v60  ;;  %v1165_v20 = vadd.f32 %v3065_v31, %v2976_v0 }
 0x175   : > { %v1589_v28 = vmax.f32 %v1439_v56, %v1557_v51  ;;  %v1555_v36 = vmul.f32 0.01, %v1431_v58  ;;  %v1452_v45 = vadd.f32 %v2453_v63, %v1291_v29  ;;  %v1162_v29 = vadd.f32 %v3059_v17, %v2976_v0 }
 0x176   : > { %v1443_v21 = vpop.f32.mrf.mxu0  ;;  %v2334_v26 = vadd.f32 %v3069_v38, %v3067_v33 }
 0x177   : > { %v1619_v42 = vpack.c.bf16 %v1589_v28, %v1588_v44  ;;  %v1587_v43 = vmax.f32 %v1431_v58, %v1555_v36  ;;  %v1444_v35 = vadd.f32 %v1443_v21, %v1283_v24  ;;  %v1560_v27 = vmul.f32 0.01, %v1452_v45  ;;  %v3189_v36 = vpop.f32.mrf.mxu1 }
 0x178   : > { %v2454_v25 = vpop.f32.mrf.mxu0  ;;  %v1154_v44 = vadd.f32 %v3047_v6, %v2976_v0  ;;  %v2325_v28 = vadd.f32 %v3051_v9, %v3049_v7  ;;  %v1302_v21 = vadd.f32 %v2316_v52, %v1141_v50  ;;  %v1323_v18 = vadd.f32 %v2331_v30, %v1162_v29  ;;  %v3402_v50 = vld [vmem:[#allocation4_spill] sm:$0xff] }
 0x179   : > { %v1455_v59 = vadd.f32 %v2454_v25, %v1294_v19  ;;  %v1618_v56 = vpack.c.bf16 %v1587_v43, %v1586_v34  ;;  %v1558_v39 = vmul.f32 0.01, %v1444_v35  ;;  %v1592_v51 = vmax.f32 %v1452_v45, %v1560_v27  ;;  %v3199_v63 = vpop.f32.mrf.mxu1 }
 0x17a   : > { %v1446_v41 = vpop.f32.mrf.mxu0  ;;  %v1157_v7 = vadd.f32 %v3053_v11, %v2976_v0  ;;  %v2328_v9 = vadd.f32 %v3057_v15, %v3055_v12  ;;  %v1315_v31 = vadd.f32 %v2325_v28, %v1154_v44  ;;  %v1326_v62 = vadd.f32 %v2334_v26, %v1165_v20  ;;  %v3407_v28 = vld [vmem:[#allocation6_spill] sm:$0xff] }
 0x17b   : > { %v1561_v40 = vmul.f32 0.01, %v1455_v59  ;;  %v1447_v49 = vadd.f32 %v1446_v41, %v1286_v53  ;;  %2495 = vmatprep.mubr.bf16.mxu1 %v1618_v56  ;;  %v1590_v54 = vmax.f32 %v1444_v35, %v1558_v39  ;;  %v1178_v53 = vadd.f32 %v3083_v5, %v2976_v0 }
 0x17c   : > { %v2457_v43 = vpop.f32.mrf.mxu0  ;;  %2496 = vmatmul.mubr.bf16.vlgmr.msra.gmra.mxu1 %v1619_v42  ;;  %v3209_v42 = vpop.f32.mrf.mxu1  ;;  %v2343_v56 = vadd.f32 %v3087_v14, %v3085_v8  ;;  %v3403_v8 = vld [vmem:[#allocation8_spill] sm:$0xff] }
 0x17d   : > { %v1593_v58 = vmax.f32 %v1455_v59, %v1561_v40  ;;  %v1559_v2 = vmul.f32 0.01, %v1447_v49  ;;  %v1468_v4 = vadd.f32 %v2457_v43, %v1307_v13  ;;  %v3400_v40 = vld [vmem:[#allocation2_spill] sm:$0xff]  ;;  %v3401_v13 = vld [vmem:[#allocation3_spill] sm:$0xff]  ;;  %v1181_v14 = vadd.f32 %v3403_v8, %v2976_v0 }
 0x17e   : > { %v1459_v3 = vpop.f32.mrf.mxu0  ;;  %v3219_v41 = vpop.f32.mrf.mxu1  ;;  %v2337_v52 = vadd.f32 %v3402_v50, %v3401_v13 }
 0x17f   : > { %v1591_v24 = vmax.f32 %v1447_v49, %v1559_v2  ;;  %v1460_v55 = vadd.f32 %v1459_v3, %v1299_v1  ;;  %v1621_v57 = vpack.c.bf16 %v1593_v58, %v1592_v51  ;;  %v1564_v47 = vmul.f32 0.01, %v1468_v4  ;;  %v3404_v2 = vld [vmem:[#allocation9_spill] sm:$0xff] }
 0x180   : > { %v2458_v45 = vpop.f32.mrf.mxu0  ;;  %v1170_v49 = vadd.f32 %v3400_v40, %v2976_v0  ;;  %v1318_v51 = vadd.f32 %v2328_v9, %v1157_v7  ;;  %v3229_v3 = vpop.f32.mrf.mxu1 }
 0x181   : > { %v1471_v17 = vadd.f32 %v2458_v45, %v1310_v32  ;;  %v1620_v19 = vpack.c.bf16 %v1591_v24, %v1590_v54  ;;  %v1562_v35 = vmul.f32 0.01, %v1460_v55  ;;  %v1596_v27 = vmax.f32 %v1468_v4, %v1564_v47  ;;  %v3405_v4 = vld [vmem:[#allocation10_spill] sm:$0xff]  ;;  %v3408_v45 = vld [vmem:[#allocation7_spill] sm:$0xff] }
 0x182   : > { %v1462_v34 = vpop.f32.mrf.mxu0  ;;  %v2346_v29 = vadd.f32 %v3405_v4, %v3404_v2  ;;  %v2340_v47 = vadd.f32 %v3408_v45, %v3407_v28  ;;  %v3417_v2 = vld [vmem:[#allocation18_spill] sm:$0xff] }
 0x183   : > { %v1565_v37 = vmul.f32 0.01, %v1471_v17  ;;  %v1463_v6 = vadd.f32 %v1462_v34, %v1302_v21  ;;  %2499 = vmatprep.mubr.bf16.mxu1 %v1620_v19  ;;  %v1594_v11 = vmax.f32 %v1460_v55, %v1562_v35  ;;  %v1339_v55 = vadd.f32 %v2343_v56, %v1178_v53  ;;  %v3409_v35 = vld [vmem:[#allocation15_spill] sm:$0xff]  ;;  %v3412_v56 = vld [vmem:[#allocation12_spill] sm:$0xff] }
 0x184   : > { %v2461_v25 = vpop.f32.mrf.mxu0  ;;  %2500 = vmatmul.mubr.bf16.gmra.mxu1 %v1621_v57  ;;  %v3406_v57 = vld [vmem:[#allocation5_spill] sm:$0xff]  ;;  %v1331_v21 = vadd.f32 %v2337_v52, %v1170_v49  ;;  %v1342_v9 = vadd.f32 %v2346_v29, %v1181_v14  ;;  %v3411_v53 = vld [vmem:[#allocation11_spill] sm:$0xff]  ;;  %v3416_v14 = vld [vmem:[#allocation16_spill] sm:$0xff] }
 0x185   : > { %v1597_v59 = vmax.f32 %v1471_v17, %v1565_v37  ;;  %v1563_v33 = vmul.f32 0.01, %v1463_v6  ;;  %v1484_v38 = vadd.f32 %v2461_v25, %v1323_v18  ;;  %v1173_v44 = vadd.f32 %v3406_v57, %v2976_v0  ;;  %v3239_v25 = vpop.f32.mrf.mxu1 }
 0x186   : > { %v1475_v60 = vpop.f32.mrf.mxu0  ;;  %v1194_v37 = vadd.f32 %v3409_v35, %v2976_v0  ;;  %v2352_v4 = vadd.f32 %v3417_v2, %v3416_v14 }
 0x187   : > { %v1595_v39 = vmax.f32 %v1463_v6, %v1563_v33  ;;  %v1476_v12 = vadd.f32 %v1475_v60, %v1315_v31  ;;  %v1623_v15 = vpack.c.bf16 %v1597_v59, %v1596_v27  ;;  %v1568_v1 = vmul.f32 0.01, %v1484_v38  ;;  %v3410_v6 = vld [vmem:[#allocation20_spill] sm:$0xff]  ;;  %v3413_v60 = vld [vmem:[#allocation14_spill] sm:$0xff]  ;;  %v3249_v52 = vpop.f32.mrf.mxu1 }
 0x188   : > { %v2462_v43 = vpop.f32.mrf.mxu0  ;;  %v2355_v18 = vadd.f32 %v3117_v46, %v3410_v6  ;;  %v1334_v40 = vadd.f32 %v2340_v47, %v1173_v44  ;;  %v3414_v46 = vld [vmem:[#allocation17_spill] sm:$0xff] }
 0x189   : > { %v1487_v5 = vadd.f32 %v2462_v43, %v1326_v62  ;;  %v1622_v58 = vpack.c.bf16 %v1595_v39, %v1594_v11  ;;  %v1566_v32 = vmul.f32 0.01, %v1476_v12  ;;  %v1600_v19 = vmax.f32 %v1484_v38, %v1568_v1  ;;  %v2378_v28 = vpop.f32.mrf.mxu1 }
 0x18a   : > { %v1478_v30 = vpop.f32.mrf.mxu0  ;;  %v1186_v38 = vadd.f32 %v3411_v53, %v2976_v0  ;;  %v2349_v62 = vadd.f32 %v3413_v60, %v3412_v56  ;;  %v1197_v13 = vadd.f32 %v3414_v46, %v2976_v0  ;;  %v3422_v56 = vld [vmem:[#allocation30_spill] sm:$0xff]  ;;  %v3423_v60 = vld [vmem:[#allocation31_spill] sm:$0xff] }
 0x18b   : > { %v1569_v54 = vmul.f32 0.01, %v1487_v5  ;;  %v1479_v24 = vadd.f32 %v1478_v30, %v1318_v51  ;;  %2503 = vmatprep.mubr.bf16.mxu1 %v1622_v58  ;;  %v1598_v31 = vmax.f32 %v1476_v12, %v1566_v32  ;;  %v2358_v12 = vadd.f32 %v3125_v48, %v3121_v23  ;;  %v3415_v58 = vld [vmem:[#allocation13_spill] sm:$0xff]  ;;  %v3425_v46 = vld [vmem:[#allocation26_spill] sm:$0xff] }
 0x18c   : > { %v2465_v17 = vpop.f32.mrf.mxu0  ;;  %2504 = vmatmul.mubr.bf16.gmra.mxu1 %v1623_v15  ;;  %v1355_v51 = vadd.f32 %v2355_v18, %v1194_v37  ;;  %v1189_v8 = vadd.f32 %v3415_v58, %v2976_v0  ;;  %v1347_v30 = vadd.f32 %v2349_v62, %v1186_v38  ;;  %v2364_v62 = vadd.f32 %v3423_v60, %v3422_v56 }
 0x18d   : > { %v1601_v20 = vmax.f32 %v1487_v5, %v1569_v54  ;;  %v1567_v26 = vmul.f32 0.01, %v1479_v24  ;;  %v1500_v34 = vadd.f32 %v2465_v17, %v1339_v55  ;;  %v2367_v55 = vadd.f32 %v3179_v22, %v3168_v16  ;;  %v3420_v16 = vld [vmem:[#allocation22_spill] sm:$0xff] }
 0x18e   : > { %v1491_v7 = vpop.f32.mrf.mxu0  ;;  %v1358_v44 = vadd.f32 %v2358_v12, %v1197_v13  ;;  %v1213_v22 = vadd.f32 %v3420_v16, %v2976_v0  ;;  %v3426_v12 = vld [vmem:[#allocation28_spill] sm:$0xff] }
 0x18f   : > { %v1599_v27 = vmax.f32 %v1479_v24, %v1567_v26  ;;  %v1492_v59 = vadd.f32 %v1491_v7, %v1331_v21  ;;  %v1625_v33 = vpack.c.bf16 %v1601_v20, %v1600_v19  ;;  %v1572_v39 = vmul.f32 0.01, %v1500_v34  ;;  %v3418_v19 = vld [vmem:[#allocation19_spill] sm:$0xff] }
 0x190   : > { %v2466_v11 = vpop.f32.mrf.mxu0  ;;  %v1210_v24 = vadd.f32 %v3119_v10, %v2976_v0  ;;  %v1202_v20 = vadd.f32 %v3418_v19, %v2976_v0  ;;  %v3419_v26 = vld [vmem:[#allocation27_spill] sm:$0xff]  ;;  %v1350_v10 = vadd.f32 %v2352_v4, %v1189_v8  ;;  %v2370_v7 = vadd.f32 %v3199_v63, %v3189_v36  ;;  %v3424_v63 = vld [vmem:[#allocation25_spill] sm:$0xff] }
 0x191   : > { %v1503_v15 = vadd.f32 %v2466_v11, %v1342_v9  ;;  %v1624_v49 = vpack.c.bf16 %v1599_v27, %v1598_v31  ;;  %v1570_v43 = vmul.f32 0.01, %v1492_v59  ;;  %v1604_v32 = vmax.f32 %v1500_v34, %v1572_v39  ;;  %v2380_v31 = vpop.f32.mrf.mxu1  ;;  %v3428_v4 = vld [vmem:[#allocation23_spill] sm:$0xff] }
 0x192   : > { %v1494_v50 = vpop.f32.mrf.mxu0  ;;  %v2361_v34 = vadd.f32 %v3419_v26, %v3129_v61  ;;  %v1371_v53 = vadd.f32 %v2367_v55, %v1210_v24  ;;  %v3421_v61 = vld [vmem:[#allocation21_spill] sm:$0xff]  ;;  %v2267_v13 = vadd.f32 %v3425_v46, %v3424_v63 }
 0x193   : > { %v1573_v1 = vmul.f32 0.01, %v1503_v15  ;;  %v1495_v5 = vadd.f32 %v1494_v50, %v1334_v40  ;;  %2507 = vmatprep.mubr.bf16.mxu1 %v1624_v49  ;;  %v1602_v45 = vmax.f32 %v1492_v59, %v1570_v43  ;;  %v1205_v38 = vadd.f32 %v3421_v61, %v2976_v0  ;;  %v3427_v50 = vld [vmem:[#allocation29_spill] sm:$0xff] }
 0x194   : > { %v2469_v29 = vpop.f32.mrf.mxu0  ;;  %2508 = vmatmul.mubr.bf16.gmra.mxu1 %v1625_v33  ;;  %v1363_v39 = vadd.f32 %v2361_v34, %v1202_v20  ;;  %v2270_v43 = vadd.f32 %v3427_v50, %v3426_v12  ;;  %v1226_v55 = vadd.f32 %v2267_v13, %v2976_v0  ;;  %v3429_v20 = vld [vmem:[#allocation24_spill] sm:$0xff]  ;;  %v2376_v34 = vadd.f32 %v3239_v25, %v3229_v3 }
 0x195   : > { %v1605_v54 = vmax.f32 %v1503_v15, %v1573_v1  ;;  %v1571_v23 = vmul.f32 0.01, %v1495_v5  ;;  %v1516_v48 = vadd.f32 %v2469_v29, %v1355_v51  ;;  %v2381_v51 = vpop.f32.mrf.mxu1  ;;  %v1218_v29 = vadd.f32 %v3428_v4, %v2976_v0 }
 0x196   : > { %v1507_v57 = vpop.f32.mrf.mxu0 }
 0x197   : > { %v1603_v47 = vmax.f32 %v1495_v5, %v1571_v23  ;;  %v1508_v17 = vadd.f32 %v1507_v57, %v1347_v30  ;;  %v1627_v21 = vpack.c.bf16 %v1605_v54, %v1604_v32  ;;  %v1576_v37 = vmul.f32 0.01, %v1516_v48 }
 0x198   : > { %v2470_v35 = vpop.f32.mrf.mxu0  ;;  %v1374_v5 = vadd.f32 %v2370_v7, %v1213_v22  ;;  %v2373_v30 = vadd.f32 %v3219_v41, %v3209_v42  ;;  %v2379_v57 = vadd.f32 %v2378_v28, %v3249_v52  ;;  %v1221_v42 = vadd.f32 %v3429_v20, %v2976_v0 }
 0x199   : > { %v1519_v6 = vadd.f32 %v2470_v35, %v1358_v44  ;;  %v1626_v18 = vpack.c.bf16 %v1603_v47, %v1602_v45  ;;  %v1574_v27 = vmul.f32 0.01, %v1508_v17  ;;  %v1608_v15 = vmax.f32 %v1516_v48, %v1576_v37 }
 0x19a   : > { %v1510_v9 = vpop.f32.mrf.mxu0  ;;  %v1366_v48 = vadd.f32 %v2364_v62, %v1205_v38  ;;  %v1229_v44 = vadd.f32 %v2270_v43, %v2976_v0  ;;  %v2382_v45 = vadd.f32 %v2381_v51, %v2380_v31  ;;  %v1379_v26 = vadd.f32 %v2373_v30, %v1218_v29 }
 0x19b   : > { %v1577_v59 = vmul.f32 0.01, %v1519_v6  ;;  %v1511_v33 = vadd.f32 %v1510_v9, %v1350_v10  ;;  %2511 = vmatprep.mubr.bf16.mxu1 %v1626_v18  ;;  %v1606_v58 = vmax.f32 %v1508_v17, %v1574_v27  ;;  %v1387_v28 = vadd.f32 %v2379_v57, %v1226_v55 }
 0x19c   : > { %v2473_v11 = vpop.f32.mrf.mxu0  ;;  %2512 = vmatmul.mubr.bf16.gmra.mxu1 %v1627_v21  ;;  %v1390_v10 = vadd.f32 %v2382_v45, %v1229_v44  ;;  %v1382_v0 = vadd.f32 %v2376_v34, %v1221_v42 }
 0x19d   : > { %v1609_v40 = vmax.f32 %v1519_v6, %v1577_v59  ;;  %v1575_v49 = vmul.f32 0.01, %v1511_v33  ;;  %v1532_v36 = vadd.f32 %v2473_v11, %v1371_v53 }
 0x19e   : > { %v1523_v1 = vpop.f32.mrf.mxu0 }
 0x19f   : > { %v1607_v8 = vmax.f32 %v1511_v33, %v1575_v49  ;;  %v1524_v14 = vadd.f32 %v1523_v1, %v1363_v39  ;;  %v1629_v2 = vpack.c.bf16 %v1609_v40, %v1608_v15  ;;  %v1580_v54 = vmul.f32 0.01, %v1532_v36  ;;  %v3289_v40 = vld [vmem:[%s3368_s4] ss:$0 sm:$0xff] }
 0x1a0   : > { %v2474_v32 = vpop.f32.mrf.mxu0 }
 0x1a1   : > { %v1535_v23 = vadd.f32 %v2474_v32, %v1374_v5  ;;  %v1628_v24 = vpack.c.bf16 %v1607_v8, %v1606_v58  ;;  %v1578_v17 = vmul.f32 0.01, %v1524_v14  ;;  %v1612_v35 = vmax.f32 %v1532_v36, %v1580_v54 }
 0x1a2   : > { %v1526_v47 = vpop.f32.mrf.mxu0 }
 0x1a3   : > { %v1581_v21 = vmul.f32 0.01, %v1535_v23  ;;  %v1527_v19 = vadd.f32 %v1526_v47, %v1366_v48  ;;  %2515 = vmatprep.mubr.bf16.mxu1 %v1628_v24  ;;  %v1610_v18 = vmax.f32 %v1524_v14, %v1578_v17 }
 0x1a4   : > { %v2477_v41 = vpop.f32.mrf.mxu0  ;;  %2516 = vmatmul.mubr.bf16.gmra.mxu1 %v1629_v2 }
 0x1a5   : > { %v1613_v37 = vmax.f32 %v1535_v23, %v1581_v21  ;;  %v1579_v52 = vmul.f32 0.01, %v1527_v19  ;;  %v1548_v9 = vadd.f32 %v2477_v41, %v1387_v28 }
 0x1a6   : > { %v1539_v6 = vpop.f32.mrf.mxu0 }
 0x1a7   : > { %v1611_v16 = vmax.f32 %v1527_v19, %v1579_v52  ;;  %v1540_v22 = vadd.f32 %v1539_v6, %v1379_v26  ;;  %v1631_v7 = vpack.c.bf16 %v1613_v37, %v1612_v35  ;;  %v1584_v25 = vmul.f32 0.01, %v1548_v9 }
 0x1a8   : > { %v2478_v31 = vpop.f32.mrf.mxu0 }
 0x1a9   : > { %v1551_v27 = vadd.f32 %v2478_v31, %v1390_v10  ;;  %v1630_v59 = vpack.c.bf16 %v1611_v16, %v1610_v18  ;;  %v1582_v53 = vmul.f32 0.01, %v1540_v22  ;;  %v1616_v11 = vmax.f32 %v1548_v9, %v1584_v25 }
 0x1aa   : > { %v1542_v33 = vpop.f32.mrf.mxu0 }
 0x1ab   : > { %v1585_v61 = vmul.f32 0.01, %v1551_v27  ;;  %v1543_v3 = vadd.f32 %v1542_v33, %v1382_v0  ;;  %2519 = vmatprep.mubr.bf16.mxu1 %v1630_v59  ;;  %v1614_v60 = vmax.f32 %v1540_v22, %v1582_v53 }
 0x1ac   : > { %2520 = vmatmul.mubr.bf16.gmra.mxu1 %v1631_v7 }
 0x1ad   : > { %v1583_v38 = vmul.f32 0.01, %v1543_v3  ;;  %v1617_v56 = vmax.f32 %v1551_v27, %v1585_v61 }
 0x1af   : > { %v1615_v62 = vmax.f32 %v1543_v3, %v1583_v38  ;;  %v1633_v15 = vpack.c.bf16 %v1617_v56, %v1616_v11 }
 0x1b1   : > { %v1632_v39 = vpack.c.bf16 %v1615_v62, %v1614_v60 }
 0x1b3   : > { %2523 = vmatprep.mubr.bf16.mxu1 %v1632_v39 }
 0x1b4   : > { %2524 = vmatmul.mubr.bf16.gmra.mxu1 %v1633_v15 }
 0x23c   : > { %v2497_v49 = vpop.f32.mrf.mxu1 }
 0x23d   : > { %v1748_v36 = vadd.f32 %v2497_v49, %v3289_v40 }
 0x23e   : > { %v1739_v63 = vpop.f32.mrf.mxu1 }
 0x23f   : > { %v1868_v46 = vmul.f32 0.01, %v1748_v36  ;;  %v1740_v13 = vadd.f32 %v3289_v40, %v1739_v63 }
 0x240   : > { %v2498_v12 = vpop.f32.mrf.mxu1 }
 0x241   : > { %v1900_v50 = vmax.f32 %v1748_v36, %v1868_v46  ;;  %v1866_v43 = vmul.f32 0.01, %v1740_v13  ;;  %v1751_v1 = vadd.f32 %v2498_v12, %v3289_v40 }
 0x242   : > { %v1742_v5 = vpop.f32.mrf.mxu1 }
 0x243   : > { %1932 = vst [vmem:[%s3297_s11 + $0x10] sm:$0xff] %v1900_v50  ;;  %v1898_v51 = vmax.f32 %v1740_v13, %v1866_v43  ;;  %v1869_v58 = vmul.f32 0.01, %v1751_v1  ;;  %v1743_v8 = vadd.f32 %v3289_v40, %v1742_v5 }
 0x244   : > { %v2501_v14 = vpop.f32.mrf.mxu1 }
 0x245   : > { %1930 = vst [vmem:[%s3297_s11] sm:$0xff] %v1898_v51  ;;  %v1901_v2 = vmax.f32 %v1751_v1, %v1869_v58  ;;  %v1867_v4 = vmul.f32 0.01, %v1743_v8  ;;  %v1764_v29 = vadd.f32 %v2501_v14, %v3289_v40 }
 0x246   : > { %v1755_v30 = vpop.f32.mrf.mxu1 }
 0x247   : > { %1933 = vst [vmem:[%s3297_s11 + $0x18] sm:$0xff] %v1901_v2  ;;  %v1899_v32 = vmax.f32 %v1743_v8, %v1867_v4  ;;  %v1872_v54 = vmul.f32 0.01, %v1764_v29  ;;  %v1756_v23 = vadd.f32 %v3289_v40, %v1755_v30 }
 0x248   : > { %v2502_v48 = vpop.f32.mrf.mxu1 }
 0x249   : > { %1931 = vst [vmem:[%s3297_s11 + $0x8] sm:$0xff] %v1899_v32  ;;  %v1904_v24 = vmax.f32 %v1764_v29, %v1872_v54  ;;  %v1870_v55 = vmul.f32 0.01, %v1756_v23  ;;  %v1767_v57 = vadd.f32 %v2502_v48, %v3289_v40 }
 0x24a   : > { %v1758_v44 = vpop.f32.mrf.mxu1 }
 0x24b   : > { %1936 = vst [vmem:[%s3297_s11 + $0x30] sm:$0xff] %v1904_v24  ;;  %v1902_v45 = vmax.f32 %v1756_v23, %v1870_v55  ;;  %v1873_v47 = vmul.f32 0.01, %v1767_v57  ;;  %v1759_v17 = vadd.f32 %v3289_v40, %v1758_v44 }
 0x24c   : > { %v2505_v21 = vpop.f32.mrf.mxu1 }
 0x24d   : > { %1934 = vst [vmem:[%s3297_s11 + $0x20] sm:$0xff] %v1902_v45  ;;  %v1905_v19 = vmax.f32 %v1767_v57, %v1873_v47  ;;  %v1871_v20 = vmul.f32 0.01, %v1759_v17  ;;  %v1780_v42 = vadd.f32 %v2505_v21, %v3289_v40 }
 0x24e   : > { %v1771_v41 = vpop.f32.mrf.mxu1 }
 0x24f   : > { %1937 = vst [vmem:[%s3297_s11 + $0x38] sm:$0xff] %v1905_v19  ;;  %v1903_v26 = vmax.f32 %v1759_v17, %v1871_v20  ;;  %v1876_v34 = vmul.f32 0.01, %v1780_v42  ;;  %v1772_v35 = vadd.f32 %v3289_v40, %v1771_v41 }
 0x250   : > { %v2506_v37 = vpop.f32.mrf.mxu1 }
 0x251   : > { %1935 = vst [vmem:[%s3297_s11 + $0x28] sm:$0xff] %v1903_v26  ;;  %v1908_v52 = vmax.f32 %v1780_v42, %v1876_v34  ;;  %v1874_v28 = vmul.f32 0.01, %v1772_v35  ;;  %v1783_v6 = vadd.f32 %v2506_v37, %v3289_v40 }
 0x252   : > { %v1774_v10 = vpop.f32.mrf.mxu1 }
 0x253   : > { %1940 = vst [vmem:[%s3297_s11 + $0x50] sm:$0xff] %v1908_v52  ;;  %v1906_v18 = vmax.f32 %v1772_v35, %v1874_v28  ;;  %v1877_v16 = vmul.f32 0.01, %v1783_v6  ;;  %v1775_v22 = vadd.f32 %v3289_v40, %v1774_v10 }
 0x254   : > { %v2509_v7 = vpop.f32.mrf.mxu1 }
 0x255   : > { %1938 = vst [vmem:[%s3297_s11 + $0x40] sm:$0xff] %v1906_v18  ;;  %v1909_v9 = vmax.f32 %v1783_v6, %v1877_v16  ;;  %v1875_v31 = vmul.f32 0.01, %v1775_v22  ;;  %v1796_v27 = vadd.f32 %v2509_v7, %v3289_v40 }
 0x256   : > { %v1787_v0 = vpop.f32.mrf.mxu1 }
 0x257   : > { %1941 = vst [vmem:[%s3297_s11 + $0x58] sm:$0xff] %v1909_v9  ;;  %v1907_v59 = vmax.f32 %v1775_v22, %v1875_v31  ;;  %v1880_v33 = vmul.f32 0.01, %v1796_v27  ;;  %v1788_v53 = vadd.f32 %v3289_v40, %v1787_v0 }
 0x258   : > { %v2510_v61 = vpop.f32.mrf.mxu1 }
 0x259   : > { %1939 = vst [vmem:[%s3297_s11 + $0x48] sm:$0xff] %v1907_v59  ;;  %v1912_v3 = vmax.f32 %v1796_v27, %v1880_v33  ;;  %v1878_v25 = vmul.f32 0.01, %v1788_v53  ;;  %v1799_v38 = vadd.f32 %v2510_v61, %v3289_v40 }
 0x25a   : > { %v1790_v56 = vpop.f32.mrf.mxu1 }
 0x25b   : > { %1944 = vst [vmem:[%s3297_s11 + $0x70] sm:$0xff] %v1912_v3  ;;  %v1910_v60 = vmax.f32 %v1788_v53, %v1878_v25  ;;  %v1881_v62 = vmul.f32 0.01, %v1799_v38  ;;  %v1791_v11 = vadd.f32 %v3289_v40, %v1790_v56 }
 0x25c   : > { %v2513_v39 = vpop.f32.mrf.mxu1 }
 0x25d   : > { %1942 = vst [vmem:[%s3297_s11 + $0x60] sm:$0xff] %v1910_v60  ;;  %v1913_v15 = vmax.f32 %v1799_v38, %v1881_v62  ;;  %v1879_v49 = vmul.f32 0.01, %v1791_v11  ;;  %v1812_v36 = vadd.f32 %v2513_v39, %v3289_v40 }
 0x25e   : > { %v1803_v63 = vpop.f32.mrf.mxu1 }
 0x25f   : > { %1945 = vst [vmem:[%s3297_s11 + $0x78] sm:$0xff] %v1913_v15  ;;  %v1911_v46 = vmax.f32 %v1791_v11, %v1879_v49  ;;  %v1884_v13 = vmul.f32 0.01, %v1812_v36  ;;  %v1804_v12 = vadd.f32 %v3289_v40, %v1803_v63 }
 0x260   : > { %v2514_v50 = vpop.f32.mrf.mxu1 }
 0x261   : > { %1943 = vst [vmem:[%s3297_s11 + $0x68] sm:$0xff] %v1911_v46  ;;  %v1916_v43 = vmax.f32 %v1812_v36, %v1884_v13  ;;  %v1882_v1 = vmul.f32 0.01, %v1804_v12  ;;  %v1815_v5 = vadd.f32 %v2514_v50, %v3289_v40 }
 0x262   : > { %v1806_v51 = vpop.f32.mrf.mxu1 }
 0x263   : > { %1948 = vst [vmem:[%s3297_s11 + $0x90] sm:$0xff] %v1916_v43  ;;  %v1914_v58 = vmax.f32 %v1804_v12, %v1882_v1  ;;  %v1885_v8 = vmul.f32 0.01, %v1815_v5  ;;  %v1807_v14 = vadd.f32 %v3289_v40, %v1806_v51 }
 0x264   : > { %v2517_v2 = vpop.f32.mrf.mxu1 }
 0x265   : > { %1946 = vst [vmem:[%s3297_s11 + $0x80] sm:$0xff] %v1914_v58  ;;  %v1917_v4 = vmax.f32 %v1815_v5, %v1885_v8  ;;  %v1883_v29 = vmul.f32 0.01, %v1807_v14  ;;  %v1828_v30 = vadd.f32 %v2517_v2, %v3289_v40 }
 0x266   : > { %v1819_v32 = vpop.f32.mrf.mxu1 }
 0x267   : > { %1949 = vst [vmem:[%s3297_s11 + $0x98] sm:$0xff] %v1917_v4  ;;  %v1915_v54 = vmax.f32 %v1807_v14, %v1883_v29  ;;  %v1888_v23 = vmul.f32 0.01, %v1828_v30  ;;  %v1820_v48 = vadd.f32 %v3289_v40, %v1819_v32 }
 0x268   : > { %v2518_v24 = vpop.f32.mrf.mxu1 }
 0x269   : > { %1947 = vst [vmem:[%s3297_s11 + $0x88] sm:$0xff] %v1915_v54  ;;  %v1920_v55 = vmax.f32 %v1828_v30, %v1888_v23  ;;  %v1886_v57 = vmul.f32 0.01, %v1820_v48  ;;  %v1831_v44 = vadd.f32 %v2518_v24, %v3289_v40 }
 0x26a   : > { %v1822_v45 = vpop.f32.mrf.mxu1 }
 0x26b   : > { %1952 = vst [vmem:[%s3297_s11 + $0xb0] sm:$0xff] %v1920_v55  ;;  %v1918_v47 = vmax.f32 %v1820_v48, %v1886_v57  ;;  %v1889_v17 = vmul.f32 0.01, %v1831_v44  ;;  %v1823_v21 = vadd.f32 %v3289_v40, %v1822_v45 }
 0x26c   : > { %v2521_v19 = vpop.f32.mrf.mxu1 }
 0x26d   : > { %1950 = vst [vmem:[%s3297_s11 + $0xa0] sm:$0xff] %v1918_v47  ;;  %v1921_v20 = vmax.f32 %v1831_v44, %v1889_v17  ;;  %v1887_v42 = vmul.f32 0.01, %v1823_v21  ;;  %v1844_v41 = vadd.f32 %v2521_v19, %v3289_v40 }
 0x26e   : > { %v1835_v26 = vpop.f32.mrf.mxu1 }
 0x26f   : > { %1953 = vst [vmem:[%s3297_s11 + $0xb8] sm:$0xff] %v1921_v20  ;;  %v1919_v34 = vmax.f32 %v1823_v21, %v1887_v42  ;;  %v1892_v35 = vmul.f32 0.01, %v1844_v41  ;;  %v1836_v37 = vadd.f32 %v3289_v40, %v1835_v26 }
 0x270   : > { %v2522_v52 = vpop.f32.mrf.mxu1 }
 0x271   : > { %1951 = vst [vmem:[%s3297_s11 + $0xa8] sm:$0xff] %v1919_v34  ;;  %v1924_v28 = vmax.f32 %v1844_v41, %v1892_v35  ;;  %v1890_v6 = vmul.f32 0.01, %v1836_v37  ;;  %v1847_v10 = vadd.f32 %v2522_v52, %v3289_v40 }
 0x272   : > { %v1838_v18 = vpop.f32.mrf.mxu1 }
 0x273   : > { %1956 = vst [vmem:[%s3297_s11 + $0xd0] sm:$0xff] %v1924_v28  ;;  %v1922_v16 = vmax.f32 %v1836_v37, %v1890_v6  ;;  %v1893_v22 = vmul.f32 0.01, %v1847_v10  ;;  %v1839_v7 = vadd.f32 %v3289_v40, %v1838_v18 }
 0x274   : > { %v2525_v9 = vpop.f32.mrf.mxu1 }
 0x275   : > { %1954 = vst [vmem:[%s3297_s11 + $0xc0] sm:$0xff] %v1922_v16  ;;  %v1925_v31 = vmax.f32 %v1847_v10, %v1893_v22  ;;  %v1891_v27 = vmul.f32 0.01, %v1839_v7  ;;  %v1860_v0 = vadd.f32 %v2525_v9, %v3289_v40 }
 0x276   : > { %v1851_v59 = vpop.f32.mrf.mxu1 }
 0x277   : > { %1957 = vst [vmem:[%s3297_s11 + $0xd8] sm:$0xff] %v1925_v31  ;;  %v1923_v33 = vmax.f32 %v1839_v7, %v1891_v27  ;;  %v1896_v53 = vmul.f32 0.01, %v1860_v0  ;;  %v1852_v61 = vadd.f32 %v3289_v40, %v1851_v59 }
 0x278   : > { %v2526_v3 = vpop.f32.mrf.mxu1 }
 0x279   : > { %1955 = vst [vmem:[%s3297_s11 + $0xc8] sm:$0xff] %v1923_v33  ;;  %v1928_v25 = vmax.f32 %v1860_v0, %v1896_v53  ;;  %v1894_v38 = vmul.f32 0.01, %v1852_v61  ;;  %v1863_v56 = vadd.f32 %v2526_v3, %v3289_v40 }
 0x27a   : > { %v1854_v60 = vpop.f32.mrf.mxu1 }
 0x27b   : > { %1960 = vst [vmem:[%s3297_s11 + $0xf0] sm:$0xff] %v1928_v25  ;;  %v1926_v62 = vmax.f32 %v1852_v61, %v1894_v38  ;;  %v1897_v11 = vmul.f32 0.01, %v1863_v56  ;;  %v1855_v39 = vadd.f32 %v3289_v40, %v1854_v60 }
 0x27d   : > { %1958 = vst [vmem:[%s3297_s11 + $0xe0] sm:$0xff] %v1926_v62  ;;  %v1929_v15 = vmax.f32 %v1863_v56, %v1897_v11  ;;  %v1895_v49 = vmul.f32 0.01, %v1855_v39 }
 0x27f   : > { %1961 = vst [vmem:[%s3297_s11 + $0xf8] sm:$0xff] %v1929_v15  ;;  %v1927_v36 = vmax.f32 %v1855_v39, %v1895_v49 }
 0x281   : > { %1959 = vst [vmem:[%s3297_s11 + $0xe8] sm:$0xff] %v1927_v36 }
 0x282 PF: > { %s15_s18 = sadd.s32 1, %s2702_s18  }
 0x283   : > { %p12_p4 = scmp.ge.s32.totalorder %s15_s18, 4  }
 0x285   :  { %14 = sbr.rel (!%p12_p4) target bundleno = 1 (0x1), region = 70 }

// kernel: atthead_forward.3
= control target key start
LH: loop header
LB: loop body
LE: loop exit
PB: predicated region body
PF: predicated region fallthrough
CT: control target
= control target key end

     0   :  { %s1647_s12 = smov 0   ;;  %s1649_s13 = smov 0   ;;  %s1913_s0 = inlined_call_operand.vmem [shape: bf16[512,384], index: 0, kind: input, shape index: {}]   ;;  %s1914_s1 = inlined_call_operand.vmem [shape: bf16[384,128], index: 1, kind: input, shape index: {}]   ;;  %s1915_s2 = inlined_call_operand.vmem [shape: f32[1,128], index: 2, kind: input, shape index: {}]   ;;  %s1916_s3 = inlined_call_operand.vmem [shape: f32[512,128], index: 3, kind: output, shape index: {}]  }
   0x1   :  { %s1651_s14 = smov 0  }
   0x2 LB: > { %s25_s15 = sadd.s32 1, %s1621_s13  ;;  %p1210_p0 = scmp.ge.s32.totalorder %s1625_s14, 1  ;;  %s1625_s14 = sphi %s1651_s14, %s13_s14   ;;  %s1621_s13 = sphi %s1649_s13, %s1918_s13   ;;  %s1617_s12 = sphi %s1647_s12, %s1917_s12  }
   0x3   : > { %p27_p1 = scmp.ge.s32.totalorder %s25_s15, 2  ;;  %p170_p2 = scmp.lt.s32.totalorder %s1625_s14, 3 }
   0x5   : > { %s1920_s15 = smov (%p27_p1, %s25_s15), 0  ;;  %p171_p3 = pnand %p1210_p0, %p170_p2 }
   0x6   : > { %s1211_s18 = sshll.u32 (!%p171_p3), %s1617_s12, 5 }
   0x7   : > { %174 = sbr.rel (%p171_p3) target bundleno = 339 (0x153), region = 32  ;;  %p206_p4 = scmp.lt.s32.totalorder (!%p171_p3), %s1211_s18, 63 }
   0xc   : > { %v1515_v0 = vld [vmem:[%s1914_s1 + $0x78] sm:$0xff]   ;;  %v1517_v2 = vld [vmem:[%s1914_s1 + $0x70] sm:$0xff]   ;;  %v1519_v4 = vld [vmem:[%s1914_s1 + $0x68] sm:$0xff]   ;;  %s1922_s18 = smov (!%p206_p4, %s1211_s18), 63 }
   0xd   : > { %v1516_v1 = vld [vmem:[%s1914_s1 + $0x38] sm:$0xff]   ;;  %1290 = vmatprep.subr.bf16.mxu0 %v1515_v0  ;;  %1474 = vmatprep.subr.bf16.mxu1 %v1515_v0  ;;  %v1518_v3 = vld [vmem:[%s1914_s1 + $0x30] sm:$0xff]   ;;  %v1520_v5 = vld [vmem:[%s1914_s1 + $0x28] sm:$0xff]   ;;  %s1490_s4 = smul.u32 12, %s1922_s18 }
   0xe   : > { %1291 = vmatpush3.bf16.msra.mxu0 %v1516_v1  ;;  %1482 = vmatpush3.bf16.msra.mxu1 %v1516_v1  ;;  %v1521_v6 = vld [vmem:[%s1914_s1 + $0x60] sm:$0xff]   ;;  %v1523_v8 = vld [vmem:[%s1914_s1 + $0x58] sm:$0xff]   ;;  %v1525_v10 = vld [vmem:[%s1914_s1 + $0x50] sm:$0xff]  }
   0xf   : > { %1292 = vmatprep.subr.bf16.mxu0 %v1517_v2  ;;  %1475 = vmatprep.subr.bf16.mxu1 %v1517_v2  ;;  %v1522_v7 = vld [vmem:[%s1914_s1 + $0x20] sm:$0xff]   ;;  %s1698_s11 = scalar_lea.vmem %s1913_s0, %s1490_s4  ;;  %v1524_v9 = vld [vmem:[%s1914_s1 + $0x18] sm:$0xff]   ;;  %v1526_v13 = vld [vmem:[%s1914_s1 + $0x10] sm:$0xff]  }
  0x10   : > { %v1533_v11 = vld [vmem:[%s1698_s11 + $0x4] ss:$12 sps:$4 sm:$0xff]   ;;  %v1527_v14 = vld [vmem:[%s1914_s1 + $0x48] sm:$0xff]   ;;  %v1537_v18 = vld [vmem:[%s1914_s1 + $0xb8] sm:$0xff]  }
  0x11   : > { %v1536_v12 = vld [vmem:[%s1698_s11 + $0x124] ss:$12 sps:$4 sm:$0xff]   ;;  %780 = vmatprep.mubr.bf16.mxu0 %v1533_v11  ;;  %v1528_v15 = vld [vmem:[%s1914_s1 + $0x8] sm:$0xff]   ;;  %v1547_v28 = vld [vmem:[%s1698_s11 + $0x34] ss:$12 sps:$4 sm:$0xff]  }
  0x12   : > { %1293 = vmatpush3.bf16.msra.mxu0 %v1518_v3  ;;  %1483 = vmatpush3.bf16.msra.mxu1 %v1518_v3  ;;  %v1529_v16 = vld [vmem:[%s1914_s1 + $0x40] sm:$0xff]   ;;  %v1539_v21 = vld [vmem:[%s1698_s11 + $0x1c] ss:$12 sps:$4 sm:$0xff]   ;;  %v1538_v22 = vld [vmem:[%s1914_s1 + $0xb0] sm:$0xff]  }
  0x13   : > { %1294 = vmatprep.subr.bf16.mxu0 %v1519_v4  ;;  %1476 = vmatprep.subr.bf16.mxu1 %v1519_v4  ;;  %v1530_v17 = vld [vmem:[%s1914_s1] sm:$0xff]   ;;  %v1541_v23 = vld [vmem:[%s1698_s11 + $0x13c] ss:$12 sps:$4 sm:$0xff]   ;;  %v1554_v33 = vld [vmem:[%s1914_s1 + $0x90] sm:$0xff]  }
  0x14   : > { %876 = vmatprep.mubr.bf16.mxu1 %v1536_v12  ;;  %v1531_v19 = vld [vmem:[%s1698_s11] ss:$12 sps:$4 sm:$0xff]   ;;  %v1543_v24 = vld [vmem:[%s1698_s11 + $0x18] ss:$12 sps:$4 sm:$0xff]   ;;  %v1551_v31 = vld [vmem:[%s1698_s11 + $0x30] ss:$12 sps:$4 sm:$0xff]  }
  0x15   : > { %v1534_v20 = vld [vmem:[%s1698_s11 + $0x120] ss:$12 sps:$4 sm:$0xff]   ;;  %v1544_v26 = vld [vmem:[%s1698_s11 + $0x138] ss:$12 sps:$4 sm:$0xff]   ;;  %v1552_v32 = vld [vmem:[%s1698_s11 + $0x150] ss:$12 sps:$4 sm:$0xff]  }
  0x16   : > { %1295 = vmatpush3.bf16.msra.mxu0 %v1520_v5  ;;  %1484 = vmatpush3.bf16.msra.mxu1 %v1520_v5  ;;  %v1545_v25 = vld [vmem:[%s1914_s1 + $0xa8] sm:$0xff]   ;;  %v1546_v27 = vld [vmem:[%s1914_s1 + $0xa0] sm:$0xff]   ;;  %v1553_v30 = vld [vmem:[%s1914_s1 + $0x98] sm:$0xff]  }
  0x17   : > { %1296 = vmatprep.subr.bf16.mxu0 %v1521_v6  ;;  %1477 = vmatprep.subr.bf16.mxu1 %v1521_v6  ;;  %v1549_v29 = vld [vmem:[%s1698_s11 + $0x154] ss:$12 sps:$4 sm:$0xff]   ;;  %v1555_v34 = vld [vmem:[%s1698_s11 + $0x4c] ss:$12 sps:$4 sm:$0xff]   ;;  %v1563_v39 = vld [vmem:[%s1698_s11 + $0x64] ss:$12 sps:$4 sm:$0xff]  }
  0x18   : > { %v1557_v35 = vld [vmem:[%s1698_s11 + $0x16c] ss:$12 sps:$4 sm:$0xff]   ;;  %v1559_v37 = vld [vmem:[%s1698_s11 + $0x48] ss:$12 sps:$4 sm:$0xff]   ;;  %v1562_v40 = vld [vmem:[%s1914_s1 + $0x80] sm:$0xff]  }
  0x19   : > { %v1561_v36 = vld [vmem:[%s1914_s1 + $0x88] sm:$0xff]   ;;  %v1570_v45 = vld [vmem:[%s1698_s11 + $0x38] ss:$12 sps:$4 sm:$0xff]   ;;  %v1572_v47 = vld [vmem:[%s1698_s11 + $0x50] ss:$12 sps:$4 sm:$0xff]  }
  0x1a   : > { %1297 = vmatpush3.bf16.msra.mxu0 %v1522_v7  ;;  %1485 = vmatpush3.bf16.msra.mxu1 %v1522_v7  ;;  %v1560_v38 = vld [vmem:[%s1698_s11 + $0x168] ss:$12 sps:$4 sm:$0xff]   ;;  %v1566_v42 = vld [vmem:[%s1698_s11 + $0x60] ss:$12 sps:$4 sm:$0xff]   ;;  %v1571_v46 = vld [vmem:[%s1698_s11 + $0x78] ss:$12 sps:$4 sm:$0xff]  }
  0x1b   : > { %1298 = vmatprep.subr.bf16.mxu0 %v1523_v8  ;;  %1478 = vmatprep.subr.bf16.mxu1 %v1523_v8  ;;  %v1565_v41 = vld [vmem:[%s1698_s11 + $0x8] ss:$12 sps:$4 sm:$0xff]   ;;  %v1567_v43 = vld [vmem:[%s1698_s11 + $0x20] ss:$12 sps:$4 sm:$0xff]   ;;  %v1576_v50 = vld [vmem:[%s1698_s11 + $0x90] ss:$12 sps:$4 sm:$0xff]  }
  0x1c   : > { %v1568_v44 = vld [vmem:[%s1698_s11 + $0x7c] ss:$12 sps:$4 sm:$0xff]   ;;  %v1573_v48 = vld [vmem:[%s1698_s11 + $0x94] ss:$12 sps:$4 sm:$0xff]   ;;  %v1578_v52 = vld [vmem:[%s1698_s11 + $0xac] ss:$12 sps:$4 sm:$0xff]  }
  0x1d   : > { %v1575_v49 = vld [vmem:[%s1698_s11 + $0x68] ss:$12 sps:$4 sm:$0xff]   ;;  %v1577_v51 = vld [vmem:[%s1698_s11 + $0x80] ss:$12 sps:$4 sm:$0xff]   ;;  %v1580_v53 = vld [vmem:[%s1698_s11 + $0x98] ss:$12 sps:$4 sm:$0xff]  }
  0x1e   : > { %1299 = vmatpush3.bf16.msra.mxu0 %v1524_v9  ;;  %1486 = vmatpush3.bf16.msra.mxu1 %v1524_v9  ;;  %v1581_v54 = vld [vmem:[%s1698_s11 + $0xa8] ss:$12 sps:$4 sm:$0xff]   ;;  %v1582_v55 = vld [vmem:[%s1698_s11 + $0xb0] ss:$12 sps:$4 sm:$0xff]   ;;  %v1586_v58 = vld [vmem:[%s1698_s11 + $0xc0] ss:$12 sps:$4 sm:$0xff]  }
  0x1f   : > { %1300 = vmatprep.subr.bf16.mxu0 %v1525_v10  ;;  %1479 = vmatprep.subr.bf16.mxu1 %v1525_v10  ;;  %v1583_v56 = vld [vmem:[%s1698_s11 + $0xc4] ss:$12 sps:$4 sm:$0xff]   ;;  %v1585_v57 = vld [vmem:[%s1698_s11 + $0xc8] ss:$12 sps:$4 sm:$0xff]   ;;  %v1587_v59 = vld [vmem:[%s1698_s11 + $0xe0] ss:$12 sps:$4 sm:$0xff]  }
  0x20   : > { %v1588_v60 = vld [vmem:[%s1698_s11 + $0xdc] ss:$12 sps:$4 sm:$0xff]   ;;  %v1590_v61 = vld [vmem:[%s1698_s11 + $0xf8] ss:$12 sps:$4 sm:$0xff]   ;;  %v1593_v0 = vld [vmem:[%s1698_s11 + $0xf4] ss:$12 sps:$4 sm:$0xff]  }
  0x21   : > { %v1591_v62 = vld [vmem:[%s1698_s11 + $0xd8] ss:$12 sps:$4 sm:$0xff]   ;;  %v1592_v63 = vld [vmem:[%s1698_s11 + $0x110] ss:$12 sps:$4 sm:$0xff]   ;;  %v1595_v1 = vld [vmem:[%s1698_s11 + $0x128] ss:$12 sps:$4 sm:$0xff]  }
  0x22   : > { %1301 = vmatpush3.bf16.msra.mxu0 %v1526_v13  ;;  %1487 = vmatpush3.bf16.msra.mxu1 %v1526_v13  ;;  %v1596_v2 = vld [vmem:[%s1698_s11 + $0xf0] ss:$12 sps:$4 sm:$0xff]   ;;  %v1597_v3 = vld [vmem:[%s1698_s11 + $0x140] ss:$12 sps:$4 sm:$0xff]   ;;  %v1600_v5 = vld [vmem:[%s1698_s11 + $0x158] ss:$12 sps:$4 sm:$0xff]  }
  0x23   : > { %1302 = vmatprep.subr.bf16.mxu0 %v1527_v14  ;;  %1480 = vmatprep.subr.bf16.mxu1 %v1527_v14  ;;  %v1598_v4 = vld [vmem:[%s1698_s11 + $0x10c] ss:$12 sps:$4 sm:$0xff]   ;;  %v1601_v6 = vld [vmem:[%s1698_s11 + $0x108] ss:$12 sps:$4 sm:$0xff]   ;;  %v1602_v7 = vld [vmem:[%s1698_s11 + $0x170] ss:$12 sps:$4 sm:$0xff]  }
  0x24   : > { %s1214_s11 = sshll.u32 %s1922_s18, 3 }
  0x25   : > { %s1823_s28 = scalar_lea.vmem %s1916_s3, %s1214_s11 }
  0x26   : > { %1303 = vmatpush3.bf16.msra.mxu0 %v1528_v15  ;;  %1488 = vmatpush3.bf16.msra.mxu1 %v1528_v15 }
  0x27   : > { %1304 = vmatprep.subr.bf16.mxu0 %v1529_v16  ;;  %1481 = vmatprep.subr.bf16.mxu1 %v1529_v16 }
  0x2a   : > { %1305 = vmatpush3.bf16.msra.mxu0 %v1530_v17  ;;  %1489 = vmatpush3.bf16.msra.mxu1 %v1530_v17 }
  0x2b   : > { %1426 = vmatprep.subr.bf16.mxu1 %v1537_v18 }
  0x2d   : > { %781 = vmatmul.mubr.bf16.vlgmr.msra.gmra.mxu0 %v1531_v19  ;;  %877 = vmatmul.mubr.bf16.vlgmr.msra.gmra.mxu1 %v1534_v20 }
  0x2e   : > { %1427 = vmatpush3.bf16.msra.mxu1 %v1537_v18  ;;  %788 = vmatprep.mubr.bf16.mxu0 %v1539_v21 }
  0x2f   : > { %1428 = vmatprep.subr.bf16.mxu1 %v1538_v22  ;;  %884 = vmatprep.mubr.bf16.mxu1 %v1541_v23 }
  0x32   : > { %1429 = vmatpush3.bf16.msra.mxu1 %v1538_v22 }
  0x33   : > { %1430 = vmatprep.subr.bf16.mxu1 %v1545_v25 }
  0x35   : > { %789 = vmatmul.mubr.bf16.gmra.mxu0 %v1543_v24  ;;  %885 = vmatmul.mubr.bf16.gmra.mxu1 %v1544_v26 }
  0x36   : > { %1431 = vmatpush3.bf16.msra.mxu1 %v1545_v25  ;;  %796 = vmatprep.mubr.bf16.mxu0 %v1547_v28 }
  0x37   : > { %1432 = vmatprep.subr.bf16.mxu1 %v1546_v27  ;;  %892 = vmatprep.mubr.bf16.mxu1 %v1549_v29 }
  0x3a   : > { %1433 = vmatpush3.bf16.msra.mxu1 %v1546_v27 }
  0x3b   : > { %1434 = vmatprep.subr.bf16.mxu1 %v1553_v30 }
  0x3d   : > { %797 = vmatmul.mubr.bf16.gmra.mxu0 %v1551_v31  ;;  %893 = vmatmul.mubr.bf16.gmra.mxu1 %v1552_v32 }
  0x3e   : > { %1435 = vmatpush3.bf16.msra.mxu1 %v1553_v30  ;;  %804 = vmatprep.mubr.bf16.mxu0 %v1555_v34 }
  0x3f   : > { %1436 = vmatprep.subr.bf16.mxu1 %v1554_v33  ;;  %900 = vmatprep.mubr.bf16.mxu1 %v1557_v35 }
  0x42   : > { %1437 = vmatpush3.bf16.msra.mxu1 %v1554_v33 }
  0x43   : > { %1438 = vmatprep.subr.bf16.mxu1 %v1561_v36 }
  0x45   : > { %805 = vmatmul.mubr.bf16.gmra.mxu0 %v1559_v37  ;;  %901 = vmatmul.mubr.bf16.gmra.mxu1 %v1560_v38 }
  0x46   : > { %1439 = vmatpush3.bf16.msra.mxu1 %v1561_v36  ;;  %812 = vmatprep.mubr.bf16.mxu0 %v1563_v39 }
  0x47   : > { %1440 = vmatprep.subr.bf16.mxu1 %v1562_v40  ;;  %1442 = vmatprep.mubr.bf16.mxu1 %v1565_v41 }
  0x4a   : > { %1441 = vmatpush3.bf16.msra.mxu1 %v1562_v40 }
  0x4d   : > { %813 = vmatmul.mubr.bf16.gmra.mxu0 %v1566_v42  ;;  %1443 = vmatmul.mubr.bf16.vlgmr.msra.gmra.mxu1 %v1567_v43 }
  0x4e   : > { %820 = vmatprep.mubr.bf16.mxu0 %v1568_v44  ;;  %1446 = vmatprep.mubr.bf16.mxu1 %v1570_v45 }
  0x55   : > { %821 = vmatmul.mubr.bf16.gmra.mxu0 %v1571_v46  ;;  %1447 = vmatmul.mubr.bf16.gmra.mxu1 %v1572_v47 }
  0x56   : > { %828 = vmatprep.mubr.bf16.mxu0 %v1573_v48  ;;  %1450 = vmatprep.mubr.bf16.mxu1 %v1575_v49  ;;  %v1817_v48 = vld [vmem:[%s1915_s2] ss:$0 sm:$0xff] }
  0x5d   : > { %829 = vmatmul.mubr.bf16.gmra.mxu0 %v1576_v50  ;;  %1451 = vmatmul.mubr.bf16.gmra.mxu1 %v1577_v51 }
  0x5e   : > { %836 = vmatprep.mubr.bf16.mxu0 %v1578_v52  ;;  %1454 = vmatprep.mubr.bf16.mxu1 %v1580_v53 }
  0x65   : > { %837 = vmatmul.mubr.bf16.gmra.mxu0 %v1581_v54  ;;  %1455 = vmatmul.mubr.bf16.gmra.mxu1 %v1582_v55 }
  0x66   : > { %844 = vmatprep.mubr.bf16.mxu0 %v1583_v56  ;;  %1458 = vmatprep.mubr.bf16.mxu1 %v1585_v57 }
  0x6d   : > { %845 = vmatmul.mubr.bf16.gmra.mxu0 %v1586_v58  ;;  %1459 = vmatmul.mubr.bf16.gmra.mxu1 %v1587_v59 }
  0x6e   : > { %852 = vmatprep.mubr.bf16.mxu0 %v1588_v60  ;;  %1462 = vmatprep.mubr.bf16.mxu1 %v1590_v61 }
  0x75   : > { %853 = vmatmul.mubr.bf16.gmra.mxu0 %v1591_v62  ;;  %1463 = vmatmul.mubr.bf16.gmra.mxu1 %v1592_v63 }
  0x76   : > { %860 = vmatprep.mubr.bf16.mxu0 %v1593_v0  ;;  %1466 = vmatprep.mubr.bf16.mxu1 %v1595_v1 }
  0x7d   : > { %861 = vmatmul.mubr.bf16.gmra.mxu0 %v1596_v2  ;;  %1467 = vmatmul.mubr.bf16.gmra.mxu1 %v1597_v3 }
  0x7e   : > { %868 = vmatprep.mubr.bf16.mxu0 %v1598_v4  ;;  %1470 = vmatprep.mubr.bf16.mxu1 %v1600_v5 }
  0x85   : > { %869 = vmatmul.mubr.bf16.gmra.mxu0 %v1601_v6  ;;  %1471 = vmatmul.mubr.bf16.gmra.mxu1 %v1602_v7 }
  0xed   : > { %v1306_v8 = vpop.f32.mrf.mxu0  ;;  %v1378_v9 = vpop.f32.mrf.mxu1 }
  0xef   : > { %v1307_v10 = vpop.f32.mrf.mxu0  ;;  %v1379_v11 = vpop.f32.mrf.mxu1 }
  0xf0   : > { %v1793_v12 = vadd.f32 %v1379_v11, %v1378_v9  ;;  %v1308_v45 = vadd.f32 %v1307_v10, %v1306_v8 }
  0xf1   : > { %v1309_v13 = vpop.f32.mrf.mxu0  ;;  %v1381_v14 = vpop.f32.mrf.mxu1 }
  0xf2   : > { %v783_v55 = vadd.f32 %v1308_v45, %v1817_v48 }
  0xf3   : > { %v1310_v15 = vpop.f32.mrf.mxu0  ;;  %v1382_v16 = vpop.f32.mrf.mxu1 }
  0xf4   : > { %v1795_v17 = vadd.f32 %v1382_v16, %v1381_v14  ;;  %v1311_v53 = vadd.f32 %v1310_v15, %v1309_v13 }
  0xf5   : > { %v1312_v18 = vpop.f32.mrf.mxu0  ;;  %v1384_v19 = vpop.f32.mrf.mxu1 }
  0xf6   : > { %v786_v1 = vadd.f32 %v1311_v53, %v1817_v48 }
  0xf7   : > { %v1313_v20 = vpop.f32.mrf.mxu0  ;;  %v1385_v21 = vpop.f32.mrf.mxu1 }
  0xf8   : > { %v1797_v22 = vadd.f32 %v1385_v21, %v1384_v19  ;;  %v1314_v42 = vadd.f32 %v1313_v20, %v1312_v18 }
  0xf9   : > { %v1315_v23 = vpop.f32.mrf.mxu0  ;;  %v1387_v24 = vpop.f32.mrf.mxu1 }
  0xfa   : > { %v791_v50 = vadd.f32 %v1314_v42, %v1817_v48 }
  0xfb   : > { %v1316_v25 = vpop.f32.mrf.mxu0  ;;  %v1388_v26 = vpop.f32.mrf.mxu1 }
  0xfc   : > { %v1799_v27 = vadd.f32 %v1388_v26, %v1387_v24  ;;  %v1317_v49 = vadd.f32 %v1316_v25, %v1315_v23 }
  0xfd   : > { %v1318_v28 = vpop.f32.mrf.mxu0  ;;  %v1390_v29 = vpop.f32.mrf.mxu1 }
  0xfe   : > { %v794_v60 = vadd.f32 %v1317_v49, %v1817_v48 }
  0xff   : > { %v1319_v30 = vpop.f32.mrf.mxu0  ;;  %v1391_v31 = vpop.f32.mrf.mxu1 }
 0x100   : > { %v1801_v32 = vadd.f32 %v1391_v31, %v1390_v29  ;;  %v1320_v63 = vadd.f32 %v1319_v30, %v1318_v28 }
 0x101   : > { %v1321_v33 = vpop.f32.mrf.mxu0  ;;  %v1393_v34 = vpop.f32.mrf.mxu1 }
 0x102   : > { %v799_v11 = vadd.f32 %v1320_v63, %v1817_v48 }
 0x103   : > { %v1322_v35 = vpop.f32.mrf.mxu0  ;;  %v1394_v36 = vpop.f32.mrf.mxu1 }
 0x104   : > { %v1803_v37 = vadd.f32 %v1394_v36, %v1393_v34  ;;  %v1323_v9 = vadd.f32 %v1322_v35, %v1321_v33 }
 0x105   : > { %v1324_v38 = vpop.f32.mrf.mxu0  ;;  %v1805_v39 = vpop.f32.mrf.mxu1 }
 0x106   : > { %v802_v24 = vadd.f32 %v1323_v9, %v1817_v48 }
 0x107   : > { %v1325_v40 = vpop.f32.mrf.mxu0  ;;  %v1807_v41 = vpop.f32.mrf.mxu1 }
 0x108   : > { %v1326_v58 = vadd.f32 %v1325_v40, %v1324_v38 }
 0x109   : > { %v1327_v43 = vpop.f32.mrf.mxu0  ;;  %v1809_v44 = vpop.f32.mrf.mxu1 }
 0x10a   : > { %v807_v6 = vadd.f32 %v1326_v58, %v1817_v48 }
 0x10b   : > { %v1328_v46 = vpop.f32.mrf.mxu0  ;;  %v1812_v47 = vpop.f32.mrf.mxu1 }
 0x10c   : > { %v1329_v4 = vadd.f32 %v1328_v46, %v1327_v43 }
 0x10d   : > { %v1330_v51 = vpop.f32.mrf.mxu0  ;;  %v1444_v52 = vpop.f32.mrf.mxu1 }
 0x10e   : > { %v952_v54 = vadd.f32 %v1444_v52, %v791_v50  ;;  %v810_v18 = vadd.f32 %v1329_v4, %v1817_v48 }
 0x10f   : > { %v1331_v56 = vpop.f32.mrf.mxu0  ;;  %v943_v57 = vpop.f32.mrf.mxu1 }
 0x110   : > { %1072 = vst [vmem:[%s1823_s28 + $0x10] sm:$0xff] %v952_v54  ;;  %v944_v59 = vadd.f32 %v943_v57, %v783_v55  ;;  %v1332_v21 = vadd.f32 %v1331_v56, %v1330_v51 }
 0x111   : > { %v1333_v61 = vpop.f32.mrf.mxu0  ;;  %v1445_v62 = vpop.f32.mrf.mxu1 }
 0x112   : > { %1070 = vst [vmem:[%s1823_s28] sm:$0xff] %v944_v59  ;;  %v955_v0 = vadd.f32 %v1445_v62, %v794_v60  ;;  %v815_v36 = vadd.f32 %v1332_v21, %v1817_v48 }
 0x113   : > { %v1334_v2 = vpop.f32.mrf.mxu0  ;;  %v946_v3 = vpop.f32.mrf.mxu1 }
 0x114   : > { %1073 = vst [vmem:[%s1823_s28 + $0x18] sm:$0xff] %v955_v0  ;;  %v947_v5 = vadd.f32 %v946_v3, %v786_v1  ;;  %v1335_v34 = vadd.f32 %v1334_v2, %v1333_v61 }
 0x115   : > { %v1336_v7 = vpop.f32.mrf.mxu0  ;;  %v1448_v8 = vpop.f32.mrf.mxu1 }
 0x116   : > { %1071 = vst [vmem:[%s1823_s28 + $0x8] sm:$0xff] %v947_v5  ;;  %v968_v10 = vadd.f32 %v1448_v8, %v807_v6  ;;  %v818_v51 = vadd.f32 %v1335_v34, %v1817_v48 }
 0x117   : > { %v1337_v13 = vpop.f32.mrf.mxu0  ;;  %v959_v14 = vpop.f32.mrf.mxu1 }
 0x118   : > { %1076 = vst [vmem:[%s1823_s28 + $0x30] sm:$0xff] %v968_v10  ;;  %v1338_v15 = vadd.f32 %v1337_v13, %v1336_v7  ;;  %v960_v16 = vadd.f32 %v959_v14, %v799_v11 }
 0x119   : > { %v1339_v19 = vpop.f32.mrf.mxu0  ;;  %v1449_v20 = vpop.f32.mrf.mxu1 }
 0x11a   : > { %1074 = vst [vmem:[%s1823_s28 + $0x20] sm:$0xff] %v960_v16  ;;  %v971_v23 = vadd.f32 %v1449_v20, %v810_v18  ;;  %v823_v30 = vadd.f32 %v1338_v15, %v1817_v48 }
 0x11b   : > { %v1340_v25 = vpop.f32.mrf.mxu0  ;;  %v962_v26 = vpop.f32.mrf.mxu1 }
 0x11c   : > { %1077 = vst [vmem:[%s1823_s28 + $0x38] sm:$0xff] %v971_v23  ;;  %v1341_v28 = vadd.f32 %v1340_v25, %v1339_v19  ;;  %v963_v29 = vadd.f32 %v962_v26, %v802_v24 }
 0x11d   : > { %v1342_v31 = vpop.f32.mrf.mxu0  ;;  %v1452_v33 = vpop.f32.mrf.mxu1 }
 0x11e   : > { %1075 = vst [vmem:[%s1823_s28 + $0x28] sm:$0xff] %v963_v29  ;;  %v984_v35 = vadd.f32 %v1452_v33, %v823_v30  ;;  %v826_v43 = vadd.f32 %v1341_v28, %v1817_v48 }
 0x11f   : > { %v1343_v38 = vpop.f32.mrf.mxu0  ;;  %v975_v40 = vpop.f32.mrf.mxu1 }
 0x120   : > { %1080 = vst [vmem:[%s1823_s28 + $0x50] sm:$0xff] %v984_v35  ;;  %v976_v42 = vadd.f32 %v975_v40, %v815_v36  ;;  %v1344_v49 = vadd.f32 %v1343_v38, %v1342_v31 }
 0x121   : > { %v1345_v45 = vpop.f32.mrf.mxu0  ;;  %v1453_v46 = vpop.f32.mrf.mxu1 }
 0x122   : > { %1078 = vst [vmem:[%s1823_s28 + $0x40] sm:$0xff] %v976_v42  ;;  %v987_v50 = vadd.f32 %v1453_v46, %v826_v43  ;;  %v831_v58 = vadd.f32 %v1344_v49, %v1817_v48 }
 0x123   : > { %v1346_v52 = vpop.f32.mrf.mxu0  ;;  %v978_v53 = vpop.f32.mrf.mxu1 }
 0x124   : > { %1081 = vst [vmem:[%s1823_s28 + $0x58] sm:$0xff] %v987_v50  ;;  %v979_v54 = vadd.f32 %v978_v53, %v818_v51  ;;  %v1347_v57 = vadd.f32 %v1346_v52, %v1345_v45  ;;  %v887_v45 = vadd.f32 %v1797_v22, %v1817_v48  ;;  %v879_v52 = vadd.f32 %v1793_v12, %v1817_v48 }
 0x125   : > { %v1348_v55 = vpop.f32.mrf.mxu0  ;;  %v1456_v56 = vpop.f32.mrf.mxu1  ;;  %v1398_v53 = vadd.f32 %v1807_v41, %v1805_v39  ;;  %v882_v39 = vadd.f32 %v1795_v17, %v1817_v48 }
 0x126   : > { %1079 = vst [vmem:[%s1823_s28 + $0x48] sm:$0xff] %v979_v54  ;;  %v834_v2 = vadd.f32 %v1347_v57, %v1817_v48 }
 0x127   : > { %v1349_v59 = vpop.f32.mrf.mxu0  ;;  %v991_v60 = vpop.f32.mrf.mxu1 }
 0x128   : > { %v1350_v61 = vadd.f32 %v1349_v59, %v1348_v55  ;;  %v992_v62 = vadd.f32 %v991_v60, %v831_v58  ;;  %v890_v58 = vadd.f32 %v1799_v27, %v1817_v48  ;;  %v1401_v27 = vadd.f32 %v1812_v47, %v1809_v44 }
 0x129   : > { %v1351_v63 = vpop.f32.mrf.mxu0  ;;  %v1457_v0 = vpop.f32.mrf.mxu1 }
 0x12a   : > { %v839_v1 = vadd.f32 %v1350_v61, %v1817_v48  ;;  %1082 = vst [vmem:[%s1823_s28 + $0x60] sm:$0xff] %v992_v62 }
 0x12b   : > { %v1352_v3 = vpop.f32.mrf.mxu0  ;;  %v994_v4 = vpop.f32.mrf.mxu1 }
 0x12c   : > { %v1000_v5 = vadd.f32 %v1456_v56, %v839_v1  ;;  %v1353_v6 = vadd.f32 %v1352_v3, %v1351_v63  ;;  %v995_v7 = vadd.f32 %v994_v4, %v834_v2  ;;  %v903_v63 = vadd.f32 %v1398_v53, %v1817_v48 }
 0x12d   : > { %v1354_v8 = vpop.f32.mrf.mxu0  ;;  %v1460_v9 = vpop.f32.mrf.mxu1 }
 0x12e   : > { %1084 = vst [vmem:[%s1823_s28 + $0x70] sm:$0xff] %v1000_v5  ;;  %v842_v10 = vadd.f32 %v1353_v6, %v1817_v48  ;;  %1083 = vst [vmem:[%s1823_s28 + $0x68] sm:$0xff] %v995_v7  ;;  %v895_v6 = vadd.f32 %v1801_v32, %v1817_v48  ;;  %v898_v32 = vadd.f32 %v1803_v37, %v1817_v48 }
 0x12f   : > { %v1355_v11 = vpop.f32.mrf.mxu0  ;;  %v1007_v13 = vpop.f32.mrf.mxu1 }
 0x130   : > { %v1003_v14 = vadd.f32 %v1457_v0, %v842_v10  ;;  %v1356_v15 = vadd.f32 %v1355_v11, %v1354_v8  ;;  %v906_v10 = vadd.f32 %v1401_v27, %v1817_v48 }
 0x131   : > { %v1357_v16 = vpop.f32.mrf.mxu0  ;;  %v1461_v18 = vpop.f32.mrf.mxu1 }
 0x132   : > { %1085 = vst [vmem:[%s1823_s28 + $0x78] sm:$0xff] %v1003_v14  ;;  %v847_v19 = vadd.f32 %v1356_v15, %v1817_v48 }
 0x133   : > { %v1358_v20 = vpop.f32.mrf.mxu0  ;;  %v1010_v21 = vpop.f32.mrf.mxu1 }
 0x134   : > { %v1008_v23 = vadd.f32 %v1007_v13, %v847_v19  ;;  %v1359_v24 = vadd.f32 %v1358_v20, %v1357_v16 }
 0x135   : > { %v1360_v25 = vpop.f32.mrf.mxu0  ;;  %v1857_v26 = vpop.f32.mrf.mxu1 }
 0x136   : > { %1086 = vst [vmem:[%s1823_s28 + $0x80] sm:$0xff] %v1008_v23  ;;  %v850_v28 = vadd.f32 %v1359_v24, %v1817_v48 }
 0x137   : > { %v1361_v29 = vpop.f32.mrf.mxu0  ;;  %v1023_v30 = vpop.f32.mrf.mxu1 }
 0x138   : > { %v1011_v31 = vadd.f32 %v1010_v21, %v850_v28  ;;  %v1362_v33 = vadd.f32 %v1361_v29, %v1360_v25 }
 0x139   : > { %v1363_v34 = vpop.f32.mrf.mxu0  ;;  %v1861_v35 = vpop.f32.mrf.mxu1 }
 0x13a   : > { %1087 = vst [vmem:[%s1823_s28 + $0x88] sm:$0xff] %v1011_v31  ;;  %v855_v36 = vadd.f32 %v1362_v33, %v1817_v48 }
 0x13b   : > { %v1364_v38 = vpop.f32.mrf.mxu0  ;;  %v1026_v40 = vpop.f32.mrf.mxu1 }
 0x13c   : > { %v1016_v42 = vadd.f32 %v1460_v9, %v855_v36  ;;  %v1365_v43 = vadd.f32 %v1364_v38, %v1363_v34 }
 0x13d   : > { %v1366_v46 = vpop.f32.mrf.mxu0  ;;  %v1468_v49 = vpop.f32.mrf.mxu1 }
 0x13e   : > { %1088 = vst [vmem:[%s1823_s28 + $0x90] sm:$0xff] %v1016_v42  ;;  %v858_v50 = vadd.f32 %v1365_v43, %v1817_v48  ;;  %v1048_v51 = vadd.f32 %v1468_v49, %v887_v45 }
 0x13f   : > { %v1367_v54 = vpop.f32.mrf.mxu0  ;;  %v1039_v55 = vpop.f32.mrf.mxu1 }
 0x140   : > { %v1019_v56 = vadd.f32 %v1461_v18, %v858_v50  ;;  %1096 = vst [vmem:[%s1823_s28 + $0xd0] sm:$0xff] %v1048_v51  ;;  %v1368_v22 = vadd.f32 %v1367_v54, %v1366_v46  ;;  %v1040_v57 = vadd.f32 %v1039_v55, %v879_v52 }
 0x141   : > { %v1369_v59 = vpop.f32.mrf.mxu0  ;;  %v1469_v60 = vpop.f32.mrf.mxu1 }
 0x142   : > { %1089 = vst [vmem:[%s1823_s28 + $0x98] sm:$0xff] %v1019_v56  ;;  %v863_v61 = vadd.f32 %v1368_v22, %v1817_v48  ;;  %1094 = vst [vmem:[%s1823_s28 + $0xc0] sm:$0xff] %v1040_v57  ;;  %v1051_v12 = vadd.f32 %v1469_v60, %v890_v58 }
 0x143   : > { %v1370_v41 = vpop.f32.mrf.mxu0  ;;  %v1042_v62 = vpop.f32.mrf.mxu1 }
 0x144   : > { %v1024_v0 = vadd.f32 %v1023_v30, %v863_v61  ;;  %1097 = vst [vmem:[%s1823_s28 + $0xd8] sm:$0xff] %v1051_v12  ;;  %v1371_v1 = vadd.f32 %v1370_v41, %v1369_v59  ;;  %v1043_v2 = vadd.f32 %v1042_v62, %v882_v39 }
 0x145   : > { %v1372_v3 = vpop.f32.mrf.mxu0  ;;  %v1472_v4 = vpop.f32.mrf.mxu1 }
 0x146   : > { %1090 = vst [vmem:[%s1823_s28 + $0xa0] sm:$0xff] %v1024_v0  ;;  %v866_v5 = vadd.f32 %v1371_v1, %v1817_v48  ;;  %1095 = vst [vmem:[%s1823_s28 + $0xc8] sm:$0xff] %v1043_v2  ;;  %v1064_v17 = vadd.f32 %v1472_v4, %v903_v63 }
 0x147   : > { %v1373_v7 = vpop.f32.mrf.mxu0  ;;  %v1055_v8 = vpop.f32.mrf.mxu1 }
 0x148   : > { %v1027_v44 = vadd.f32 %v1026_v40, %v866_v5  ;;  %1100 = vst [vmem:[%s1823_s28 + $0xf0] sm:$0xff] %v1064_v17  ;;  %v1374_v47 = vadd.f32 %v1373_v7, %v1372_v3  ;;  %v1056_v9 = vadd.f32 %v1055_v8, %v895_v6 }
 0x149   : > { %v1375_v11 = vpop.f32.mrf.mxu0  ;;  %v1473_v13 = vpop.f32.mrf.mxu1 }
 0x14a   : > { %1091 = vst [vmem:[%s1823_s28 + $0xa8] sm:$0xff] %v1027_v44  ;;  %v871_v14 = vadd.f32 %v1374_v47, %v1817_v48  ;;  %1098 = vst [vmem:[%s1823_s28 + $0xe0] sm:$0xff] %v1056_v9  ;;  %v1067_v15 = vadd.f32 %v1473_v13, %v906_v10 }
 0x14b   : > { %v1376_v16 = vpop.f32.mrf.mxu0  ;;  %v1058_v18 = vpop.f32.mrf.mxu1 }
 0x14c   : > { %v1032_v19 = vadd.f32 %v1857_v26, %v871_v14  ;;  %1101 = vst [vmem:[%s1823_s28 + $0xf8] sm:$0xff] %v1067_v15  ;;  %v1377_v20 = vadd.f32 %v1376_v16, %v1375_v11  ;;  %v1059_v21 = vadd.f32 %v1058_v18, %v898_v32 }
 0x14e   : > { %1092 = vst [vmem:[%s1823_s28 + $0xb0] sm:$0xff] %v1032_v19  ;;  %v874_v23 = vadd.f32 %v1377_v20, %v1817_v48  ;;  %1099 = vst [vmem:[%s1823_s28 + $0xe8] sm:$0xff] %v1059_v21 }
 0x150   : > { %v1035_v24 = vadd.f32 %v1861_v35, %v874_v23 }
 0x152   : > { %1093 = vst [vmem:[%s1823_s28 + $0xb8] sm:$0xff] %v1035_v24 }
 0x153 PF: > { %s13_s14 = sadd.s32 1, %s1625_s14   ;;  %s1917_s12 = smov %s1621_s13 }
 0x154   : > { %p10_p5 = scmp.ge.s32.totalorder %s13_s14, 4   ;;  %s1918_s13 = smov %s1920_s15 }
 0x156   :  { %12 = sbr.rel (!%p10_p5) target bundleno = 2 (0x2), region = 68 }

// kernel: atthead_forward.5
= control target key start
LH: loop header
LB: loop body
LE: loop exit
PB: predicated region body
PF: predicated region fallthrough
CT: control target
= control target key end

     0   :  { %s2398_s21 = smov 0   ;;  %s2400_s22 = smov 0   ;;  %s2892_s0 = inlined_call_operand.vmem [shape: f32[512,128], index: 0, kind: input, shape index: {}]   ;;  %s2893_s1 = inlined_call_operand.vmem [shape: bf16[5,512,384], index: 1, kind: input, shape index: {}]   ;;  %s2894_s2 = inlined_call_operand.vmem [shape: bf16[5,384,128], index: 2, kind: input, shape index: {}]   ;;  %s2895_s3 = inlined_call_operand.vmem [shape: f32[5,1,128], index: 3, kind: input, shape index: {}]   ;;  %s2896_s4 = inlined_call_operand.vmem [shape: bf16[5,128,128], index: 4, kind: input, shape index: {}]   ;;  %s2897_s5 = inlined_call_operand.vmem [shape: f32[5,1,128], index: 5, kind: input, shape index: {}]   ;;  %s2898_s6 = inlined_call_operand.vmem [shape: f32[512,128], index: 6, kind: output, shape index: {}]  }
   0x1   :  { %s2402_s23 = smov 0   ;;  %s2404_s24 = smov 0  }
   0x2   :  { %s2406_s25 = smov 0  }
   0x3 LB: > { %s25_s26 = sadd.s32 1, %s2353_s23  ;;  %s28_s27 = sadd.s32 1, %s2357_s24  ;;  %s2361_s25 = sphi %s2406_s25, %s16_s25   ;;  %s2357_s24 = sphi %s2404_s24, %s2902_s24   ;;  %s2353_s23 = sphi %s2402_s23, %s2901_s23   ;;  %s2349_s22 = sphi %s2400_s22, %s2900_s22   ;;  %s2345_s21 = sphi %s2398_s21, %s2899_s21  }
   0x4   : > { %p26_p0 = scmp.ge.s32.totalorder %s25_s26, 5  ;;  %p1831_p1 = scmp.ge.s32.totalorder %s2361_s25, 1 }
   0x5   : > { %p243_p2 = scmp.lt.s32.totalorder %s2361_s25, 11 }
   0x6   : > { %s2904_s26 = smov (%p26_p0, %s25_s26), 0  ;;  %s2906_s27 = smov (!%p26_p0, %s28_s27), %s2357_s24 }
   0x7   : > { %p244_p3 = pnand %p1831_p1, %p243_p2  ;;  %p30_p4 = scmp.ge.s32.totalorder %s2906_s27, 2 }
   0x8   : > { %s1927_s28 = smul.u32 (!%p244_p3), 192, %s2345_s21  ;;  %s1832_s29 = sshll.u32 (!%p244_p3), %s2349_s22, 5 }
   0x9   : > { %s2908_s27 = smov (%p30_p4, %s2906_s27), 0  ;;  %247 = sbr.rel (%p244_p3) target bundleno = 627 (0x273), region = 44 }
   0xa   : > { %p284_p5 = scmp.lt.s32.totalorder (!%p244_p3), %s1832_s29, 63  ;;  %s2434_s8 = scalar_lea.vmem (!%p244_p3), %s2894_s2, %s1927_s28 }
   0xb   : > { %p290_p6 = scmp.lt.s32.totalorder (!%p244_p3), %s2345_s21, 4  ;;  %s1928_s30 = sshll.u32 (!%p244_p3), %s2345_s21, 6 }
   0xc   : > { %s422_s13 = scalar_lea.vmem (!%p244_p3), %s2895_s3, %s2345_s21  ;;  %p1923_p7 = scmp.ne.s32.totalorder (!%p244_p3), %s2345_s21, 0 }
   0xe   : > { %v2227_v0 = vld [vmem:[%s2434_s8 + $0x78] sm:$0xff]   ;;  %s2910_s29 = smov (!%p284_p5, %s1832_s29), 63  ;;  %v2229_v2 = vld [vmem:[%s2434_s8 + $0x70] sm:$0xff]   ;;  %v2232_v5 = vld [vmem:[%s2434_s8 + $0x68] sm:$0xff]  }
   0xf   : > { %v2228_v1 = vld [vmem:[%s2434_s8 + $0x38] sm:$0xff]   ;;  %1929 = vmatprep.subr.bf16.mxu0 %v2227_v0  ;;  %s1833_s9 = sshll.u32 %s2910_s29, 3  ;;  %v2231_v4 = vld [vmem:[%s2434_s8 + $0x30] sm:$0xff]   ;;  %v2234_v7 = vld [vmem:[%s2434_s8 + $0x28] sm:$0xff]   ;;  %s2185_s17 = smul.u32 3, %s2910_s29 }
  0x10   : > { %1930 = vmatpush3.bf16.msra.mxu0 %v2228_v1  ;;  %v2230_v3 = vld [vmem:[%s2434_s8 + $0xb8] sm:$0xff]   ;;  %s2446_s12 = scalar_lea.vmem %s2892_s0, %s1833_s9  ;;  %s2453_s15 = scalar_lea.vmem %s2898_s6, %s1833_s9  ;;  %v2233_v6 = vld [vmem:[%s2434_s8 + $0xb0] sm:$0xff]   ;;  %v2235_v8 = vld [vmem:[%s2434_s8 + $0x60] sm:$0xff]  }
  0x11   : > { %1931 = vmatprep.subr.bf16.mxu0 %v2229_v2  ;;  %2089 = vmatprep.subr.bf16.mxu1 %v2230_v3  ;;  %s291_s16 = scalar_select %p290_p6, %s2345_s21, 4  ;;  %v2236_v9 = vld [vmem:[%s2434_s8 + $0xa8] sm:$0xff]   ;;  %v2237_v10 = vld [vmem:[%s2434_s8 + $0x20] sm:$0xff]   ;;  %v2238_v11 = vld [vmem:[%s2434_s8 + $0x58] sm:$0xff]  }
  0x12   : > { %2090 = vmatpush3.bf16.msra.mxu1 %v2230_v3  ;;  %v2239_v12 = vld [vmem:[%s2434_s8 + $0xa0] sm:$0xff]   ;;  %v2240_v13 = vld [vmem:[%s2434_s8 + $0x18] sm:$0xff]   ;;  %v2241_v15 = vld [vmem:[%s2434_s8 + $0x50] sm:$0xff]   ;;  %s2503_s9 = scalar_lea.vmem %s2896_s4, %s1928_s30 }
  0x13   : > { %2091 = vmatprep.subr.bf16.mxu1 %v2233_v6  ;;  %s2186_s18 = smul.u32 192, %s291_s16  ;;  %v2242_v14 = vld [vmem:[%s2434_s8 + $0x98] sm:$0xff]   ;;  %v2243_v16 = vld [vmem:[%s2434_s8 + $0x10] sm:$0xff]   ;;  %v2244_v18 = vld [vmem:[%s2434_s8 + $0x48] sm:$0xff]  }
  0x14   : > { %1932 = vmatpush3.bf16.msra.mxu0 %v2231_v4  ;;  %v2245_v17 = vld [vmem:[%s2434_s8 + $0x90] sm:$0xff]   ;;  %v2246_v19 = vld [vmem:[%s2434_s8 + $0x8] sm:$0xff]   ;;  %v2247_v20 = vld [vmem:[%s2434_s8 + $0x40] sm:$0xff]  }
  0x15   : > { %1933 = vmatprep.subr.bf16.mxu0 %v2232_v5  ;;  %s296_s19 = sadd.s32 %s2186_s18, %s2185_s17  ;;  %v2248_v21 = vld [vmem:[%s2434_s8 + $0x88] sm:$0xff]   ;;  %v2249_v23 = vld [vmem:[%s2434_s8] sm:$0xff]   ;;  %v2315_v44 = vld [vmem:[%s2503_s9 + $0x38] sm:$0xff]   ;;  %s1251_s17 = scalar_lea.vmem %s2897_s5, %s2345_s21 }
  0x16   : > { %2092 = vmatpush3.bf16.msra.mxu1 %v2233_v6  ;;  %s1835_s20 = sshll.u32 %s296_s19, 2  ;;  %v2253_v25 = vld [vmem:[%s2434_s8 + $0x80] sm:$0xff]   ;;  %v2316_v46 = vld [vmem:[%s2503_s9 + $0x30] sm:$0xff]   ;;  %v2317_v61 = vld [vmem:[%s2503_s9 + $0x28] sm:$0xff]  }
  0x17   : > { %2093 = vmatprep.subr.bf16.mxu1 %v2236_v9  ;;  %s2475_s29 = scalar_lea.vmem %s2893_s1, %s1835_s20  ;;  %v2318_v0 = vld [vmem:[%s2503_s9 + $0x20] sm:$0xff]   ;;  %v2319_v1 = vld [vmem:[%s2503_s9 + $0x18] sm:$0xff]   ;;  %v2320_v4 = vld [vmem:[%s2503_s9 + $0x10] sm:$0xff]  }
  0x18   : > { %1934 = vmatpush3.bf16.msra.mxu0 %v2234_v7  ;;  %v2252_v22 = vld [vmem:[%s2475_s29 + $0x4] ss:$12 sps:$4 sm:$0xff]   ;;  %v2254_v24 = vld [vmem:[%s2475_s29 + $0x8] ss:$12 sps:$4 sm:$0xff]   ;;  %v2250_v26 = vld [vmem:[%s2475_s29] ss:$12 sps:$4 sm:$0xff]  }
  0x19   : > { %1935 = vmatprep.subr.bf16.mxu0 %v2235_v8  ;;  %862 = vmatprep.mubr.bf16.mxu0 %v2252_v22  ;;  %v2256_v27 = vld [vmem:[%s2475_s29 + $0x1c] ss:$12 sps:$4 sm:$0xff]   ;;  %v2255_v28 = vld [vmem:[%s2475_s29 + $0x20] ss:$12 sps:$4 sm:$0xff]   ;;  %v2262_v29 = vld [vmem:[%s2475_s29 + $0x38] ss:$12 sps:$4 sm:$0xff]  }
  0x1a   : > { %2094 = vmatpush3.bf16.msra.mxu1 %v2236_v9  ;;  %2105 = vmatprep.mubr.bf16.mxu1 %v2254_v24  ;;  %v2258_v30 = vld [vmem:[%s2475_s29 + $0x18] ss:$12 sps:$4 sm:$0xff]   ;;  %v2259_v31 = vld [vmem:[%s2475_s29 + $0x34] ss:$12 sps:$4 sm:$0xff]   ;;  %v2263_v32 = vld [vmem:[%s2475_s29 + $0x50] ss:$12 sps:$4 sm:$0xff]  }
  0x1b   : > { %2095 = vmatprep.subr.bf16.mxu1 %v2239_v12  ;;  %v2270_v33 = vld [vmem:[%s2475_s29 + $0x68] ss:$12 sps:$4 sm:$0xff]   ;;  %v2261_v34 = vld [vmem:[%s2475_s29 + $0x30] ss:$12 sps:$4 sm:$0xff]   ;;  %v2264_v35 = vld [vmem:[%s2475_s29 + $0x4c] ss:$12 sps:$4 sm:$0xff]  }
  0x1c   : > { %1936 = vmatpush3.bf16.msra.mxu0 %v2237_v10  ;;  %v2271_v36 = vld [vmem:[%s2475_s29 + $0x80] ss:$12 sps:$4 sm:$0xff]   ;;  %v2278_v37 = vld [vmem:[%s2475_s29 + $0x98] ss:$12 sps:$4 sm:$0xff]   ;;  %v2266_v38 = vld [vmem:[%s2475_s29 + $0x48] ss:$12 sps:$4 sm:$0xff]  }
  0x1d   : > { %1937 = vmatprep.subr.bf16.mxu0 %v2238_v11  ;;  %v2267_v39 = vld [vmem:[%s2475_s29 + $0x64] ss:$12 sps:$4 sm:$0xff]   ;;  %v2286_v41 = vld [vmem:[%s2475_s29 + $0xc8] ss:$12 sps:$4 sm:$0xff]   ;;  %v2269_v42 = vld [vmem:[%s2475_s29 + $0x60] ss:$12 sps:$4 sm:$0xff]  }
  0x1e   : > { %2096 = vmatpush3.bf16.msra.mxu1 %v2239_v12  ;;  %v2279_v40 = vld [vmem:[%s2475_s29 + $0xb0] ss:$12 sps:$4 sm:$0xff]   ;;  %v2287_v45 = vld [vmem:[%s2475_s29 + $0xe0] ss:$12 sps:$4 sm:$0xff]   ;;  %v2294_v47 = vld [vmem:[%s2475_s29 + $0xf8] ss:$12 sps:$4 sm:$0xff]  }
  0x1f   : > { %2097 = vmatprep.subr.bf16.mxu1 %v2242_v14  ;;  %v2272_v43 = vld [vmem:[%s2475_s29 + $0x7c] ss:$12 sps:$4 sm:$0xff]   ;;  %v2274_v48 = vld [vmem:[%s2475_s29 + $0x78] ss:$12 sps:$4 sm:$0xff]   ;;  %v2275_v49 = vld [vmem:[%s2475_s29 + $0x94] ss:$12 sps:$4 sm:$0xff]  }
  0x20   : > { %1938 = vmatpush3.bf16.msra.mxu0 %v2240_v13  ;;  %v2295_v50 = vld [vmem:[%s2475_s29 + $0x110] ss:$12 sps:$4 sm:$0xff]   ;;  %v2302_v51 = vld [vmem:[%s2475_s29 + $0x128] ss:$12 sps:$4 sm:$0xff]   ;;  %v2280_v53 = vld [vmem:[%s2475_s29 + $0xac] ss:$12 sps:$4 sm:$0xff]  }
  0x21   : > { %1939 = vmatprep.subr.bf16.mxu0 %v2241_v15  ;;  %v2277_v52 = vld [vmem:[%s2475_s29 + $0x90] ss:$12 sps:$4 sm:$0xff]   ;;  %v2303_v54 = vld [vmem:[%s2475_s29 + $0x140] ss:$12 sps:$4 sm:$0xff]   ;;  %v2310_v55 = vld [vmem:[%s2475_s29 + $0x158] ss:$12 sps:$4 sm:$0xff]  }
  0x22   : > { %2098 = vmatpush3.bf16.msra.mxu1 %v2242_v14  ;;  %v2282_v56 = vld [vmem:[%s2475_s29 + $0xa8] ss:$12 sps:$4 sm:$0xff]   ;;  %v2283_v57 = vld [vmem:[%s2475_s29 + $0xc4] ss:$12 sps:$4 sm:$0xff]   ;;  %v2285_v59 = vld [vmem:[%s2475_s29 + $0xc0] ss:$12 sps:$4 sm:$0xff]  }
  0x23   : > { %2099 = vmatprep.subr.bf16.mxu1 %v2245_v17  ;;  %v2311_v58 = vld [vmem:[%s2475_s29 + $0x170] ss:$12 sps:$4 sm:$0xff]   ;;  %v2290_v62 = vld [vmem:[%s2475_s29 + $0xd8] ss:$12 sps:$4 sm:$0xff]   ;;  %v2291_v63 = vld [vmem:[%s2475_s29 + $0xf4] ss:$12 sps:$4 sm:$0xff]  }
  0x24   : > { %1940 = vmatpush3.bf16.msra.mxu0 %v2243_v16  ;;  %v2288_v60 = vld [vmem:[%s2475_s29 + $0xdc] ss:$12 sps:$4 sm:$0xff]   ;;  %v2296_v3 = vld [vmem:[%s2475_s29 + $0x10c] ss:$12 sps:$4 sm:$0xff]   ;;  %v2299_v7 = vld [vmem:[%s2475_s29 + $0x124] ss:$12 sps:$4 sm:$0xff]  }
  0x25   : > { %1941 = vmatprep.subr.bf16.mxu0 %v2244_v18  ;;  %v2293_v2 = vld [vmem:[%s2475_s29 + $0xf0] ss:$12 sps:$4 sm:$0xff]   ;;  %v2321_v5 = vld [vmem:[%s2503_s9 + $0x8] sm:$0xff]   ;;  %v2322_v8 = vld [vmem:[%s2503_s9] sm:$0xff]  }
  0x26   : > { %2100 = vmatpush3.bf16.msra.mxu1 %v2245_v17  ;;  %v2298_v6 = vld [vmem:[%s2475_s29 + $0x108] ss:$12 sps:$4 sm:$0xff]   ;;  %v2301_v9 = vld [vmem:[%s2475_s29 + $0x120] ss:$12 sps:$4 sm:$0xff]   ;;  %v2306_v11 = vld [vmem:[%s2475_s29 + $0x138] ss:$12 sps:$4 sm:$0xff]  }
  0x27   : > { %2101 = vmatprep.subr.bf16.mxu1 %v2248_v21  ;;  %v2304_v10 = vld [vmem:[%s2475_s29 + $0x13c] ss:$12 sps:$4 sm:$0xff]   ;;  %v2307_v12 = vld [vmem:[%s2475_s29 + $0x154] ss:$12 sps:$4 sm:$0xff]   ;;  %v2312_v14 = vld [vmem:[%s2475_s29 + $0x16c] ss:$12 sps:$4 sm:$0xff]  }
  0x28   : > { %1942 = vmatpush3.bf16.msra.mxu0 %v2246_v19  ;;  %v2309_v13 = vld [vmem:[%s2475_s29 + $0x150] ss:$12 sps:$4 sm:$0xff]   ;;  %v2314_v15 = vld [vmem:[%s2475_s29 + $0x168] ss:$12 sps:$4 sm:$0xff]   ;;  %v2547_v18 = vld [vmem:[%s422_s13] ss:$0 sm:$0xff] }
  0x29   : > { %1943 = vmatprep.subr.bf16.mxu0 %v2247_v20 }
  0x2a   : > { %2102 = vmatpush3.bf16.msra.mxu1 %v2248_v21 }
  0x2b   : > { %2103 = vmatprep.subr.bf16.mxu1 %v2253_v25 }
  0x2c   : > { %1944 = vmatpush3.bf16.msra.mxu0 %v2249_v23 }
  0x2e   : > { %2104 = vmatpush3.bf16.msra.mxu1 %v2253_v25 }
  0x2f   : > { %863 = vmatmul.mubr.bf16.vlgmr.msra.gmra.mxu0 %v2250_v26  ;;  %2137 = vmatprep.subr.bf16.mxu1 %v2315_v44 }
  0x30   : > { %870 = vmatprep.mubr.bf16.mxu0 %v2256_v27 }
  0x31   : > { %2106 = vmatmul.mubr.bf16.vlgmr.msra.gmra.mxu1 %v2255_v28 }
  0x32   : > { %2109 = vmatprep.mubr.bf16.mxu1 %v2262_v29  ;;  %2138 = vmatpush3.bf16.msra.mxu1 %v2315_v44 }
  0x33   : > { %2139 = vmatprep.subr.bf16.mxu1 %v2316_v46 }
  0x36   : > { %2140 = vmatpush3.bf16.msra.mxu1 %v2316_v46 }
  0x37   : > { %871 = vmatmul.mubr.bf16.gmra.mxu0 %v2258_v30  ;;  %2141 = vmatprep.subr.bf16.mxu1 %v2317_v61 }
  0x38   : > { %878 = vmatprep.mubr.bf16.mxu0 %v2259_v31 }
  0x39   : > { %2110 = vmatmul.mubr.bf16.gmra.mxu1 %v2263_v32 }
  0x3a   : > { %2113 = vmatprep.mubr.bf16.mxu1 %v2270_v33  ;;  %2142 = vmatpush3.bf16.msra.mxu1 %v2317_v61 }
  0x3b   : > { %2143 = vmatprep.subr.bf16.mxu1 %v2318_v0 }
  0x3e   : > { %2144 = vmatpush3.bf16.msra.mxu1 %v2318_v0 }
  0x3f   : > { %879 = vmatmul.mubr.bf16.gmra.mxu0 %v2261_v34  ;;  %2145 = vmatprep.subr.bf16.mxu1 %v2319_v1 }
  0x40   : > { %886 = vmatprep.mubr.bf16.mxu0 %v2264_v35 }
  0x41   : > { %2114 = vmatmul.mubr.bf16.gmra.mxu1 %v2271_v36 }
  0x42   : > { %2117 = vmatprep.mubr.bf16.mxu1 %v2278_v37  ;;  %2146 = vmatpush3.bf16.msra.mxu1 %v2319_v1 }
  0x43   : > { %2147 = vmatprep.subr.bf16.mxu1 %v2320_v4 }
  0x46   : > { %2148 = vmatpush3.bf16.msra.mxu1 %v2320_v4 }
  0x47   : > { %887 = vmatmul.mubr.bf16.gmra.mxu0 %v2266_v38  ;;  %2149 = vmatprep.subr.bf16.mxu1 %v2321_v5 }
  0x48   : > { %894 = vmatprep.mubr.bf16.mxu0 %v2267_v39 }
  0x49   : > { %2118 = vmatmul.mubr.bf16.gmra.mxu1 %v2279_v40 }
  0x4a   : > { %2121 = vmatprep.mubr.bf16.mxu1 %v2286_v41  ;;  %2150 = vmatpush3.bf16.msra.mxu1 %v2321_v5 }
  0x4b   : > { %2151 = vmatprep.subr.bf16.mxu1 %v2322_v8 }
  0x4e   : > { %2152 = vmatpush3.bf16.msra.mxu1 %v2322_v8 }
  0x4f   : > { %895 = vmatmul.mubr.bf16.gmra.mxu0 %v2269_v42 }
  0x50   : > { %902 = vmatprep.mubr.bf16.mxu0 %v2272_v43 }
  0x51   : > { %2122 = vmatmul.mubr.bf16.gmra.mxu1 %v2287_v45 }
  0x52   : > { %2125 = vmatprep.mubr.bf16.mxu1 %v2294_v47 }
  0x57   : > { %903 = vmatmul.mubr.bf16.gmra.mxu0 %v2274_v48 }
  0x58   : > { %910 = vmatprep.mubr.bf16.mxu0 %v2275_v49 }
  0x59   : > { %2126 = vmatmul.mubr.bf16.gmra.mxu1 %v2295_v50 }
  0x5a   : > { %2129 = vmatprep.mubr.bf16.mxu1 %v2302_v51 }
  0x5f   : > { %911 = vmatmul.mubr.bf16.gmra.mxu0 %v2277_v52 }
  0x60   : > { %918 = vmatprep.mubr.bf16.mxu0 %v2280_v53 }
  0x61   : > { %2130 = vmatmul.mubr.bf16.gmra.mxu1 %v2303_v54 }
  0x62   : > { %2133 = vmatprep.mubr.bf16.mxu1 %v2310_v55 }
  0x67   : > { %919 = vmatmul.mubr.bf16.gmra.mxu0 %v2282_v56 }
  0x68   : > { %926 = vmatprep.mubr.bf16.mxu0 %v2283_v57 }
  0x69   : > { %2134 = vmatmul.mubr.bf16.gmra.mxu1 %v2311_v58 }
  0x6f   : > { %927 = vmatmul.mubr.bf16.gmra.mxu0 %v2285_v59 }
  0x70   : > { %934 = vmatprep.mubr.bf16.mxu0 %v2288_v60 }
  0x77   : > { %935 = vmatmul.mubr.bf16.gmra.mxu0 %v2290_v62 }
  0x78   : > { %942 = vmatprep.mubr.bf16.mxu0 %v2291_v63 }
  0x7f   : > { %943 = vmatmul.mubr.bf16.gmra.mxu0 %v2293_v2 }
  0x80   : > { %950 = vmatprep.mubr.bf16.mxu0 %v2296_v3 }
  0x87   : > { %951 = vmatmul.mubr.bf16.gmra.mxu0 %v2298_v6 }
  0x88   : > { %958 = vmatprep.mubr.bf16.mxu0 %v2299_v7 }
  0x8f   : > { %959 = vmatmul.mubr.bf16.gmra.mxu0 %v2301_v9 }
  0x90   : > { %966 = vmatprep.mubr.bf16.mxu0 %v2304_v10 }
  0x97   : > { %967 = vmatmul.mubr.bf16.gmra.mxu0 %v2306_v11 }
  0x98   : > { %974 = vmatprep.mubr.bf16.mxu0 %v2307_v12 }
  0x9f   : > { %975 = vmatmul.mubr.bf16.gmra.mxu0 %v2309_v13 }
  0xa0   : > { %982 = vmatprep.mubr.bf16.mxu0 %v2312_v14 }
  0xa7   : > { %983 = vmatmul.mubr.bf16.gmra.mxu0 %v2314_v15 }
  0xef   : > { %v1945_v16 = vpop.f32.mrf.mxu0 }
  0xf1   : > { %v1946_v17 = vpop.f32.mrf.mxu0  ;;  %v2107_v20 = vpop.f32.mrf.mxu1 }
  0xf2   : > { %v1947_v19 = vadd.f32 %v1946_v17, %v1945_v16 }
  0xf3   : > { %v1948_v21 = vpop.f32.mrf.mxu0  ;;  %v1025_v23 = vpop.f32.mrf.mxu1 }
  0xf4   : > { %v865_v22 = vadd.f32 %v1947_v19, %v2547_v18 }
  0xf5   : > { %v1949_v24 = vpop.f32.mrf.mxu0  ;;  %v2108_v27 = vpop.f32.mrf.mxu1 }
  0xf6   : > { %v1950_v25 = vadd.f32 %v1949_v24, %v1948_v21  ;;  %v1026_v26 = vadd.f32 %v1025_v23, %v865_v22 }
  0xf7   : > { %v1951_v28 = vpop.f32.mrf.mxu0  ;;  %v1028_v30 = vpop.f32.mrf.mxu1 }
  0xf8   : > { %v868_v29 = vadd.f32 %v1950_v25, %v2547_v18  ;;  %v1152_v32 = vmul.f32 0.01, %v1026_v26 }
  0xf9   : > { %v1952_v31 = vpop.f32.mrf.mxu0  ;;  %v2111_v36 = vpop.f32.mrf.mxu1 }
  0xfa   : > { %v1953_v33 = vadd.f32 %v1952_v31, %v1951_v28  ;;  %v1029_v34 = vadd.f32 %v1028_v30, %v868_v29  ;;  %v1184_v40 = vmax.f32 %v1026_v26, %v1152_v32 }
  0xfb   : > { %v1954_v35 = vpop.f32.mrf.mxu0  ;;  %v1041_v45 = vpop.f32.mrf.mxu1 }
  0xfc   : > { %v873_v37 = vadd.f32 %v1953_v33, %v2547_v18  ;;  %v1153_v38 = vmul.f32 0.01, %v1029_v34 }
  0xfd   : > { %v1955_v39 = vpop.f32.mrf.mxu0  ;;  %v2112_v53 = vpop.f32.mrf.mxu1 }
  0xfe   : > { %v1034_v41 = vadd.f32 %v2107_v20, %v873_v37  ;;  %v1185_v42 = vmax.f32 %v1029_v34, %v1153_v38  ;;  %v1956_v43 = vadd.f32 %v1955_v39, %v1954_v35 }
  0xff   : > { %v1957_v44 = vpop.f32.mrf.mxu0  ;;  %v1044_v62 = vpop.f32.mrf.mxu1 }
 0x100   : > { %v876_v46 = vadd.f32 %v1956_v43, %v2547_v18  ;;  %v1216_v47 = vpack.c.bf16 %v1185_v42, %v1184_v40  ;;  %v1154_v49 = vmul.f32 0.01, %v1034_v41 }
 0x101   : > { %v1958_v48 = vpop.f32.mrf.mxu0  ;;  %v2115_v6 = vpop.f32.mrf.mxu1 }
 0x102   : > { %v1037_v50 = vadd.f32 %v2108_v27, %v876_v46  ;;  %v1959_v51 = vadd.f32 %v1958_v48, %v1957_v44  ;;  %2153 = vmatprep.mubr.bf16.mxu1 %v1216_v47  ;;  %v1186_v57 = vmax.f32 %v1034_v41, %v1154_v49 }
 0x103   : > { %v1960_v52 = vpop.f32.mrf.mxu0  ;;  %v1057_v15 = vpop.f32.mrf.mxu1 }
 0x104   : > { %v1155_v54 = vmul.f32 0.01, %v1037_v50  ;;  %v881_v55 = vadd.f32 %v1959_v51, %v2547_v18 }
 0x105   : > { %v1961_v56 = vpop.f32.mrf.mxu0  ;;  %v2116_v24 = vpop.f32.mrf.mxu1 }
 0x106   : > { %v1187_v58 = vmax.f32 %v1037_v50, %v1155_v54  ;;  %v1962_v59 = vadd.f32 %v1961_v56, %v1960_v52  ;;  %v1042_v60 = vadd.f32 %v1041_v45, %v881_v55 }
 0x107   : > { %v1963_v61 = vpop.f32.mrf.mxu0  ;;  %v1060_v33 = vpop.f32.mrf.mxu1 }
 0x108   : > { %v1217_v63 = vpack.c.bf16 %v1187_v58, %v1186_v57  ;;  %v884_v0 = vadd.f32 %v1962_v59, %v2547_v18  ;;  %v1156_v2 = vmul.f32 0.01, %v1042_v60 }
 0x109   : > { %v1964_v1 = vpop.f32.mrf.mxu0  ;;  %v2119_v41 = vpop.f32.mrf.mxu1 }
 0x10a   : > { %v1965_v3 = vadd.f32 %v1964_v1, %v1963_v61  ;;  %v1045_v4 = vadd.f32 %v1044_v62, %v884_v0  ;;  %2154 = vmatmul.mubr.bf16.vlgmr.msra.gmra.mxu1 %v1217_v63  ;;  %v1188_v10 = vmax.f32 %v1042_v60, %v1156_v2 }
 0x10b   : > { %v1966_v5 = vpop.f32.mrf.mxu0  ;;  %v1073_v50 = vpop.f32.mrf.mxu1 }
 0x10c   : > { %v889_v7 = vadd.f32 %v1965_v3, %v2547_v18  ;;  %v1157_v8 = vmul.f32 0.01, %v1045_v4 }
 0x10d   : > { %v1967_v9 = vpop.f32.mrf.mxu0  ;;  %v2120_v58 = vpop.f32.mrf.mxu1 }
 0x10e   : > { %v1050_v11 = vadd.f32 %v2111_v36, %v889_v7  ;;  %v1189_v12 = vmax.f32 %v1045_v4, %v1157_v8  ;;  %v1968_v13 = vadd.f32 %v1967_v9, %v1966_v5 }
 0x10f   : > { %v1969_v14 = vpop.f32.mrf.mxu0  ;;  %v1076_v3 = vpop.f32.mrf.mxu1 }
 0x110   : > { %v892_v16 = vadd.f32 %v1968_v13, %v2547_v18  ;;  %v1218_v17 = vpack.c.bf16 %v1189_v12, %v1188_v10  ;;  %v1158_v20 = vmul.f32 0.01, %v1050_v11 }
 0x111   : > { %v1970_v19 = vpop.f32.mrf.mxu0 }
 0x112   : > { %v1053_v21 = vadd.f32 %v2112_v53, %v892_v16  ;;  %v1971_v22 = vadd.f32 %v1970_v19, %v1969_v14  ;;  %2157 = vmatprep.mubr.bf16.mxu1 %v1218_v17  ;;  %v1190_v30 = vmax.f32 %v1050_v11, %v1158_v20  ;;  %v2123_v11 = vpop.f32.mrf.mxu1 }
 0x113   : > { %v1972_v23 = vpop.f32.mrf.mxu0 }
 0x114   : > { %v1159_v25 = vmul.f32 0.01, %v1053_v21  ;;  %v897_v26 = vadd.f32 %v1971_v22, %v2547_v18 }
 0x115   : > { %v1973_v27 = vpop.f32.mrf.mxu0 }
 0x116   : > { %v1974_v28 = vadd.f32 %v1973_v27, %v1972_v23  ;;  %v1058_v29 = vadd.f32 %v1057_v15, %v897_v26  ;;  %v1191_v31 = vmax.f32 %v1053_v21, %v1159_v25  ;;  %v1089_v21 = vpop.f32.mrf.mxu1 }
 0x117   : > { %v1975_v32 = vpop.f32.mrf.mxu0 }
 0x118   : > { %v900_v34 = vadd.f32 %v1974_v28, %v2547_v18  ;;  %v1219_v35 = vpack.c.bf16 %v1191_v31, %v1190_v30  ;;  %v1160_v37 = vmul.f32 0.01, %v1058_v29 }
 0x119   : > { %v1976_v36 = vpop.f32.mrf.mxu0 }
 0x11a   : > { %v1977_v38 = vadd.f32 %v1976_v36, %v1975_v32  ;;  %v1061_v39 = vadd.f32 %v1060_v33, %v900_v34  ;;  %2158 = vmatmul.mubr.bf16.gmra.mxu1 %v1219_v35  ;;  %v1192_v45 = vmax.f32 %v1058_v29, %v1160_v37  ;;  %v2124_v29 = vpop.f32.mrf.mxu1 }
 0x11b   : > { %v1978_v40 = vpop.f32.mrf.mxu0 }
 0x11c   : > { %v905_v42 = vadd.f32 %v1977_v38, %v2547_v18  ;;  %v1161_v43 = vmul.f32 0.01, %v1061_v39  ;;  %v1092_v38 = vpop.f32.mrf.mxu1 }
 0x11d   : > { %v1979_v44 = vpop.f32.mrf.mxu0 }
 0x11e   : > { %v1066_v46 = vadd.f32 %v2115_v6, %v905_v42  ;;  %v1193_v47 = vmax.f32 %v1061_v39, %v1161_v43  ;;  %v1980_v48 = vadd.f32 %v1979_v44, %v1978_v40 }
 0x11f   : > { %v1981_v49 = vpop.f32.mrf.mxu0 }
 0x120   : > { %v908_v51 = vadd.f32 %v1980_v48, %v2547_v18  ;;  %v1220_v52 = vpack.c.bf16 %v1193_v47, %v1192_v45  ;;  %v1162_v54 = vmul.f32 0.01, %v1066_v46 }
 0x121   : > { %v1982_v53 = vpop.f32.mrf.mxu0 }
 0x122   : > { %v1069_v55 = vadd.f32 %v2116_v24, %v908_v51  ;;  %v1983_v56 = vadd.f32 %v1982_v53, %v1981_v49  ;;  %2161 = vmatprep.mubr.bf16.mxu1 %v1220_v52  ;;  %v1194_v0 = vmax.f32 %v1066_v46, %v1162_v54  ;;  %v2127_v46 = vpop.f32.mrf.mxu1 }
 0x123   : > { %v1984_v57 = vpop.f32.mrf.mxu0 }
 0x124   : > { %v1163_v59 = vmul.f32 0.01, %v1069_v55  ;;  %v913_v60 = vadd.f32 %v1983_v56, %v2547_v18 }
 0x125   : > { %v1985_v61 = vpop.f32.mrf.mxu0 }
 0x126   : > { %v1986_v62 = vadd.f32 %v1985_v61, %v1984_v57  ;;  %v1074_v63 = vadd.f32 %v1073_v50, %v913_v60  ;;  %v1195_v1 = vmax.f32 %v1069_v55, %v1163_v59  ;;  %v1105_v55 = vpop.f32.mrf.mxu1 }
 0x127   : > { %v1987_v2 = vpop.f32.mrf.mxu0 }
 0x128   : > { %v916_v4 = vadd.f32 %v1986_v62, %v2547_v18  ;;  %v1221_v5 = vpack.c.bf16 %v1195_v1, %v1194_v0  ;;  %v1164_v7 = vmul.f32 0.01, %v1074_v63 }
 0x129   : > { %v1988_v6 = vpop.f32.mrf.mxu0 }
 0x12a   : > { %v1989_v8 = vadd.f32 %v1988_v6, %v1987_v2  ;;  %v1077_v9 = vadd.f32 %v1076_v3, %v916_v4  ;;  %2162 = vmatmul.mubr.bf16.gmra.mxu1 %v1221_v5  ;;  %v1196_v15 = vmax.f32 %v1074_v63, %v1164_v7  ;;  %v2128_v63 = vpop.f32.mrf.mxu1 }
 0x12b   : > { %v1990_v10 = vpop.f32.mrf.mxu0 }
 0x12c   : > { %v921_v12 = vadd.f32 %v1989_v8, %v2547_v18  ;;  %v1165_v13 = vmul.f32 0.01, %v1077_v9  ;;  %v1108_v8 = vpop.f32.mrf.mxu1 }
 0x12d   : > { %v1991_v14 = vpop.f32.mrf.mxu0 }
 0x12e   : > { %v1082_v16 = vadd.f32 %v2119_v41, %v921_v12  ;;  %v1197_v17 = vmax.f32 %v1077_v9, %v1165_v13  ;;  %v1992_v19 = vadd.f32 %v1991_v14, %v1990_v10 }
 0x12f   : > { %v1993_v20 = vpop.f32.mrf.mxu0 }
 0x130   : > { %v924_v22 = vadd.f32 %v1992_v19, %v2547_v18  ;;  %v1222_v23 = vpack.c.bf16 %v1197_v17, %v1196_v15  ;;  %v1166_v25 = vmul.f32 0.01, %v1082_v16 }
 0x131   : > { %v1994_v24 = vpop.f32.mrf.mxu0 }
 0x132   : > { %v1085_v26 = vadd.f32 %v2120_v58, %v924_v22  ;;  %v1995_v27 = vadd.f32 %v1994_v24, %v1993_v20  ;;  %2165 = vmatprep.mubr.bf16.mxu1 %v1222_v23  ;;  %v1198_v35 = vmax.f32 %v1082_v16, %v1166_v25  ;;  %v2131_v16 = vpop.f32.mrf.mxu1 }
 0x133   : > { %v1996_v28 = vpop.f32.mrf.mxu0 }
 0x134   : > { %v1167_v30 = vmul.f32 0.01, %v1085_v26  ;;  %v929_v31 = vadd.f32 %v1995_v27, %v2547_v18 }
 0x135   : > { %v1997_v32 = vpop.f32.mrf.mxu0 }
 0x136   : > { %v1998_v33 = vadd.f32 %v1997_v32, %v1996_v28  ;;  %v1090_v34 = vadd.f32 %v1089_v21, %v929_v31  ;;  %v1199_v36 = vmax.f32 %v1085_v26, %v1167_v30  ;;  %v1121_v26 = vpop.f32.mrf.mxu1 }
 0x137   : > { %v1999_v37 = vpop.f32.mrf.mxu0 }
 0x138   : > { %v932_v39 = vadd.f32 %v1998_v33, %v2547_v18  ;;  %v1223_v40 = vpack.c.bf16 %v1199_v36, %v1198_v35  ;;  %v1168_v42 = vmul.f32 0.01, %v1090_v34 }
 0x139   : > { %v2000_v41 = vpop.f32.mrf.mxu0 }
 0x13a   : > { %v2001_v43 = vadd.f32 %v2000_v41, %v1999_v37  ;;  %v1093_v44 = vadd.f32 %v1092_v38, %v932_v39  ;;  %2166 = vmatmul.mubr.bf16.gmra.mxu1 %v1223_v40  ;;  %v1200_v50 = vmax.f32 %v1090_v34, %v1168_v42  ;;  %v2132_v34 = vpop.f32.mrf.mxu1 }
 0x13b   : > { %v2002_v45 = vpop.f32.mrf.mxu0 }
 0x13c   : > { %v937_v47 = vadd.f32 %v2001_v43, %v2547_v18  ;;  %v1169_v48 = vmul.f32 0.01, %v1093_v44  ;;  %v1124_v43 = vpop.f32.mrf.mxu1 }
 0x13d   : > { %v2003_v49 = vpop.f32.mrf.mxu0 }
 0x13e   : > { %v1098_v51 = vadd.f32 %v2123_v11, %v937_v47  ;;  %v1201_v52 = vmax.f32 %v1093_v44, %v1169_v48  ;;  %v2004_v53 = vadd.f32 %v2003_v49, %v2002_v45 }
 0x13f   : > { %v2005_v54 = vpop.f32.mrf.mxu0 }
 0x140   : > { %v940_v56 = vadd.f32 %v2004_v53, %v2547_v18  ;;  %v1224_v57 = vpack.c.bf16 %v1201_v52, %v1200_v50  ;;  %v1170_v59 = vmul.f32 0.01, %v1098_v51 }
 0x141   : > { %v2006_v58 = vpop.f32.mrf.mxu0 }
 0x142   : > { %v1101_v60 = vadd.f32 %v2124_v29, %v940_v56  ;;  %v2007_v61 = vadd.f32 %v2006_v58, %v2005_v54  ;;  %2169 = vmatprep.mubr.bf16.mxu1 %v1224_v57  ;;  %v1202_v5 = vmax.f32 %v1098_v51, %v1170_v59  ;;  %v2135_v51 = vpop.f32.mrf.mxu1 }
 0x143   : > { %v2008_v62 = vpop.f32.mrf.mxu0 }
 0x144   : > { %v1171_v0 = vmul.f32 0.01, %v1101_v60  ;;  %v945_v1 = vadd.f32 %v2007_v61, %v2547_v18 }
 0x145   : > { %v2009_v2 = vpop.f32.mrf.mxu0 }
 0x146   : > { %v2010_v3 = vadd.f32 %v2009_v2, %v2008_v62  ;;  %v1106_v4 = vadd.f32 %v1105_v55, %v945_v1  ;;  %v1203_v6 = vmax.f32 %v1101_v60, %v1171_v0  ;;  %v1137_v60 = vpop.f32.mrf.mxu1 }
 0x147   : > { %v2011_v7 = vpop.f32.mrf.mxu0 }
 0x148   : > { %v948_v9 = vadd.f32 %v2010_v3, %v2547_v18  ;;  %v1225_v10 = vpack.c.bf16 %v1203_v6, %v1202_v5  ;;  %v1172_v12 = vmul.f32 0.01, %v1106_v4 }
 0x149   : > { %v2012_v11 = vpop.f32.mrf.mxu0 }
 0x14a   : > { %v2013_v13 = vadd.f32 %v2012_v11, %v2011_v7  ;;  %v1109_v14 = vadd.f32 %v1108_v8, %v948_v9  ;;  %2170 = vmatmul.mubr.bf16.gmra.mxu1 %v1225_v10  ;;  %v1204_v21 = vmax.f32 %v1106_v4, %v1172_v12  ;;  %v2136_v4 = vpop.f32.mrf.mxu1 }
 0x14b   : > { %v2014_v15 = vpop.f32.mrf.mxu0 }
 0x14c   : > { %v953_v17 = vadd.f32 %v2013_v13, %v2547_v18  ;;  %v1173_v19 = vmul.f32 0.01, %v1109_v14  ;;  %v1140_v13 = vpop.f32.mrf.mxu1 }
 0x14d   : > { %v2015_v20 = vpop.f32.mrf.mxu0 }
 0x14e   : > { %v1114_v22 = vadd.f32 %v2127_v46, %v953_v17  ;;  %v1205_v23 = vmax.f32 %v1109_v14, %v1173_v19  ;;  %v2016_v24 = vadd.f32 %v2015_v20, %v2014_v15 }
 0x14f   : > { %v2017_v25 = vpop.f32.mrf.mxu0 }
 0x150   : > { %v956_v27 = vadd.f32 %v2016_v24, %v2547_v18  ;;  %v1226_v28 = vpack.c.bf16 %v1205_v23, %v1204_v21  ;;  %v1174_v30 = vmul.f32 0.01, %v1114_v22 }
 0x151   : > { %v2018_v29 = vpop.f32.mrf.mxu0 }
 0x152   : > { %v1117_v31 = vadd.f32 %v2128_v63, %v956_v27  ;;  %v2019_v32 = vadd.f32 %v2018_v29, %v2017_v25  ;;  %2173 = vmatprep.mubr.bf16.mxu1 %v1226_v28  ;;  %v1206_v40 = vmax.f32 %v1114_v22, %v1174_v30 }
 0x153   : > { %v2020_v33 = vpop.f32.mrf.mxu0 }
 0x154   : > { %v1175_v35 = vmul.f32 0.01, %v1117_v31  ;;  %v961_v36 = vadd.f32 %v2019_v32, %v2547_v18 }
 0x155   : > { %v2021_v37 = vpop.f32.mrf.mxu0 }
 0x156   : > { %v2022_v38 = vadd.f32 %v2021_v37, %v2020_v33  ;;  %v1122_v39 = vadd.f32 %v1121_v26, %v961_v36  ;;  %v1207_v41 = vmax.f32 %v1117_v31, %v1175_v35  ;;  %v2585_v37 = vld [vmem:[%s1251_s17] ss:$0 sm:$0xff] }
 0x157   : > { %v2023_v42 = vpop.f32.mrf.mxu0 }
 0x158   : > { %v964_v44 = vadd.f32 %v2022_v38, %v2547_v18  ;;  %v1227_v45 = vpack.c.bf16 %v1207_v41, %v1206_v40  ;;  %v1176_v47 = vmul.f32 0.01, %v1122_v39 }
 0x159   : > { %v2024_v46 = vpop.f32.mrf.mxu0 }
 0x15a   : > { %v2025_v48 = vadd.f32 %v2024_v46, %v2023_v42  ;;  %v1125_v49 = vadd.f32 %v1124_v43, %v964_v44  ;;  %2174 = vmatmul.mubr.bf16.gmra.mxu1 %v1227_v45  ;;  %v1208_v55 = vmax.f32 %v1122_v39, %v1176_v47 }
 0x15b   : > { %v2026_v50 = vpop.f32.mrf.mxu0 }
 0x15c   : > { %v969_v52 = vadd.f32 %v2025_v48, %v2547_v18  ;;  %v1177_v53 = vmul.f32 0.01, %v1125_v49 }
 0x15d   : > { %v2027_v54 = vpop.f32.mrf.mxu0 }
 0x15e   : > { %v1130_v56 = vadd.f32 %v2131_v16, %v969_v52  ;;  %v1209_v57 = vmax.f32 %v1125_v49, %v1177_v53  ;;  %v2028_v58 = vadd.f32 %v2027_v54, %v2026_v50 }
 0x15f   : > { %v2029_v59 = vpop.f32.mrf.mxu0 }
 0x160   : > { %v972_v61 = vadd.f32 %v2028_v58, %v2547_v18  ;;  %v1228_v62 = vpack.c.bf16 %v1209_v57, %v1208_v55  ;;  %v1178_v0 = vmul.f32 0.01, %v1130_v56 }
 0x161   : > { %v2030_v63 = vpop.f32.mrf.mxu0 }
 0x162   : > { %v1133_v1 = vadd.f32 %v2132_v34, %v972_v61  ;;  %v2031_v2 = vadd.f32 %v2030_v63, %v2029_v59  ;;  %2177 = vmatprep.mubr.bf16.mxu1 %v1228_v62  ;;  %v1210_v10 = vmax.f32 %v1130_v56, %v1178_v0 }
 0x163   : > { %v2032_v3 = vpop.f32.mrf.mxu0 }
 0x164   : > { %v1179_v5 = vmul.f32 0.01, %v1133_v1  ;;  %v977_v6 = vadd.f32 %v2031_v2, %v2547_v18 }
 0x165   : > { %v2033_v7 = vpop.f32.mrf.mxu0 }
 0x166   : > { %v2034_v8 = vadd.f32 %v2033_v7, %v2032_v3  ;;  %v1138_v9 = vadd.f32 %v1137_v60, %v977_v6  ;;  %v1211_v11 = vmax.f32 %v1133_v1, %v1179_v5 }
 0x167   : > { %v2035_v12 = vpop.f32.mrf.mxu0 }
 0x168   : > { %v980_v14 = vadd.f32 %v2034_v8, %v2547_v18  ;;  %v1229_v15 = vpack.c.bf16 %v1211_v11, %v1210_v10  ;;  %v1180_v17 = vmul.f32 0.01, %v1138_v9 }
 0x169   : > { %v2036_v16 = vpop.f32.mrf.mxu0 }
 0x16a   : > { %v2037_v19 = vadd.f32 %v2036_v16, %v2035_v12  ;;  %v1141_v20 = vadd.f32 %v1140_v13, %v980_v14  ;;  %2178 = vmatmul.mubr.bf16.gmra.mxu1 %v1229_v15  ;;  %v1212_v25 = vmax.f32 %v1138_v9, %v1180_v17 }
 0x16b   : > { %v2038_v21 = vpop.f32.mrf.mxu0 }
 0x16c   : > { %v985_v22 = vadd.f32 %v2037_v19, %v2547_v18  ;;  %v1181_v23 = vmul.f32 0.01, %v1141_v20 }
 0x16d   : > { %v2039_v24 = vpop.f32.mrf.mxu0 }
 0x16e   : > { %v1146_v26 = vadd.f32 %v2135_v51, %v985_v22  ;;  %v1213_v27 = vmax.f32 %v1141_v20, %v1181_v23  ;;  %v2040_v28 = vadd.f32 %v2039_v24, %v2038_v21 }
 0x170   : > { %v988_v29 = vadd.f32 %v2040_v28, %v2547_v18  ;;  %v1230_v30 = vpack.c.bf16 %v1213_v27, %v1212_v25  ;;  %v1182_v31 = vmul.f32 0.01, %v1146_v26 }
 0x172   : > { %v1149_v32 = vadd.f32 %v2136_v4, %v988_v29  ;;  %2181 = vmatprep.mubr.bf16.mxu1 %v1230_v30  ;;  %v1214_v34 = vmax.f32 %v1146_v26, %v1182_v31 }
 0x174   : > { %v1183_v33 = vmul.f32 0.01, %v1149_v32 }
 0x176   : > { %v1215_v35 = vmax.f32 %v1149_v32, %v1183_v33 }
 0x178   : > { %v1231_v36 = vpack.c.bf16 %v1215_v35, %v1214_v34 }
 0x17a   : > { %2182 = vmatmul.mubr.bf16.gmra.mxu1 %v1231_v36 }
 0x1ca   : > { %v2155_v38 = vpop.f32.mrf.mxu1 }
 0x1cb   : > { %v1350_v39 = vadd.f32 %v2155_v38, %v2585_v37 }
 0x1cc   : > { %v1341_v40 = vpop.f32.mrf.mxu1 }
 0x1cd   : > { %v1470_v18 = vmul.f32 0.01, %v1350_v39  ;;  %v1342_v41 = vadd.f32 %v2585_v37, %v1341_v40 }
 0x1ce   : > { %v2156_v42 = vpop.f32.mrf.mxu1 }
 0x1cf   : > { %v2589_v43 = vmax.f32 %v1350_v39, %v1470_v18  ;;  %v1468_v44 = vmul.f32 0.01, %v1342_v41  ;;  %v1353_v45 = vadd.f32 %v2156_v42, %v2585_v37 }
 0x1d0   : > { %v1344_v46 = vpop.f32.mrf.mxu1 }
 0x1d1   : > { %v2592_v47 = vmax.f32 %v1342_v41, %v1468_v44  ;;  %v1471_v48 = vmul.f32 0.01, %v1353_v45  ;;  %v1345_v49 = vadd.f32 %v2585_v37, %v1344_v46 }
 0x1d3   : > { %v2595_v50 = vmax.f32 %v1353_v45, %v1471_v48  ;;  %v1469_v51 = vmul.f32 0.01, %v1345_v49 }
 0x1d5   : > { %v2597_v52 = vmax.f32 %v1345_v49, %v1469_v51 }
 0x1da   : > { %v2159_v53 = vpop.f32.mrf.mxu1 }
 0x1db   : > { %v1366_v54 = vadd.f32 %v2159_v53, %v2585_v37 }
 0x1dc   : > { %v1357_v55 = vpop.f32.mrf.mxu1 }
 0x1dd   : > { %v1474_v56 = vmul.f32 0.01, %v1366_v54  ;;  %v1358_v57 = vadd.f32 %v2585_v37, %v1357_v55 }
 0x1de   : > { %v2160_v58 = vpop.f32.mrf.mxu1 }
 0x1df   : > { %v2601_v59 = vmax.f32 %v1366_v54, %v1474_v56  ;;  %v1472_v60 = vmul.f32 0.01, %v1358_v57  ;;  %v1369_v61 = vadd.f32 %v2160_v58, %v2585_v37 }
 0x1e0   : > { %v1360_v62 = vpop.f32.mrf.mxu1 }
 0x1e1   : > { %v2604_v63 = vmax.f32 %v1358_v57, %v1472_v60  ;;  %v1475_v0 = vmul.f32 0.01, %v1369_v61  ;;  %v1361_v1 = vadd.f32 %v2585_v37, %v1360_v62 }
 0x1e3   : > { %v2607_v2 = vmax.f32 %v1369_v61, %v1475_v0  ;;  %v1473_v3 = vmul.f32 0.01, %v1361_v1 }
 0x1e5   : > { %v2609_v4 = vmax.f32 %v1361_v1, %v1473_v3 }
 0x1ea   : > { %v2163_v5 = vpop.f32.mrf.mxu1 }
 0x1eb   : > { %v1382_v6 = vadd.f32 %v2163_v5, %v2585_v37 }
 0x1ec   : > { %v1373_v7 = vpop.f32.mrf.mxu1 }
 0x1ed   : > { %v1478_v8 = vmul.f32 0.01, %v1382_v6  ;;  %v1374_v9 = vadd.f32 %v2585_v37, %v1373_v7 }
 0x1ee   : > { %v2164_v10 = vpop.f32.mrf.mxu1 }
 0x1ef   : > { %v2613_v11 = vmax.f32 %v1382_v6, %v1478_v8  ;;  %v1476_v12 = vmul.f32 0.01, %v1374_v9  ;;  %v1385_v13 = vadd.f32 %v2164_v10, %v2585_v37 }
 0x1f0   : > { %v1376_v14 = vpop.f32.mrf.mxu1 }
 0x1f1   : > { %v2616_v15 = vmax.f32 %v1374_v9, %v1476_v12  ;;  %v1479_v16 = vmul.f32 0.01, %v1385_v13  ;;  %v1377_v17 = vadd.f32 %v2585_v37, %v1376_v14 }
 0x1f3   : > { %v2619_v19 = vmax.f32 %v1385_v13, %v1479_v16  ;;  %v1477_v20 = vmul.f32 0.01, %v1377_v17 }
 0x1f5   : > { %v2621_v21 = vmax.f32 %v1377_v17, %v1477_v20 }
 0x1fa   : > { %v2167_v22 = vpop.f32.mrf.mxu1 }
 0x1fb   : > { %v1398_v23 = vadd.f32 %v2167_v22, %v2585_v37 }
 0x1fc   : > { %v1389_v24 = vpop.f32.mrf.mxu1 }
 0x1fd   : > { %v1482_v25 = vmul.f32 0.01, %v1398_v23  ;;  %v1390_v26 = vadd.f32 %v2585_v37, %v1389_v24 }
 0x1fe   : > { %v2168_v27 = vpop.f32.mrf.mxu1 }
 0x1ff   : > { %v2625_v28 = vmax.f32 %v1398_v23, %v1482_v25  ;;  %v1480_v29 = vmul.f32 0.01, %v1390_v26  ;;  %v1401_v30 = vadd.f32 %v2168_v27, %v2585_v37 }
 0x200   : > { %v1392_v31 = vpop.f32.mrf.mxu1 }
 0x201   : > { %v2628_v32 = vmax.f32 %v1390_v26, %v1480_v29  ;;  %v1483_v33 = vmul.f32 0.01, %v1401_v30  ;;  %v1393_v34 = vadd.f32 %v2585_v37, %v1392_v31 }
 0x203   : > { %v2631_v35 = vmax.f32 %v1401_v30, %v1483_v33  ;;  %v1481_v36 = vmul.f32 0.01, %v1393_v34 }
 0x205   : > { %v2633_v38 = vmax.f32 %v1393_v34, %v1481_v36 }
 0x20a   : > { %v2171_v39 = vpop.f32.mrf.mxu1 }
 0x20b   : > { %v1414_v40 = vadd.f32 %v2171_v39, %v2585_v37 }
 0x20c   : > { %v1405_v18 = vpop.f32.mrf.mxu1 }
 0x20d   : > { %v1486_v41 = vmul.f32 0.01, %v1414_v40  ;;  %v1406_v42 = vadd.f32 %v2585_v37, %v1405_v18 }
 0x20e   : > { %v2172_v44 = vpop.f32.mrf.mxu1 }
 0x20f   : > { %v2637_v45 = vmax.f32 %v1414_v40, %v1486_v41  ;;  %v1484_v46 = vmul.f32 0.01, %v1406_v42  ;;  %v1417_v48 = vadd.f32 %v2172_v44, %v2585_v37 }
 0x210   : > { %v1408_v49 = vpop.f32.mrf.mxu1 }
 0x211   : > { %v2640_v51 = vmax.f32 %v1406_v42, %v1484_v46  ;;  %v1487_v53 = vmul.f32 0.01, %v1417_v48  ;;  %v1409_v54 = vadd.f32 %v2585_v37, %v1408_v49 }
 0x213   : > { %v2643_v55 = vmax.f32 %v1417_v48, %v1487_v53  ;;  %v1485_v56 = vmul.f32 0.01, %v1409_v54 }
 0x215   : > { %v2645_v57 = vmax.f32 %v1409_v54, %v1485_v56 }
 0x21a   : > { %v2175_v58 = vpop.f32.mrf.mxu1 }
 0x21b   : > { %v1430_v60 = vadd.f32 %v2175_v58, %v2585_v37 }
 0x21c   : > { %v1421_v61 = vpop.f32.mrf.mxu1 }
 0x21d   : > { %v1490_v62 = vmul.f32 0.01, %v1430_v60  ;;  %v1422_v0 = vadd.f32 %v2585_v37, %v1421_v61 }
 0x21e   : > { %v2176_v1 = vpop.f32.mrf.mxu1 }
 0x21f   : > { %v2649_v3 = vmax.f32 %v1430_v60, %v1490_v62  ;;  %v1488_v5 = vmul.f32 0.01, %v1422_v0  ;;  %v1433_v6 = vadd.f32 %v2176_v1, %v2585_v37 }
 0x220   : > { %v1424_v7 = vpop.f32.mrf.mxu1 }
 0x221   : > { %v2652_v8 = vmax.f32 %v1422_v0, %v1488_v5  ;;  %v1491_v9 = vmul.f32 0.01, %v1433_v6  ;;  %v1425_v10 = vadd.f32 %v2585_v37, %v1424_v7 }
 0x223   : > { %v2655_v12 = vmax.f32 %v1433_v6, %v1491_v9  ;;  %v1489_v13 = vmul.f32 0.01, %v1425_v10 }
 0x225   : > { %v2657_v14 = vmax.f32 %v1425_v10, %v1489_v13 }
 0x22a   : > { %v2179_v16 = vpop.f32.mrf.mxu1 }
 0x22b   : > { %v1446_v17 = vadd.f32 %v2179_v16, %v2585_v37 }
 0x22c   : > { %v1437_v20 = vpop.f32.mrf.mxu1 }
 0x22d   : > { %v1494_v22 = vmul.f32 0.01, %v1446_v17  ;;  %v1438_v23 = vadd.f32 %v2585_v37, %v1437_v20 }
 0x22e   : > { %v2180_v24 = vpop.f32.mrf.mxu1 }
 0x22f   : > { %v2661_v25 = vmax.f32 %v1446_v17, %v1494_v22  ;;  %v1492_v26 = vmul.f32 0.01, %v1438_v23  ;;  %v1449_v27 = vadd.f32 %v2180_v24, %v2585_v37 }
 0x230   : > { %v1440_v29 = vpop.f32.mrf.mxu1 }
 0x231   : > { %v2664_v30 = vmax.f32 %v1438_v23, %v1492_v26  ;;  %v1495_v31 = vmul.f32 0.01, %v1449_v27  ;;  %v1441_v33 = vadd.f32 %v2585_v37, %v1440_v29 }
 0x233   : > { %v2667_v34 = vmax.f32 %v1449_v27, %v1495_v31  ;;  %v1493_v36 = vmul.f32 0.01, %v1441_v33 }
 0x235   : > { %v2669_v39 = vmax.f32 %v1441_v33, %v1493_v36 }
 0x23a   : > { %v2183_v40 = vpop.f32.mrf.mxu1 }
 0x23b   : > { %v1462_v18 = vadd.f32 %v2183_v40, %v2585_v37 }
 0x23c   : > { %v1453_v41 = vpop.f32.mrf.mxu1 }
 0x23d   : > { %v1498_v42 = vmul.f32 0.01, %v1462_v18  ;;  %v1454_v44 = vadd.f32 %v2585_v37, %v1453_v41 }
 0x23e   : > { %v2184_v46 = vpop.f32.mrf.mxu1 }
 0x23f   : > { %v2673_v48 = vmax.f32 %v1462_v18, %v1498_v42  ;;  %v1496_v49 = vmul.f32 0.01, %v1454_v44  ;;  %v1465_v53 = vadd.f32 %v2184_v46, %v2585_v37 }
 0x240   : > { %v1456_v54 = vpop.f32.mrf.mxu1 }
 0x241   : > { %v2676_v56 = vmax.f32 %v1454_v44, %v1496_v49  ;;  %v1499_v58 = vmul.f32 0.01, %v1465_v53  ;;  %v1457_v60 = vadd.f32 %v2585_v37, %v1456_v54  ;;  %1535 = sbr.rel (%p1923_p7) target bundleno = 601 (0x259), region = 48 }
 0x243   : > { %v2679_v61 = vmax.f32 %v1465_v53, %v1499_v58  ;;  %v1497_v62 = vmul.f32 0.01, %v1457_v60 }
 0x245   : > { %v2681_v0 = vmax.f32 %v1457_v60, %v1497_v62 }
 0x246   : > { %v1536_v1 = vld [vmem:[%s2446_s12] sm:$0xff]  ;;  %v1537_v37 = vld [vmem:[%s2446_s12 + $0x8] sm:$0xff]  ;;  %v1538_v5 = vld [vmem:[%s2446_s12 + $0x10] sm:$0xff] }
 0x247   : > { %v1568_v6 = vadd.f32 %v1536_v1, %v2592_v47  ;;  %v1569_v7 = vadd.f32 %v1537_v37, %v2597_v52  ;;  %v1570_v9 = vadd.f32 %v1538_v5, %v2589_v43  ;;  %v1539_v10 = vld [vmem:[%s2446_s12 + $0x18] sm:$0xff]  ;;  %v1540_v13 = vld [vmem:[%s2446_s12 + $0x20] sm:$0xff]  ;;  %v1541_v16 = vld [vmem:[%s2446_s12 + $0x28] sm:$0xff] }
 0x248   : > { %v1571_v17 = vadd.f32 %v1539_v10, %v2595_v50  ;;  %v1572_v20 = vadd.f32 %v1540_v13, %v2604_v63  ;;  %v1573_v22 = vadd.f32 %v1541_v16, %v2609_v4  ;;  %v1542_v23 = vld [vmem:[%s2446_s12 + $0x30] sm:$0xff]  ;;  %v1543_v24 = vld [vmem:[%s2446_s12 + $0x38] sm:$0xff]  ;;  %v1544_v26 = vld [vmem:[%s2446_s12 + $0x40] sm:$0xff] }
 0x249   : > { %1600 = vst [vmem:[%s2453_s15] sm:$0xff] %v1568_v6  ;;  %1601 = vst [vmem:[%s2453_s15 + $0x8] sm:$0xff] %v1569_v7  ;;  %v1574_v27 = vadd.f32 %v1542_v23, %v2601_v59  ;;  %v1575_v29 = vadd.f32 %v1543_v24, %v2607_v2  ;;  %v1576_v31 = vadd.f32 %v1544_v26, %v2616_v15  ;;  %v1545_v33 = vld [vmem:[%s2446_s12 + $0x48] sm:$0xff]  ;;  %v1546_v36 = vld [vmem:[%s2446_s12 + $0x50] sm:$0xff] }
 0x24a   : > { %1602 = vst [vmem:[%s2453_s15 + $0x10] sm:$0xff] %v1570_v9  ;;  %v1547_v40 = vld [vmem:[%s2446_s12 + $0x58] sm:$0xff]  ;;  %1603 = vst [vmem:[%s2453_s15 + $0x18] sm:$0xff] %v1571_v17  ;;  %v1577_v18 = vadd.f32 %v1545_v33, %v2621_v21  ;;  %v1578_v41 = vadd.f32 %v1546_v36, %v2613_v11  ;;  %v1548_v44 = vld [vmem:[%s2446_s12 + $0x60] sm:$0xff] }
 0x24b   : > { %1604 = vst [vmem:[%s2453_s15 + $0x20] sm:$0xff] %v1572_v20  ;;  %1605 = vst [vmem:[%s2453_s15 + $0x28] sm:$0xff] %v1573_v22  ;;  %v1579_v42 = vadd.f32 %v1547_v40, %v2619_v19  ;;  %v1549_v46 = vld [vmem:[%s2446_s12 + $0x68] sm:$0xff]  ;;  %v1550_v49 = vld [vmem:[%s2446_s12 + $0x70] sm:$0xff]  ;;  %v1580_v53 = vadd.f32 %v1548_v44, %v2628_v32 }
 0x24c   : > { %1606 = vst [vmem:[%s2453_s15 + $0x30] sm:$0xff] %v1574_v27  ;;  %1607 = vst [vmem:[%s2453_s15 + $0x38] sm:$0xff] %v1575_v29  ;;  %v1581_v54 = vadd.f32 %v1549_v46, %v2633_v38  ;;  %v1582_v58 = vadd.f32 %v1550_v49, %v2625_v28  ;;  %v1551_v60 = vld [vmem:[%s2446_s12 + $0x78] sm:$0xff]  ;;  %v1552_v62 = vld [vmem:[%s2446_s12 + $0x80] sm:$0xff] }
 0x24d   : > { %1608 = vst [vmem:[%s2453_s15 + $0x40] sm:$0xff] %v1576_v31  ;;  %v1553_v1 = vld [vmem:[%s2446_s12 + $0x88] sm:$0xff]  ;;  %1609 = vst [vmem:[%s2453_s15 + $0x48] sm:$0xff] %v1577_v18  ;;  %v1583_v37 = vadd.f32 %v1551_v60, %v2631_v35  ;;  %v1584_v5 = vadd.f32 %v1552_v62, %v2640_v51  ;;  %v1554_v7 = vld [vmem:[%s2446_s12 + $0x90] sm:$0xff] }
 0x24e   : > { %1610 = vst [vmem:[%s2453_s15 + $0x50] sm:$0xff] %v1578_v41  ;;  %1611 = vst [vmem:[%s2453_s15 + $0x58] sm:$0xff] %v1579_v42  ;;  %v1585_v6 = vadd.f32 %v1553_v1, %v2645_v57  ;;  %v1555_v9 = vld [vmem:[%s2446_s12 + $0x98] sm:$0xff]  ;;  %v1556_v10 = vld [vmem:[%s2446_s12 + $0xa0] sm:$0xff]  ;;  %v1586_v13 = vadd.f32 %v1554_v7, %v2637_v45 }
 0x24f   : > { %1612 = vst [vmem:[%s2453_s15 + $0x60] sm:$0xff] %v1580_v53  ;;  %1613 = vst [vmem:[%s2453_s15 + $0x68] sm:$0xff] %v1581_v54  ;;  %v1587_v16 = vadd.f32 %v1555_v9, %v2643_v55  ;;  %v1588_v17 = vadd.f32 %v1556_v10, %v2652_v8  ;;  %v1557_v20 = vld [vmem:[%s2446_s12 + $0xa8] sm:$0xff]  ;;  %v1558_v22 = vld [vmem:[%s2446_s12 + $0xb0] sm:$0xff] }
 0x250   : > { %1614 = vst [vmem:[%s2453_s15 + $0x70] sm:$0xff] %v1582_v58  ;;  %v1559_v23 = vld [vmem:[%s2446_s12 + $0xb8] sm:$0xff]  ;;  %1615 = vst [vmem:[%s2453_s15 + $0x78] sm:$0xff] %v1583_v37  ;;  %v1589_v24 = vadd.f32 %v1557_v20, %v2657_v14  ;;  %v1590_v26 = vadd.f32 %v1558_v22, %v2649_v3  ;;  %v1560_v29 = vld [vmem:[%s2446_s12 + $0xc0] sm:$0xff] }
 0x251   : > { %1616 = vst [vmem:[%s2453_s15 + $0x80] sm:$0xff] %v1584_v5  ;;  %1617 = vst [vmem:[%s2453_s15 + $0x88] sm:$0xff] %v1585_v6  ;;  %v1591_v27 = vadd.f32 %v1559_v23, %v2655_v12  ;;  %v1561_v31 = vld [vmem:[%s2446_s12 + $0xc8] sm:$0xff]  ;;  %v1562_v33 = vld [vmem:[%s2446_s12 + $0xd0] sm:$0xff]  ;;  %v1592_v36 = vadd.f32 %v1560_v29, %v2664_v30 }
 0x252   : > { %1618 = vst [vmem:[%s2453_s15 + $0x90] sm:$0xff] %v1586_v13  ;;  %1619 = vst [vmem:[%s2453_s15 + $0x98] sm:$0xff] %v1587_v16  ;;  %v1593_v40 = vadd.f32 %v1561_v31, %v2669_v39  ;;  %v1594_v18 = vadd.f32 %v1562_v33, %v2661_v25  ;;  %v1563_v41 = vld [vmem:[%s2446_s12 + $0xd8] sm:$0xff]  ;;  %v1564_v42 = vld [vmem:[%s2446_s12 + $0xe0] sm:$0xff] }
 0x253   : > { %1620 = vst [vmem:[%s2453_s15 + $0xa0] sm:$0xff] %v1588_v17  ;;  %v1565_v44 = vld [vmem:[%s2446_s12 + $0xe8] sm:$0xff]  ;;  %1621 = vst [vmem:[%s2453_s15 + $0xa8] sm:$0xff] %v1589_v24  ;;  %v1595_v46 = vadd.f32 %v1563_v41, %v2667_v34  ;;  %v1596_v49 = vadd.f32 %v1564_v42, %v2676_v56  ;;  %v1566_v54 = vld [vmem:[%s2446_s12 + $0xf0] sm:$0xff] }
 0x254   : > { %1622 = vst [vmem:[%s2453_s15 + $0xb0] sm:$0xff] %v1590_v26  ;;  %1623 = vst [vmem:[%s2453_s15 + $0xb8] sm:$0xff] %v1591_v27  ;;  %v1597_v53 = vadd.f32 %v1565_v44, %v2681_v0  ;;  %v1567_v58 = vld [vmem:[%s2446_s12 + $0xf8] sm:$0xff]  ;;  %v1598_v60 = vadd.f32 %v1566_v54, %v2673_v48 }
 0x255   : > { %1624 = vst [vmem:[%s2453_s15 + $0xc0] sm:$0xff] %v1592_v36  ;;  %1625 = vst [vmem:[%s2453_s15 + $0xc8] sm:$0xff] %v1593_v40  ;;  %v1599_v62 = vadd.f32 %v1567_v58, %v2679_v61 }
 0x256   : > { %1626 = vst [vmem:[%s2453_s15 + $0xd0] sm:$0xff] %v1594_v18  ;;  %1627 = vst [vmem:[%s2453_s15 + $0xd8] sm:$0xff] %v1595_v46 }
 0x257   : > { %1628 = vst [vmem:[%s2453_s15 + $0xe0] sm:$0xff] %v1596_v49  ;;  %1629 = vst [vmem:[%s2453_s15 + $0xe8] sm:$0xff] %v1597_v53 }
 0x258   : > { %1630 = vst [vmem:[%s2453_s15 + $0xf0] sm:$0xff] %v1598_v60  ;;  %1631 = vst [vmem:[%s2453_s15 + $0xf8] sm:$0xff] %v1599_v62 }
 0x259 PF: > { %p1924_p8 = scmp.eq.s32.totalorder %s2345_s21, 0 }
 0x25b   : > { %1635 = sbr.rel (%p1924_p8) target bundleno = 627 (0x273), region = 52 }
 0x260   : > { %v1636_v1 = vld [vmem:[%s2453_s15] sm:$0xff]  ;;  %v1637_v37 = vld [vmem:[%s2453_s15 + $0x8] sm:$0xff]  ;;  %v1638_v5 = vld [vmem:[%s2453_s15 + $0x10] sm:$0xff] }
 0x261   : > { %v1668_v6 = vadd.f32 %v1636_v1, %v2592_v47  ;;  %v1669_v7 = vadd.f32 %v1637_v37, %v2597_v52  ;;  %v1670_v9 = vadd.f32 %v1638_v5, %v2589_v43  ;;  %v1639_v10 = vld [vmem:[%s2453_s15 + $0x18] sm:$0xff]  ;;  %v1640_v13 = vld [vmem:[%s2453_s15 + $0x20] sm:$0xff]  ;;  %v1641_v16 = vld [vmem:[%s2453_s15 + $0x28] sm:$0xff] }
 0x262   : > { %v1671_v17 = vadd.f32 %v1639_v10, %v2595_v50  ;;  %v1672_v20 = vadd.f32 %v1640_v13, %v2604_v63  ;;  %v1673_v22 = vadd.f32 %v1641_v16, %v2609_v4  ;;  %v1642_v47 = vld [vmem:[%s2453_s15 + $0x30] sm:$0xff]  ;;  %v1643_v23 = vld [vmem:[%s2453_s15 + $0x38] sm:$0xff]  ;;  %v1644_v52 = vld [vmem:[%s2453_s15 + $0x40] sm:$0xff] }
 0x263   : > { %1700 = vst [vmem:[%s2453_s15] sm:$0xff] %v1668_v6  ;;  %1701 = vst [vmem:[%s2453_s15 + $0x8] sm:$0xff] %v1669_v7  ;;  %v1674_v43 = vadd.f32 %v1642_v47, %v2601_v59  ;;  %v1675_v50 = vadd.f32 %v1643_v23, %v2607_v2  ;;  %v1676_v63 = vadd.f32 %v1644_v52, %v2616_v15  ;;  %v1645_v24 = vld [vmem:[%s2453_s15 + $0x48] sm:$0xff]  ;;  %v1646_v4 = vld [vmem:[%s2453_s15 + $0x50] sm:$0xff] }
 0x264   : > { %1702 = vst [vmem:[%s2453_s15 + $0x10] sm:$0xff] %v1670_v9  ;;  %v1647_v26 = vld [vmem:[%s2453_s15 + $0x58] sm:$0xff]  ;;  %1703 = vst [vmem:[%s2453_s15 + $0x18] sm:$0xff] %v1671_v17  ;;  %v1677_v27 = vadd.f32 %v1645_v24, %v2621_v21  ;;  %v1678_v59 = vadd.f32 %v1646_v4, %v2613_v11  ;;  %v1648_v29 = vld [vmem:[%s2453_s15 + $0x60] sm:$0xff] }
 0x265   : > { %1704 = vst [vmem:[%s2453_s15 + $0x20] sm:$0xff] %v1672_v20  ;;  %1705 = vst [vmem:[%s2453_s15 + $0x28] sm:$0xff] %v1673_v22  ;;  %v1679_v2 = vadd.f32 %v1647_v26, %v2619_v19  ;;  %v1649_v15 = vld [vmem:[%s2453_s15 + $0x68] sm:$0xff]  ;;  %v1650_v31 = vld [vmem:[%s2453_s15 + $0x70] sm:$0xff]  ;;  %v1680_v33 = vadd.f32 %v1648_v29, %v2628_v32 }
 0x266   : > { %1706 = vst [vmem:[%s2453_s15 + $0x30] sm:$0xff] %v1674_v43  ;;  %1707 = vst [vmem:[%s2453_s15 + $0x38] sm:$0xff] %v1675_v50  ;;  %v1681_v21 = vadd.f32 %v1649_v15, %v2633_v38  ;;  %v1682_v11 = vadd.f32 %v1650_v31, %v2625_v28  ;;  %v1651_v36 = vld [vmem:[%s2453_s15 + $0x78] sm:$0xff]  ;;  %v1652_v19 = vld [vmem:[%s2453_s15 + $0x80] sm:$0xff] }
 0x267   : > { %1708 = vst [vmem:[%s2453_s15 + $0x40] sm:$0xff] %v1676_v63  ;;  %v1653_v40 = vld [vmem:[%s2453_s15 + $0x88] sm:$0xff]  ;;  %1709 = vst [vmem:[%s2453_s15 + $0x48] sm:$0xff] %v1677_v27  ;;  %v1683_v18 = vadd.f32 %v1651_v36, %v2631_v35  ;;  %v1684_v32 = vadd.f32 %v1652_v19, %v2640_v51  ;;  %v1654_v41 = vld [vmem:[%s2453_s15 + $0x90] sm:$0xff] }
 0x268   : > { %1710 = vst [vmem:[%s2453_s15 + $0x50] sm:$0xff] %v1678_v59  ;;  %1711 = vst [vmem:[%s2453_s15 + $0x58] sm:$0xff] %v1679_v2  ;;  %v1685_v38 = vadd.f32 %v1653_v40, %v2645_v57  ;;  %v1655_v28 = vld [vmem:[%s2453_s15 + $0x98] sm:$0xff]  ;;  %v1656_v42 = vld [vmem:[%s2453_s15 + $0xa0] sm:$0xff]  ;;  %v1686_v44 = vadd.f32 %v1654_v41, %v2637_v45 }
 0x269   : > { %1712 = vst [vmem:[%s2453_s15 + $0x60] sm:$0xff] %v1680_v33  ;;  %1713 = vst [vmem:[%s2453_s15 + $0x68] sm:$0xff] %v1681_v21  ;;  %v1687_v35 = vadd.f32 %v1655_v28, %v2643_v55  ;;  %v1688_v51 = vadd.f32 %v1656_v42, %v2652_v8  ;;  %v1657_v46 = vld [vmem:[%s2453_s15 + $0xa8] sm:$0xff]  ;;  %v1658_v57 = vld [vmem:[%s2453_s15 + $0xb0] sm:$0xff] }
 0x26a   : > { %1714 = vst [vmem:[%s2453_s15 + $0x70] sm:$0xff] %v1682_v11  ;;  %v1659_v49 = vld [vmem:[%s2453_s15 + $0xb8] sm:$0xff]  ;;  %1715 = vst [vmem:[%s2453_s15 + $0x78] sm:$0xff] %v1683_v18  ;;  %v1689_v53 = vadd.f32 %v1657_v46, %v2657_v14  ;;  %v1690_v45 = vadd.f32 %v1658_v57, %v2649_v3  ;;  %v1660_v54 = vld [vmem:[%s2453_s15 + $0xc0] sm:$0xff] }
 0x26b   : > { %1716 = vst [vmem:[%s2453_s15 + $0x80] sm:$0xff] %v1684_v32  ;;  %1717 = vst [vmem:[%s2453_s15 + $0x88] sm:$0xff] %v1685_v38  ;;  %v1691_v55 = vadd.f32 %v1659_v49, %v2655_v12  ;;  %v1661_v8 = vld [vmem:[%s2453_s15 + $0xc8] sm:$0xff]  ;;  %v1662_v58 = vld [vmem:[%s2453_s15 + $0xd0] sm:$0xff]  ;;  %v1692_v60 = vadd.f32 %v1660_v54, %v2664_v30 }
 0x26c   : > { %1718 = vst [vmem:[%s2453_s15 + $0x90] sm:$0xff] %v1686_v44  ;;  %1719 = vst [vmem:[%s2453_s15 + $0x98] sm:$0xff] %v1687_v35  ;;  %v1693_v14 = vadd.f32 %v1661_v8, %v2669_v39  ;;  %v1694_v3 = vadd.f32 %v1662_v58, %v2661_v25  ;;  %v1663_v62 = vld [vmem:[%s2453_s15 + $0xd8] sm:$0xff]  ;;  %v1664_v12 = vld [vmem:[%s2453_s15 + $0xe0] sm:$0xff] }
 0x26d   : > { %1720 = vst [vmem:[%s2453_s15 + $0xa0] sm:$0xff] %v1688_v51  ;;  %v1665_v1 = vld [vmem:[%s2453_s15 + $0xe8] sm:$0xff]  ;;  %1721 = vst [vmem:[%s2453_s15 + $0xa8] sm:$0xff] %v1689_v53  ;;  %v1695_v37 = vadd.f32 %v1663_v62, %v2667_v34  ;;  %v1696_v30 = vadd.f32 %v1664_v12, %v2676_v56  ;;  %v1666_v39 = vld [vmem:[%s2453_s15 + $0xf0] sm:$0xff] }
 0x26e   : > { %1722 = vst [vmem:[%s2453_s15 + $0xb0] sm:$0xff] %v1690_v45  ;;  %1723 = vst [vmem:[%s2453_s15 + $0xb8] sm:$0xff] %v1691_v55  ;;  %v1697_v5 = vadd.f32 %v1665_v1, %v2681_v0  ;;  %v1667_v6 = vld [vmem:[%s2453_s15 + $0xf8] sm:$0xff]  ;;  %v1698_v25 = vadd.f32 %v1666_v39, %v2673_v48 }
 0x26f   : > { %1724 = vst [vmem:[%s2453_s15 + $0xc0] sm:$0xff] %v1692_v60  ;;  %1725 = vst [vmem:[%s2453_s15 + $0xc8] sm:$0xff] %v1693_v14  ;;  %v1699_v7 = vadd.f32 %v1667_v6, %v2679_v61 }
 0x270   : > { %1726 = vst [vmem:[%s2453_s15 + $0xd0] sm:$0xff] %v1694_v3  ;;  %1727 = vst [vmem:[%s2453_s15 + $0xd8] sm:$0xff] %v1695_v37 }
 0x271   : > { %1728 = vst [vmem:[%s2453_s15 + $0xe0] sm:$0xff] %v1696_v30  ;;  %1729 = vst [vmem:[%s2453_s15 + $0xe8] sm:$0xff] %v1697_v5 }
 0x272   : > { %1730 = vst [vmem:[%s2453_s15 + $0xf0] sm:$0xff] %v1698_v25  ;;  %1731 = vst [vmem:[%s2453_s15 + $0xf8] sm:$0xff] %v1699_v7 }
 0x273 PF: > { %s16_s25 = sadd.s32 1, %s2361_s25   ;;  %s2899_s21 = smov %s2353_s23 }
 0x274   : > { %p13_p9 = scmp.ge.s32.totalorder %s16_s25, 12   ;;  %s2900_s22 = smov %s2357_s24 }
 0x275   : > { %s2901_s23 = smov %s2904_s26  ;;  %s2902_s24 = smov %s2908_s27 }
 0x276   :  { %15 = sbr.rel (!%p13_p9) target bundleno = 3 (0x3), region = 89 }

</bundles_post_ra>
